<compile_context>
chip_gen: v5e
topology: v5e:2x2
jax: 0.10.0
libtpu: 0.0.40
codegen_flags: <defaults>
</compile_context>

<pallas_src>
import math

import jax
import jax.numpy as jnp
from jax.experimental import pallas as pl
from jax.experimental.pallas import tpu as pltpu

# ----- synthetic small ProGen2-style config (lane/MXU friendly) -----
N_LAYER = 4                     # transformer blocks in the synthetic model
LAYER_TO_USE = N_LAYER - 1      # ProGenFamily default: 'last' -> no_layers - 1
D_MODEL = 256                   # multiple of 128 -> lane-dense everywhere
N_HEAD = 2
HEAD_DIM = D_MODEL // N_HEAD    # 128 = one full lane width per head
HD2 = HEAD_DIM // 2             # 64
D_INNER = 4 * D_MODEL           # 1024
VOCAB = 32
LN_EPS = 1e-5
NEG_INF = -1e30                 # additive mask value; scores stay in f32


def _gelu_new(x):
    # GPT-J / ProGen2 "gelu_new" (tanh approximation); fp32.
    return 0.5 * x * (1.0 + jnp.tanh(
        jnp.sqrt(2.0 / jnp.pi) * (x + 0.044715 * x * x * x)))


# --------------------------------------------------------------------------
# Fused kernel: all blocks + per-sequence mean.  Grid = (layers,).
# --------------------------------------------------------------------------
def _make_fused_kernel(batch, seq):
    def kernel(x0_ref, ln_w_ref, ln_b_ref, wqkv_ref, wout_ref,
               fc_in_w_ref, fc_in_b_ref, fc_out_w_ref, fc_out_b_ref,
               sin_ref, cos_ref, bias_ref, o_ref, x_vmem):
        l = pl.program_id(0)
        n_layers = pl.num_programs(0)

        # Layer 0: load the (B*S, D) embeddings into the VMEM-resident residual.
        @pl.when(l == 0)
        def _():
            x_vmem[...] = x0_ref[...]

        x = x_vmem[...]                                   # (BS, D) f32 residual

        # ---- LayerNorm (ln_1), fp32 -----------------------------------------
        mu = jnp.mean(x, axis=-1, keepdims=True)
        var = jnp.mean(jnp.square(x - mu), axis=-1, keepdims=True)
        h = (x - mu) * jax.lax.rsqrt(var + LN_EPS)
        h = h * ln_w_ref[0] + ln_b_ref[0]
        h_bf = h.astype(jnp.bfloat16)                     # MXU operand

        # ---- fused QKV projection (bias-free, ProGen2 style) -----------------
        # 1/sqrt(HEAD_DIM) is already folded into the q columns host-side.
        qkv = jnp.dot(h_bf, wqkv_ref[0], preferred_element_type=jnp.float32)

        sin = sin_ref[...]                                # (BS, HEAD_DIM) f32
        cos = cos_ref[...]

        def rope(th):                                     # (BS, HEAD_DIM) f32
            # NeoX-style half rotation (matches the in-file reference).
            # TODO(synk): real GPT-J / ProGen2 checkpoints use interleaved
            # rotate_every_two rotary; switch when porting real weights.
            t1 = th[:, :HD2]
            t2 = th[:, HD2:]
            rot = jnp.concatenate([-t2, t1], axis=1)
            return th * cos + rot * sin

        # Per-head slices are 128-lane aligned; cast to bf16 BEFORE stacking.
        q_heads, k_heads, v_heads = [], [], []
        for hh in range(N_HEAD):
            lo = hh * HEAD_DIM
            q_heads.append(rope(qkv[:, lo:lo + HEAD_DIM]).astype(jnp.bfloat16))
            k_heads.append(
                rope(qkv[:, D_MODEL + lo:D_MODEL + lo + HEAD_DIM])
                .astype(jnp.bfloat16))
            v_heads.append(
                qkv[:, 2 * D_MODEL + lo:2 * D_MODEL + lo + HEAD_DIM]
                .astype(jnp.bfloat16))
        qh = jnp.stack(q_heads, axis=0)                   # (H, BS, HD) bf16
        kh = jnp.stack(k_heads, axis=0)
        vh = jnp.stack(v_heads, axis=0)

        # ---- head-batched attention over the folded B*S rows -----------------
        # bias_ref is the precomputed block-diagonal causal mask (0 / -1e30):
        # cross-sequence scores introduced by folding batch into M are dropped.
        # TODO(synk): for real sequence lengths use flash-style online softmax
        # (tile KV, running max/denominator in VMEM) instead of full (H,BS,BS).
        scores = jnp.einsum("hqd,hkd->hqk", qh, kh,
                            preferred_element_type=jnp.float32)
        scores = scores + bias_ref[...]                   # f32 masking
        m = jnp.max(scores, axis=-1, keepdims=True)
        e = jnp.exp(scores - m)
        # TODO(synk): on hardware, pl.reciprocal(sum, approx=True) moves this
        # divide onto the EUP slot; plain divide kept for portability here.
        p = e / jnp.sum(e, axis=-1, keepdims=True)

        ctx = jnp.einsum("hqk,hkd->hqd", p.astype(jnp.bfloat16), vh,
                         preferred_element_type=jnp.float32)   # (H, BS, HD)

        # Merge heads into a lane-aligned (BS, D) bf16 slab, then ONE
        # (BS,D)@(D,D) out-projection matmul (full MXU K depth, no f32
        # cross-head sum intermediate).
        ctx_m = jnp.concatenate([ctx[hh] for hh in range(N_HEAD)],
                                axis=-1).astype(jnp.bfloat16)
        attn_out = jnp.dot(ctx_m, wout_ref[0],
                           preferred_element_type=jnp.float32)

        # ---- MLP branch (parallel to attention, GPT-J / ProGen2 style) -------
        mlp = jnp.dot(h_bf, fc_in_w_ref[0],
                      preferred_element_type=jnp.float32) + fc_in_b_ref[0]
        mlp = _gelu_new(mlp)                              # fp32
        mlp = jnp.dot(mlp.astype(jnp.bfloat16), fc_out_w_ref[0],
                      preferred_element_type=jnp.float32) + fc_out_b_ref[0]

        # ---- residual, kept resident in VMEM across the layer grid axis ------
        x_new = x + attn_out + mlp
        x_vmem[...] = x_new

        # ---- fused epilogue: torch.mean(hidden_states[layer_to_use], dim=1) --
        @pl.when(l == n_layers - 1)
        def _():
            o_ref[...] = jnp.mean(x_new.reshape(batch, seq, D_MODEL), axis=1)

    return kernel


def progen_hidden_mean(x0_flat, w, sin, cos, bias, *, batch, seq):
    """All transformer blocks + per-sequence mean in one fused pallas_call."""
    n_blocks = w["wqkv"].shape[0]
    D = D_MODEL
    bs = batch * seq
    kernel = _make_fused_kernel(batch, seq)
    in_specs = [
        pl.BlockSpec((bs, D), lambda l: (0, 0)),                  # embeddings
        pl.BlockSpec((1, 1, D), lambda l: (l, 0, 0)),             # ln_1 w
        pl.BlockSpec((1, 1, D), lambda l: (l, 0, 0)),             # ln_1 b
        pl.BlockSpec((1, D, 3 * D), lambda l: (l, 0, 0)),         # qkv_proj
        pl.BlockSpec((1, D, D), lambda l: (l, 0, 0)),             # out_proj
        pl.BlockSpec((1, D, D_INNER), lambda l: (l, 0, 0)),       # fc_in w
        pl.BlockSpec((1, 1, D_INNER), lambda l: (l, 0, 0)),       # fc_in b
        pl.BlockSpec((1, D_INNER, D), lambda l: (l, 0, 0)),       # fc_out w
        pl.BlockSpec((1, 1, D), lambda l: (l, 0, 0)),             # fc_out b
        pl.BlockSpec((bs, HEAD_DIM), lambda l: (0, 0)),           # rope sin
        pl.BlockSpec((bs, HEAD_DIM), lambda l: (0, 0)),           # rope cos
        pl.BlockSpec((bs, bs), lambda l: (0, 0)),                 # causal bias
    ]
    return pl.pallas_call(
        kernel,
        out_shape=jax.ShapeDtypeStruct((batch, D), jnp.float32),
        grid=(n_blocks,),
        in_specs=in_specs,
        out_specs=pl.BlockSpec((batch, D), lambda l: (0, 0)),
        scratch_shapes=[pltpu.VMEM((bs, D), jnp.float32)],         # residual
        compiler_params=pltpu.CompilerParams(
            dimension_semantics=("arbitrary",)),
    )(x0_flat, w["ln_w"], w["ln_b"], w["wqkv"], w["wout"],
      w["fc_in_w"], w["fc_in_b"], w["fc_out_w"], w["fc_out_b"],
      sin, cos, bias)


# --------------------------------------------------------------------------
# Parameters / rotary tables / causal bias / host-side stacking
# --------------------------------------------------------------------------
def init_params(key):
    def nrm(k, shape, scale=0.02):
        return (scale * jax.random.normal(k, shape)).astype(jnp.float32)

    keys = jax.random.split(key, 1 + N_LAYER)
    params = {"wte": nrm(keys[0], (VOCAB, D_MODEL))}
    blocks = []
    for i in range(N_LAYER):
        ks = jax.random.split(keys[1 + i], 8)
        blocks.append({
            "ln_w": 1.0 + nrm(ks[4], (D_MODEL,), 0.05),
            "ln_b": nrm(ks[5], (D_MODEL,), 0.05),
            "wqkv": nrm(ks[0], (D_MODEL, 3 * D_MODEL)),
            "wout": nrm(ks[1], (D_MODEL, D_MODEL)),
            "fc_in_w": nrm(ks[2], (D_MODEL, D_INNER)),
            "fc_in_b": nrm(ks[6], (D_INNER,), 0.02),
            "fc_out_w": nrm(ks[3], (D_INNER, D_MODEL)),
            "fc_out_b": nrm(ks[7], (D_MODEL,), 0.02),
        })
    params["blocks"] = blocks
    return params


def stack_block_params(blocks):
    """Stack per-layer weights on a leading layer axis; bf16 MXU operands.

    The 1/sqrt(head_dim) attention scale is folded into the q columns of the
    fused QKV weight (a one-time host-side prep, not a per-call wrapper op).
    """
    L = len(blocks)

    def s(name):
        return jnp.stack([b[name] for b in blocks], axis=0)

    wqkv = s("wqkv")
    wqkv = wqkv.at[:, :, :D_MODEL].multiply(1.0 / math.sqrt(HEAD_DIM))

    return {
        "ln_w": s("ln_w").reshape(L, 1, D_MODEL),
        "ln_b": s("ln_b").reshape(L, 1, D_MODEL),
        "wqkv": wqkv.astype(jnp.bfloat16),
        "wout": s("wout").astype(jnp.bfloat16),
        "fc_in_w": s("fc_in_w").astype(jnp.bfloat16),
        "fc_in_b": s("fc_in_b").reshape(L, 1, D_INNER),
        "fc_out_w": s("fc_out_w").astype(jnp.bfloat16),
        "fc_out_b": s("fc_out_b").reshape(L, 1, D_MODEL),
    }


def _rotary_base(seq_len):
    pos = jnp.arange(seq_len, dtype=jnp.float32)
    inv_freq = 1.0 / (10000.0 ** (jnp.arange(0, HEAD_DIM, 2, dtype=jnp.float32)
                                  / HEAD_DIM))
    freqs = pos[:, None] * inv_freq[None, :]              # (S, HD2)
    return jnp.sin(freqs), jnp.cos(freqs)


def rotary_tables(batch, seq):
    """(B*S, HEAD_DIM) sin/cos tables; same table for every head, rows tiled
    across the folded batch so row b*S+s carries position s."""
    sin, cos = _rotary_base(seq)                           # (S, HD2)
    sin_full = jnp.tile(sin, (1, 2))                       # (S, HEAD_DIM)
    cos_full = jnp.tile(cos, (1, 2))
    return (jnp.tile(sin_full, (batch, 1)).astype(jnp.float32),
            jnp.tile(cos_full, (batch, 1)).astype(jnp.float32))


def attention_bias(batch, seq):
    """Block-diagonal causal additive bias over the folded (B*S) rows."""
    idx = jnp.arange(batch * seq)
    seg = idx // seq
    pos = idx % seq
    allowed = (seg[:, None] == seg[None, :]) & (pos[:, None] >= pos[None, :])
    return jnp.where(allowed, 0.0, NEG_INF).astype(jnp.float32)


def progen_family_forward(tokens, params):
    """ProGenFamily.forward: mean over sequence of hidden_states[layer_to_use]."""
    B, S = tokens.shape
    # hidden_states[k] = activation after k blocks (k=0 -> embeddings, HF
    # GPT-J semantics: only the very last entry has ln_f applied), so
    # layer_to_use = no_layers - 1 needs exactly LAYER_TO_USE blocks and no
    # final LayerNorm; the last block's output is unused and never computed.
    w = stack_block_params(params["blocks"][:LAYER_TO_USE])
    sin, cos = rotary_tables(B, S)
    bias = attention_bias(B, S)
    x0 = params["wte"][tokens].astype(jnp.float32)        # token gather (glue)
    x0_flat = x0.reshape(B * S, D_MODEL)                   # batch folded onto M
    out = progen_hidden_mean(x0_flat, w, sin, cos, bias, batch=B, seq=S)
    # self.head is None -> identity
    return out


# --------------------------------------------------------------------------
# Pure-JAX reference (independent per-head split/concat formulation)
# --------------------------------------------------------------------------
def _reference_block(x, p, sin_h, cos_h):
    Bb, Ss, Dd = x.shape
    mu = jnp.mean(x, axis=-1, keepdims=True)
    var = jnp.mean(jnp.square(x - mu), axis=-1, keepdims=True)
    h = (x - mu) * jax.lax.rsqrt(var + LN_EPS) * p["ln_w"] + p["ln_b"]
    hb = h.astype(jnp.bfloat16)

    qkv = jnp.einsum("bsd,df->bsf", hb, p["wqkv"].astype(jnp.bfloat16),
                     preferred_element_type=jnp.float32)
    q, k, v = jnp.split(qkv, 3, axis=-1)

    def rope(t):
        t = t.reshape(Bb, Ss, N_HEAD, HEAD_DIM)
        t1, t2 = t[..., :HD2], t[..., HD2:]
        c = cos_h[None, :, None, :]
        s = sin_h[None, :, None, :]
        return jnp.concatenate([t1 * c - t2 * s, t2 * c + t1 * s], axis=-1)

    qh = rope(q).astype(jnp.bfloat16)                      # (B, S, H, HD)
    kh = rope(k).astype(jnp.bfloat16)
    vh = v.reshape(Bb, Ss, N_HEAD, HEAD_DIM).astype(jnp.bfloat16)

    scores = jnp.einsum("bqhd,bkhd->bhqk", qh, kh,
                        preferred_element_type=jnp.float32) * (1.0 / math.sqrt(HEAD_DIM))
    causal = jnp.tril(jnp.ones((Ss, Ss), dtype=bool))
    scores = jnp.where(causal[None, None], scores, NEG_INF)
    m = jnp.max(scores, axis=-1, keepdims=True)
    e = jnp.exp(scores - m)
    probs = e / jnp.sum(e, axis=-1, keepdims=True)
    ctx = jnp.einsum("bhqk,bkhd->bqhd", probs.astype(jnp.bfloat16), vh,
                     preferred_element_type=jnp.float32).reshape(Bb, Ss, Dd)
    attn_out = jnp.einsum("bsd,de->bse", ctx.astype(jnp.bfloat16),
                          p["wout"].astype(jnp.bfloat16),
                          preferred_element_type=jnp.float32)

    mh = jnp.einsum("bsd,df->bsf", hb, p["fc_in_w"].astype(jnp.bfloat16),
                    preferred_element_type=jnp.float32) + p["fc_in_b"]
    mh = _gelu_new(mh)
    mlp_out = jnp.einsum("bsf,fd->bsd", mh.astype(jnp.bfloat16),
                         p["fc_out_w"].astype(jnp.bfloat16),
                         preferred_element_type=jnp.float32) + p["fc_out_b"]

    return x + attn_out + mlp_out


def reference_forward(tokens, params):
    sin_h, cos_h = _rotary_base(tokens.shape[1])
    x = params["wte"][tokens].astype(jnp.float32)
    for blk in params["blocks"][:LAYER_TO_USE]:
        x = _reference_block(x, blk, sin_h, cos_h)
    return jnp.mean(x, axis=1)


if __name__ == "__main__":
    key = jax.random.PRNGKey(0)
    params = init_params(key)
    B, S = 2, 8
    tokens = jax.random.randint(jax.random.fold_in(key, 123), (B, S), 0, VOCAB,
                                dtype=jnp.int32)

    fwd = jax.jit(lambda t: progen_family_forward(t, params))
    out = jax.block_until_ready(fwd(tokens))
    assert out.shape == (B, D_MODEL) and out.dtype == jnp.float32

    ref = jax.block_until_ready(
        jax.jit(lambda t: reference_forward(t, params))(tokens))
    max_err = float(jnp.max(jnp.abs(out - ref)))
    assert max_err < 1e-2, f"kernel/reference mismatch: {max_err}"

    print("KERNEL_OK")
</pallas_src>

<mosaic_0001>
module attributes {stable_mosaic.version = 11 : i64} {
  func.func @kernel(%arg0: i32, %arg1: memref<16x256xf32, #tpu.memory_space<vmem>>, %arg2: memref<1x1x256xf32, #tpu.memory_space<vmem>>, %arg3: memref<1x1x256xf32, #tpu.memory_space<vmem>>, %arg4: memref<1x256x768xbf16, #tpu.memory_space<vmem>>, %arg5: memref<1x256x256xbf16, #tpu.memory_space<vmem>>, %arg6: memref<1x256x1024xbf16, #tpu.memory_space<vmem>>, %arg7: memref<1x1x1024xf32, #tpu.memory_space<vmem>>, %arg8: memref<1x1024x256xbf16, #tpu.memory_space<vmem>>, %arg9: memref<1x1x256xf32, #tpu.memory_space<vmem>>, %arg10: memref<16x128xf32, #tpu.memory_space<vmem>>, %arg11: memref<16x128xf32, #tpu.memory_space<vmem>>, %arg12: memref<16x16xf32, #tpu.memory_space<vmem>>, %arg13: memref<2x256xf32, #tpu.memory_space<vmem>>, %arg14: memref<16x256xf32, #tpu.memory_space<vmem>>) attributes {dimension_semantics = [#tpu.dimension_semantics<arbitrary>], iteration_bounds = array<i64: 3>, scalar_prefetch = 0 : i64, scratch_operands = 1 : i64, tpu.core_type = #tpu.core_type<tc>, window_params = [{pipeline_mode = #tpu.pipeline_mode<synchronous>, transform_indices = @transform_0, window_bounds = array<i64: 16, 256>}, {transform_indices = @transform_1, window_bounds = array<i64: 1, 1, 256>}, {transform_indices = @transform_2, window_bounds = array<i64: 1, 1, 256>}, {transform_indices = @transform_3, window_bounds = array<i64: 1, 256, 768>}, {transform_indices = @transform_4, window_bounds = array<i64: 1, 256, 256>}, {transform_indices = @transform_5, window_bounds = array<i64: 1, 256, 1024>}, {transform_indices = @transform_6, window_bounds = array<i64: 1, 1, 1024>}, {transform_indices = @transform_7, window_bounds = array<i64: 1, 1024, 256>}, {transform_indices = @transform_8, window_bounds = array<i64: 1, 1, 256>}, {pipeline_mode = #tpu.pipeline_mode<synchronous>, transform_indices = @transform_9, window_bounds = array<i64: 16, 128>}, {pipeline_mode = #tpu.pipeline_mode<synchronous>, transform_indices = @transform_10, window_bounds = array<i64: 16, 128>}, {pipeline_mode = #tpu.pipeline_mode<synchronous>, transform_indices = @transform_11, window_bounds = array<i64: 16, 16>}, {pipeline_mode = #tpu.pipeline_mode<synchronous>, transform_indices = @transform_12, window_bounds = array<i64: 2, 256>}]} {
    %c0_i32 = arith.constant 0 : i32
    %0 = arith.cmpi eq, %arg0, %c0_i32 : i32
    %1 = arith.extui %0 : i1 to i32
    %c0_i32_0 = arith.constant 0 : i32
    %2 = arith.cmpi ne, %1, %c0_i32_0 : i32
    scf.if %2 {
      %c0_55 = arith.constant 0 : index
      %c0_56 = arith.constant 0 : index
      %149 = vector.load %arg1[%c0_55, %c0_56] : memref<16x256xf32, #tpu.memory_space<vmem>>, vector<16x256xf32>
      %c0_57 = arith.constant 0 : index
      %c0_58 = arith.constant 0 : index
      %150 = vector.load %arg14[%c0_57, %c0_58] : memref<16x256xf32, #tpu.memory_space<vmem>>, vector<16x256xf32>
      tpu.vector_store %arg14[%c0_57, %c0_58], %149 {strides = array<i32>} : memref<16x256xf32, #tpu.memory_space<vmem>>, vector<16x256xf32>,
    } else {
    }
    %c0 = arith.constant 0 : index
    %c0_1 = arith.constant 0 : index
    %3 = vector.load %arg14[%c0, %c0_1] : memref<16x256xf32, #tpu.memory_space<vmem>>, vector<16x256xf32>
    %cst = arith.constant dense<0.000000e+00> : vector<16xf32>
    %4 = vector.multi_reduction <add>, %3, %cst [1] : vector<16x256xf32> to vector<16xf32>
    %5 = vector.shape_cast %4 : vector<16xf32> to vector<16x1xf32>
    %cst_2 = arith.constant 2.560000e+02 : f32
    %6 = vector.broadcast %cst_2 : f32 to vector<16x1xf32>
    %7 = arith.divf %5, %6 : vector<16x1xf32>
    %8 = vector.broadcast %7 : vector<16x1xf32> to vector<16x256xf32>
    %9 = arith.subf %3, %8 : vector<16x256xf32>
    %10 = arith.mulf %9, %9 : vector<16x256xf32>
    %cst_3 = arith.constant dense<0.000000e+00> : vector<16xf32>
    %11 = vector.multi_reduction <add>, %10, %cst_3 [1] : vector<16x256xf32> to vector<16xf32>
    %12 = vector.shape_cast %11 : vector<16xf32> to vector<16x1xf32>
    %cst_4 = arith.constant 2.560000e+02 : f32
    %13 = vector.broadcast %cst_4 : f32 to vector<16x1xf32>
    %14 = arith.divf %12, %13 : vector<16x1xf32>
    %15 = vector.broadcast %7 : vector<16x1xf32> to vector<16x256xf32>
    %16 = arith.subf %3, %15 : vector<16x256xf32>
    %cst_5 = arith.constant 9.99999974E-6 : f32
    %17 = vector.broadcast %cst_5 : f32 to vector<16x1xf32>
    %18 = arith.addf %14, %17 : vector<16x1xf32>
    %19 = math.rsqrt %18 : vector<16x1xf32>
    %20 = vector.broadcast %19 : vector<16x1xf32> to vector<16x256xf32>
    %21 = arith.mulf %16, %20 : vector<16x256xf32>
    %c0_6 = arith.constant 0 : index
    %c0_7 = arith.constant 0 : index
    %c0_8 = arith.constant 0 : index
    %22 = vector.load %arg2[%c0_6, %c0_7, %c0_8] : memref<1x1x256xf32, #tpu.memory_space<vmem>>, vector<1x1x256xf32>
    %23 = vector.shape_cast %22 : vector<1x1x256xf32> to vector<1x256xf32>
    %24 = vector.broadcast %23 : vector<1x256xf32> to vector<16x256xf32>
    %25 = arith.mulf %21, %24 : vector<16x256xf32>
    %c0_9 = arith.constant 0 : index
    %c0_10 = arith.constant 0 : index
    %c0_11 = arith.constant 0 : index
    %26 = vector.load %arg3[%c0_9, %c0_10, %c0_11] : memref<1x1x256xf32, #tpu.memory_space<vmem>>, vector<1x1x256xf32>
    %27 = vector.shape_cast %26 : vector<1x1x256xf32> to vector<1x256xf32>
    %28 = vector.broadcast %27 : vector<1x256xf32> to vector<16x256xf32>
    %29 = arith.addf %25, %28 : vector<16x256xf32>
    %30 = arith.truncf %29 : vector<16x256xf32> to vector<16x256xbf16>
    %c0_12 = arith.constant 0 : index
    %c0_13 = arith.constant 0 : index
    %c0_14 = arith.constant 0 : index
    %31 = vector.load %arg4[%c0_12, %c0_13, %c0_14] : memref<1x256x768xbf16, #tpu.memory_space<vmem>>, vector<1x256x768xbf16>
    %32 = vector.shape_cast %31 : vector<1x256x768xbf16> to vector<256x768xbf16>
    %cst_15 = arith.constant dense<0.000000e+00> : vector<16x768xf32>
    %33 = tpu.matmul %30, %32, %cst_15 {dimension_numbers = #tpu.dot_dimension_numbers<[1], [0], [0], [1], [0, 0, 1, 1], [], []>} : vector<16x256xbf16>, vector<256x768xbf16>, vector<16x768xf32> -> vector<16x768xf32>
    %c0_16 = arith.constant 0 : index
    %c0_17 = arith.constant 0 : index
    %34 = vector.load %arg10[%c0_16, %c0_17] : memref<16x128xf32, #tpu.memory_space<vmem>>, vector<16x128xf32>
    %c0_18 = arith.constant 0 : index
    %c0_19 = arith.constant 0 : index
    %35 = vector.load %arg11[%c0_18, %c0_19] : memref<16x128xf32, #tpu.memory_space<vmem>>, vector<16x128xf32>
    %36 = vector.extract_strided_slice %33 {offsets = [0, 0], sizes = [16, 128], strides = [1, 1]} : vector<16x768xf32> to vector<16x128xf32>
    %37 = vector.extract_strided_slice %36 {offsets = [0, 0], sizes = [16, 64], strides = [1, 1]} : vector<16x128xf32> to vector<16x64xf32>
    %38 = vector.extract_strided_slice %36 {offsets = [0, 64], sizes = [16, 64], strides = [1, 1]} : vector<16x128xf32> to vector<16x64xf32>
    %cst_20 = arith.constant 0.000000e+00 : f32
    %39 = vector.broadcast %cst_20 : f32 to vector<16x64xf32>
    %40 = arith.subf %39, %38 : vector<16x64xf32>
    %41 = tpu.concatenate %40, %37 in 1 : vector<16x64xf32>, vector<16x64xf32> -> vector<16x128xf32>
    %42 = arith.mulf %36, %35 : vector<16x128xf32>
    %43 = arith.mulf %41, %34 : vector<16x128xf32>
    %44 = arith.addf %42, %43 : vector<16x128xf32>
    %45 = arith.truncf %44 : vector<16x128xf32> to vector<16x128xbf16>
    %46 = vector.extract_strided_slice %33 {offsets = [0, 256], sizes = [16, 128], strides = [1, 1]} : vector<16x768xf32> to vector<16x128xf32>
    %47 = vector.extract_strided_slice %46 {offsets = [0, 0], sizes = [16, 64], strides = [1, 1]} : vector<16x128xf32> to vector<16x64xf32>
    %48 = vector.extract_strided_slice %46 {offsets = [0, 64], sizes = [16, 64], strides = [1, 1]} : vector<16x128xf32> to vector<16x64xf32>
    %cst_21 = arith.constant 0.000000e+00 : f32
    %49 = vector.broadcast %cst_21 : f32 to vector<16x64xf32>
    %50 = arith.subf %49, %48 : vector<16x64xf32>
    %51 = tpu.concatenate %50, %47 in 1 : vector<16x64xf32>, vector<16x64xf32> -> vector<16x128xf32>
    %52 = arith.mulf %46, %35 : vector<16x128xf32>
    %53 = arith.mulf %51, %34 : vector<16x128xf32>
    %54 = arith.addf %52, %53 : vector<16x128xf32>
    %55 = arith.truncf %54 : vector<16x128xf32> to vector<16x128xbf16>
    %56 = vector.extract_strided_slice %33 {offsets = [0, 512], sizes = [16, 128], strides = [1, 1]} : vector<16x768xf32> to vector<16x128xf32>
    %57 = arith.truncf %56 : vector<16x128xf32> to vector<16x128xbf16>
    %58 = vector.extract_strided_slice %33 {offsets = [0, 128], sizes = [16, 128], strides = [1, 1]} : vector<16x768xf32> to vector<16x128xf32>
    %59 = vector.extract_strided_slice %58 {offsets = [0, 0], sizes = [16, 64], strides = [1, 1]} : vector<16x128xf32> to vector<16x64xf32>
    %60 = vector.extract_strided_slice %58 {offsets = [0, 64], sizes = [16, 64], strides = [1, 1]} : vector<16x128xf32> to vector<16x64xf32>
    %cst_22 = arith.constant 0.000000e+00 : f32
    %61 = vector.broadcast %cst_22 : f32 to vector<16x64xf32>
    %62 = arith.subf %61, %60 : vector<16x64xf32>
    %63 = tpu.concatenate %62, %59 in 1 : vector<16x64xf32>, vector<16x64xf32> -> vector<16x128xf32>
    %64 = arith.mulf %58, %35 : vector<16x128xf32>
    %65 = arith.mulf %63, %34 : vector<16x128xf32>
    %66 = arith.addf %64, %65 : vector<16x128xf32>
    %67 = arith.truncf %66 : vector<16x128xf32> to vector<16x128xbf16>
    %68 = vector.extract_strided_slice %33 {offsets = [0, 384], sizes = [16, 128], strides = [1, 1]} : vector<16x768xf32> to vector<16x128xf32>
    %69 = vector.extract_strided_slice %68 {offsets = [0, 0], sizes = [16, 64], strides = [1, 1]} : vector<16x128xf32> to vector<16x64xf32>
    %70 = vector.extract_strided_slice %68 {offsets = [0, 64], sizes = [16, 64], strides = [1, 1]} : vector<16x128xf32> to vector<16x64xf32>
    %cst_23 = arith.constant 0.000000e+00 : f32
    %71 = vector.broadcast %cst_23 : f32 to vector<16x64xf32>
    %72 = arith.subf %71, %70 : vector<16x64xf32>
    %73 = tpu.concatenate %72, %69 in 1 : vector<16x64xf32>, vector<16x64xf32> -> vector<16x128xf32>
    %74 = arith.mulf %68, %35 : vector<16x128xf32>
    %75 = arith.mulf %73, %34 : vector<16x128xf32>
    %76 = arith.addf %74, %75 : vector<16x128xf32>
    %77 = arith.truncf %76 : vector<16x128xf32> to vector<16x128xbf16>
    %78 = vector.extract_strided_slice %33 {offsets = [0, 640], sizes = [16, 128], strides = [1, 1]} : vector<16x768xf32> to vector<16x128xf32>
    %79 = arith.truncf %78 : vector<16x128xf32> to vector<16x128xbf16>
    %80 = vector.shape_cast %45 : vector<16x128xbf16> to vector<1x16x128xbf16>
    %81 = vector.shape_cast %67 : vector<16x128xbf16> to vector<1x16x128xbf16>
    %82 = tpu.concatenate %80, %81 in 0 : vector<1x16x128xbf16>, vector<1x16x128xbf16> -> vector<2x16x128xbf16>
    %83 = vector.shape_cast %55 : vector<16x128xbf16> to vector<1x16x128xbf16>
    %84 = vector.shape_cast %77 : vector<16x128xbf16> to vector<1x16x128xbf16>
    %85 = tpu.concatenate %83, %84 in 0 : vector<1x16x128xbf16>, vector<1x16x128xbf16> -> vector<2x16x128xbf16>
    %86 = vector.shape_cast %57 : vector<16x128xbf16> to vector<1x16x128xbf16>
    %87 = vector.shape_cast %79 : vector<16x128xbf16> to vector<1x16x128xbf16>
    %88 = tpu.concatenate %86, %87 in 0 : vector<1x16x128xbf16>, vector<1x16x128xbf16> -> vector<2x16x128xbf16>
    "tpu.trace_start"() <{level = 10 : i32, message = "hqd,hkd->hqk"}> : () -> ()
    %cst_24 = arith.constant dense<0.000000e+00> : vector<2x16x16xf32>
    %89 = tpu.matmul %82, %85, %cst_24 {dimension_numbers = #tpu.dot_dimension_numbers<[2], [2], [1], [1], [0, 0, 0, 1, 1, 1], [0], [0]>} : vector<2x16x128xbf16>, vector<2x16x128xbf16>, vector<2x16x16xf32> -> vector<2x16x16xf32>
    "tpu.trace_stop"() : () -> ()
    %c0_25 = arith.constant 0 : index
    %c0_26 = arith.constant 0 : index
    %90 = vector.load %arg12[%c0_25, %c0_26] : memref<16x16xf32, #tpu.memory_space<vmem>>, vector<16x16xf32>
    %91 = vector.shape_cast %90 : vector<16x16xf32> to vector<1x16x16xf32>
    %92 = vector.broadcast %91 : vector<1x16x16xf32> to vector<2x16x16xf32>
    %93 = arith.addf %89, %92 : vector<2x16x16xf32>
    %cst_27 = arith.constant dense<0xFF800000> : vector<2x16xf32>
    %94 = vector.multi_reduction <maximumf>, %93, %cst_27 [2] : vector<2x16x16xf32> to vector<2x16xf32>
    %95 = vector.shape_cast %94 : vector<2x16xf32> to vector<2x16x1xf32>
    %96 = vector.broadcast %95 : vector<2x16x1xf32> to vector<2x16x16xf32>
    %97 = arith.subf %93, %96 : vector<2x16x16xf32>
    %98 = math.exp %97 : vector<2x16x16xf32>
    %cst_28 = arith.constant dense<0.000000e+00> : vector<2x16xf32>
    %99 = vector.multi_reduction <add>, %98, %cst_28 [2] : vector<2x16x16xf32> to vector<2x16xf32>
    %100 = vector.shape_cast %99 : vector<2x16xf32> to vector<2x16x1xf32>
    %101 = vector.broadcast %100 : vector<2x16x1xf32> to vector<2x16x16xf32>
    %102 = arith.divf %98, %101 : vector<2x16x16xf32>
    %103 = arith.truncf %102 : vector<2x16x16xf32> to vector<2x16x16xbf16>
    "tpu.trace_start"() <{level = 10 : i32, message = "hqk,hkd->hqd"}> : () -> ()
    %cst_29 = arith.constant dense<0.000000e+00> : vector<2x16x128xf32>
    %104 = tpu.matmul %103, %88, %cst_29 {dimension_numbers = #tpu.dot_dimension_numbers<[2], [1], [1], [2], [0, 0, 0, 1, 1, 2], [0], [0]>} : vector<2x16x16xbf16>, vector<2x16x128xbf16>, vector<2x16x128xf32> -> vector<2x16x128xf32>
    "tpu.trace_stop"() : () -> ()
    %105 = vector.extract_strided_slice %104 {offsets = [0, 0, 0], sizes = [1, 16, 128], strides = [1, 1, 1]} : vector<2x16x128xf32> to vector<1x16x128xf32>
    %106 = vector.shape_cast %105 : vector<1x16x128xf32> to vector<16x128xf32>
    %107 = vector.extract_strided_slice %104 {offsets = [1, 0, 0], sizes = [1, 16, 128], strides = [1, 1, 1]} : vector<2x16x128xf32> to vector<1x16x128xf32>
    %108 = vector.shape_cast %107 : vector<1x16x128xf32> to vector<16x128xf32>
    %109 = tpu.concatenate %106, %108 in 1 : vector<16x128xf32>, vector<16x128xf32> -> vector<16x256xf32>
    %110 = arith.truncf %109 : vector<16x256xf32> to vector<16x256xbf16>
    %c0_30 = arith.constant 0 : index
    %c0_31 = arith.constant 0 : index
    %c0_32 = arith.constant 0 : index
    %111 = vector.load %arg5[%c0_30, %c0_31, %c0_32] : memref<1x256x256xbf16, #tpu.memory_space<vmem>>, vector<1x256x256xbf16>
    %112 = vector.shape_cast %111 : vector<1x256x256xbf16> to vector<256x256xbf16>
    %cst_33 = arith.constant dense<0.000000e+00> : vector<16x256xf32>
    %113 = tpu.matmul %110, %112, %cst_33 {dimension_numbers = #tpu.dot_dimension_numbers<[1], [0], [0], [1], [0, 0, 1, 1], [], []>} : vector<16x256xbf16>, vector<256x256xbf16>, vector<16x256xf32> -> vector<16x256xf32>
    %c0_34 = arith.constant 0 : index
    %c0_35 = arith.constant 0 : index
    %c0_36 = arith.constant 0 : index
    %114 = vector.load %arg6[%c0_34, %c0_35, %c0_36] : memref<1x256x1024xbf16, #tpu.memory_space<vmem>>, vector<1x256x1024xbf16>
    %115 = vector.shape_cast %114 : vector<1x256x1024xbf16> to vector<256x1024xbf16>
    %cst_37 = arith.constant dense<0.000000e+00> : vector<16x1024xf32>
    %116 = tpu.matmul %30, %115, %cst_37 {dimension_numbers = #tpu.dot_dimension_numbers<[1], [0], [0], [1], [0, 0, 1, 1], [], []>} : vector<16x256xbf16>, vector<256x1024xbf16>, vector<16x1024xf32> -> vector<16x1024xf32>
    %c0_38 = arith.constant 0 : index
    %c0_39 = arith.constant 0 : index
    %c0_40 = arith.constant 0 : index
    %117 = vector.load %arg7[%c0_38, %c0_39, %c0_40] : memref<1x1x1024xf32, #tpu.memory_space<vmem>>, vector<1x1x1024xf32>
    %118 = vector.shape_cast %117 : vector<1x1x1024xf32> to vector<1x1024xf32>
    %119 = vector.broadcast %118 : vector<1x1024xf32> to vector<16x1024xf32>
    %120 = arith.addf %116, %119 : vector<16x1024xf32>
    %cst_41 = arith.constant 5.000000e-01 : f32
    %121 = vector.broadcast %cst_41 : f32 to vector<16x1024xf32>
    %122 = arith.mulf %121, %120 : vector<16x1024xf32>
    %cst_42 = arith.constant 0.636619746 : f32
    %123 = math.sqrt %cst_42 : f32
    %cst_43 = arith.constant 4.471500e-02 : f32
    %124 = vector.broadcast %cst_43 : f32 to vector<16x1024xf32>
    %125 = arith.mulf %124, %120 : vector<16x1024xf32>
    %126 = arith.mulf %125, %120 : vector<16x1024xf32>
    %127 = arith.mulf %126, %120 : vector<16x1024xf32>
    %128 = arith.addf %120, %127 : vector<16x1024xf32>
    %129 = vector.broadcast %123 : f32 to vector<16x1024xf32>
    %130 = arith.mulf %129, %128 : vector<16x1024xf32>
    %131 = math.tanh %130 : vector<16x1024xf32>
    %cst_44 = arith.constant 1.000000e+00 : f32
    %132 = vector.broadcast %cst_44 : f32 to vector<16x1024xf32>
    %133 = arith.addf %132, %131 : vector<16x1024xf32>
    %134 = arith.mulf %122, %133 : vector<16x1024xf32>
    %135 = arith.truncf %134 : vector<16x1024xf32> to vector<16x1024xbf16>
    %c0_45 = arith.constant 0 : index
    %c0_46 = arith.constant 0 : index
    %c0_47 = arith.constant 0 : index
    %136 = vector.load %arg8[%c0_45, %c0_46, %c0_47] : memref<1x1024x256xbf16, #tpu.memory_space<vmem>>, vector<1x1024x256xbf16>
    %137 = vector.shape_cast %136 : vector<1x1024x256xbf16> to vector<1024x256xbf16>
    %cst_48 = arith.constant dense<0.000000e+00> : vector<16x256xf32>
    %138 = tpu.matmul %135, %137, %cst_48 {dimension_numbers = #tpu.dot_dimension_numbers<[1], [0], [0], [1], [0, 0, 1, 1], [], []>} : vector<16x1024xbf16>, vector<1024x256xbf16>, vector<16x256xf32> -> vector<16x256xf32>
    %c0_49 = arith.constant 0 : index
    %c0_50 = arith.constant 0 : index
    %c0_51 = arith.constant 0 : index
    %139 = vector.load %arg9[%c0_49, %c0_50, %c0_51] : memref<1x1x256xf32, #tpu.memory_space<vmem>>, vector<1x1x256xf32>
    %140 = vector.shape_cast %139 : vector<1x1x256xf32> to vector<1x256xf32>
    %141 = vector.broadcast %140 : vector<1x256xf32> to vector<16x256xf32>
    %142 = arith.addf %138, %141 : vector<16x256xf32>
    %143 = arith.addf %3, %113 : vector<16x256xf32>
    %144 = arith.addf %143, %142 : vector<16x256xf32>
    %c0_52 = arith.constant 0 : index
    %c0_53 = arith.constant 0 : index
    %145 = vector.load %arg14[%c0_52, %c0_53] : memref<16x256xf32, #tpu.memory_space<vmem>>, vector<16x256xf32>
    tpu.vector_store %arg14[%c0_52, %c0_53], %144 {strides = array<i32>} : memref<16x256xf32, #tpu.memory_space<vmem>>, vector<16x256xf32>,
    %c2_i32 = arith.constant 2 : i32
    %146 = arith.cmpi eq, %arg0, %c2_i32 : i32
    %147 = arith.extui %146 : i1 to i32
    %c0_i32_54 = arith.constant 0 : i32
    %148 = arith.cmpi ne, %147, %c0_i32_54 : i32
    scf.if %148 {
      %149 = vector.shape_cast %144 : vector<16x256xf32> to vector<2x8x256xf32>
      %cst_55 = arith.constant dense<0.000000e+00> : vector<2x256xf32>
      %150 = vector.multi_reduction <add>, %149, %cst_55 [1] : vector<2x8x256xf32> to vector<2x256xf32>
      %cst_56 = arith.constant 8.000000e+00 : f32
      %151 = vector.broadcast %cst_56 : f32 to vector<2x256xf32>
      %152 = arith.divf %150, %151 : vector<2x256xf32>
      %c0_57 = arith.constant 0 : index
      %c0_58 = arith.constant 0 : index
      %153 = vector.load %arg13[%c0_57, %c0_58] : memref<2x256xf32, #tpu.memory_space<vmem>>, vector<2x256xf32>
      tpu.vector_store %arg13[%c0_57, %c0_58], %152 {strides = array<i32>} : memref<2x256xf32, #tpu.memory_space<vmem>>, vector<2x256xf32>,
    } else {
    }
    return
  }
  func.func @transform_0(%arg0: i32) -> (i32, i32) {
    %c0_i32 = arith.constant 0 : i32
    %c0_i32_0 = arith.constant 0 : i32
    %c0_i32_1 = arith.constant 0 : i32
    return %c0_i32, %c0_i32_0 : i32, i32
  }
  func.func @transform_1(%arg0: i32) -> (i32, i32, i32) {
    %c0_i32 = arith.constant 0 : i32
    %c0_i32_0 = arith.constant 0 : i32
    %c0_i32_1 = arith.constant 0 : i32
    return %arg0, %c0_i32, %c0_i32_0 : i32, i32, i32
  }
  func.func @transform_2(%arg0: i32) -> (i32, i32, i32) {
    %c0_i32 = arith.constant 0 : i32
    %c0_i32_0 = arith.constant 0 : i32
    %c0_i32_1 = arith.constant 0 : i32
    return %arg0, %c0_i32, %c0_i32_0 : i32, i32, i32
  }
  func.func @transform_3(%arg0: i32) -> (i32, i32, i32) {
    %c0_i32 = arith.constant 0 : i32
    %c0_i32_0 = arith.constant 0 : i32
    %c0_i32_1 = arith.constant 0 : i32
    return %arg0, %c0_i32, %c0_i32_0 : i32, i32, i32
  }
  func.func @transform_4(%arg0: i32) -> (i32, i32, i32) {
    %c0_i32 = arith.constant 0 : i32
    %c0_i32_0 = arith.constant 0 : i32
    %c0_i32_1 = arith.constant 0 : i32
    return %arg0, %c0_i32, %c0_i32_0 : i32, i32, i32
  }
  func.func @transform_5(%arg0: i32) -> (i32, i32, i32) {
    %c0_i32 = arith.constant 0 : i32
    %c0_i32_0 = arith.constant 0 : i32
    %c0_i32_1 = arith.constant 0 : i32
    return %arg0, %c0_i32, %c0_i32_0 : i32, i32, i32
  }
  func.func @transform_6(%arg0: i32) -> (i32, i32, i32) {
    %c0_i32 = arith.constant 0 : i32
    %c0_i32_0 = arith.constant 0 : i32
    %c0_i32_1 = arith.constant 0 : i32
    return %arg0, %c0_i32, %c0_i32_0 : i32, i32, i32
  }
  func.func @transform_7(%arg0: i32) -> (i32, i32, i32) {
    %c0_i32 = arith.constant 0 : i32
    %c0_i32_0 = arith.constant 0 : i32
    %c0_i32_1 = arith.constant 0 : i32
    return %arg0, %c0_i32, %c0_i32_0 : i32, i32, i32
  }
  func.func @transform_8(%arg0: i32) -> (i32, i32, i32) {
    %c0_i32 = arith.constant 0 : i32
    %c0_i32_0 = arith.constant 0 : i32
    %c0_i32_1 = arith.constant 0 : i32
    return %arg0, %c0_i32, %c0_i32_0 : i32, i32, i32
  }
  func.func @transform_9(%arg0: i32) -> (i32, i32) {
    %c0_i32 = arith.constant 0 : i32
    %c0_i32_0 = arith.constant 0 : i32
    %c0_i32_1 = arith.constant 0 : i32
    return %c0_i32, %c0_i32_0 : i32, i32
  }
  func.func @transform_10(%arg0: i32) -> (i32, i32) {
    %c0_i32 = arith.constant 0 : i32
    %c0_i32_0 = arith.constant 0 : i32
    %c0_i32_1 = arith.constant 0 : i32
    return %c0_i32, %c0_i32_0 : i32, i32
  }
  func.func @transform_11(%arg0: i32) -> (i32, i32) {
    %c0_i32 = arith.constant 0 : i32
    %c0_i32_0 = arith.constant 0 : i32
    %c0_i32_1 = arith.constant 0 : i32
    return %c0_i32, %c0_i32_0 : i32, i32
  }
  func.func @transform_12(%arg0: i32) -> (i32, i32) {
    %c0_i32 = arith.constant 0 : i32
    %c0_i32_0 = arith.constant 0 : i32
    %c0_i32_1 = arith.constant 0 : i32
    return %c0_i32, %c0_i32_0 : i32, i32
  }
}

</mosaic_0001>

<bundles_post_ra>
// kernel: _lambda_.1
= control target key start
LH: loop header
LB: loop body
LE: loop exit
PB: predicated region body
PF: predicated region fallthrough
CT: control target
= control target key end

     0   :  { %s8598_s0 = inlined_call_operand.vmem [shape: f32[16,256], index: 0, kind: input, shape index: {}]   ;;  %s8599_s1 = inlined_call_operand.hbm [shape: f32[3,1,256], index: 1, kind: input, shape index: {}]   ;;  %s8600_s2 = inlined_call_operand.hbm [shape: f32[3,1,256], index: 2, kind: input, shape index: {}]   ;;  %s8601_s3 = inlined_call_operand.hbm [shape: bf16[3,256,768], index: 3, kind: input, shape index: {}]   ;;  %s8602_s4 = inlined_call_operand.hbm [shape: bf16[3,256,256], index: 4, kind: input, shape index: {}]   ;;  %s8603_s5 = inlined_call_operand.hbm [shape: bf16[3,256,1024], index: 5, kind: input, shape index: {}]   ;;  %s8604_s6 = inlined_call_operand.hbm [shape: f32[3,1,1024], index: 6, kind: input, shape index: {}]   ;;  %s8605_s7 = inlined_call_operand.hbm [shape: bf16[3,1024,256], index: 7, kind: input, shape index: {}]   ;;  %s8606_s8 = inlined_call_operand.hbm [shape: f32[3,1,256], index: 8, kind: input, shape index: {}]   ;;  %s8607_s9 = inlined_call_operand.vmem [shape: f32[16,128], index: 9, kind: input, shape index: {}]   ;;  %s8608_s10 = inlined_call_operand.vmem [shape: f32[16,128], index: 10, kind: input, shape index: {}]   ;;  %s8609_s11 = inlined_call_operand.vmem [shape: f32[16,16], index: 11, kind: input, shape index: {}]   ;;  %s8610_s12 = inlined_call_operand.hbm [shape: f32[2,256], index: 12, kind: output, shape index: {}]  }
   0x1   :  { %8627 = sst [smem:[#allocation29_spill]] %s8598_s0 }
   0x2   :  { %8628 = sst [smem:[#allocation30_spill]] %s8600_s2 }
   0x3   :  { %8629 = sst [smem:[#allocation31_spill]] %s8602_s4 }
   0x4   :  { %8630 = sst [smem:[#allocation32_spill]] %s8607_s9 }
   0x5   :  { %8631 = sst [smem:[#allocation33_spill]] %s8608_s10 }
   0x6   :  { %8632 = sst [smem:[#allocation34_spill]] %s8609_s11 }
   0x7   :  { %8633 = sst [smem:[#allocation35_spill]] %s8610_s12 }
   0x8   :  { %17 = vsyncpa [#allocation4], 0 }
   0x9   :  { %19 = vsyncpa [#allocation4 + $0x1], 0 }
   0xa   :  { %20 = vsyncpa [#allocation7], 0 }
   0xb   :  { %22 = vsyncpa [#allocation7 + $0x1], 0 }
   0xc   :  { %23 = vsyncpa [#allocation10], 0 }
   0xd   :  { %25 = vsyncpa [#allocation10 + $0x1], 0 }
   0xe   :  { %26 = vsyncpa [#allocation13], 0 }
   0xf   :  { %28 = vsyncpa [#allocation13 + $0x1], 0 }
  0x10   :  { %29 = vsyncpa [#allocation16], 0 }
  0x11   :  { %31 = vsyncpa [#allocation16 + $0x1], 0 }
  0x12   :  { %32 = vsyncpa [#allocation5], 0  ;;  %s7075_s21 = smov 0   ;;  %s7077_s22 = smov 0  }
  0x13   :  { %s7079_s23 = smov 0   ;;  %s7081_s24 = smov 0  }
  0x14 LB: > { %8634 = sst [smem:[#allocation24_spill]] %s6994_s23  ;;  %s7094_s25 = sadd.s32 4294967295, %s6998_s24   ;;  %s6998_s24 = sphi %s7081_s24, %s8669_s24   ;;  %s6994_s23 = sphi %s7079_s23, %s8671_s23   ;;  %s6990_s22 = sphi %s7077_s22, %s8673_s22   ;;  %s6986_s21 = sphi %s7075_s21, %s8672_s21  }
  0x15   : > { %8635 = sst [smem:[#allocation25_spill]] %s7094_s25  ;;  %s7097_s26 = sadd.s32 1, %s6998_s24  }
  0x16   : > { %8636 = sst [smem:[#allocation26_spill]] %s7097_s26  ;;  %s63_s27 = ssub.s32 %s6998_s24, %s7097_s26 }
  0x17   : > { %s66_s28 = sadd.s32 1, %s6994_s23  ;;  %p64_p0 = scmp.eq.s32.totalorder %s63_s27, 0 }
  0x18   : > { %p73_p1 = scmp.ne.s32.totalorder %s6994_s23, %s6990_s22  ;;  %p74_p2 = scmp.eq.s32.totalorder %s6998_s24, 0 }
  0x19   : > { %p79_p3 = scmp.ne.s32.totalorder %s6990_s22, %s6986_s21  ;;  %p80_p5 = scmp.eq.s32.totalorder %s7094_s25, 0 }
  0x1a   : > { %s7107_s29 = scalar_select %p64_p0, %s6994_s23, %s66_s28  }
  0x1b   : > { %p75_p4 = por %p74_p2, %p73_p1  ;;  %p6571_p6 = scmp.lt.s32.totalorder %s6998_s24, 3 }
  0x1c   : > { %8637 = sst [smem:[#allocation27_spill]] %s7107_s29  ;;  %p7111_p7 = por %p80_p5, %p79_p3 }
  0x1d   : > { %s7116_s13 = sand.u32 1, %s6994_s23   ;;  %s7122_s15 = sshll.u32 %s6998_s24, 1 }
  0x1e   : > { %s8638_s30 = scalar_select %p7111_p7, 1, 0 }
  0x1f   : > { %s7119_s14 = sshll.u32 %s7116_s13, 1  ;;  %p7124_p8 = pnand %p6571_p6, %p75_p4 }
  0x20   : > { %8639 = sst [smem:[#allocation28_spill]] %s8638_s30  ;;  %s7129_s17 = sand.u32 1, %s6998_s24  }
  0x21   : > { %s8641_s2 = sld [smem:[#allocation30_spill]]  ;;  %s404_s27 = scalar_lea.vmem [#allocation6], %s7119_s14 }
  0x22   : > { %s412_s28 = sshll.u32 %s404_s27, 4  ;;  %s8617_s29 = scalar_lea.sflag [#allocation7], %s7129_s17  ;;  %s413_s28 = int_to_ptr.vmem [resolvable:$true] %s412_s28 }
  0x23   : > { %p7139_p10 = pneg %p7124_p8 }
  0x27   : > { %s408_s20 = scalar_lea.hbm %s8641_s2, %s7122_s15 }
  0x28   : > { %s410_s21 = sshll.u32 %s408_s20, 4  ;;  %s6683_s20 = scalar_lea.hbm %s8641_s2, 6  ;;  %s411_s21 = int_to_ptr.hbm [resolvable:$true] %s410_s21 }
  0x29   : > { %s6676_s23 = sshra.s32 %s411_s21, 4  ;;  %s6677_s23 = int_to_ptr.hbm [resolvable:$true] %s6676_s23 }
  0x2a   : > { %s6678_s26 = scalar_lea.hbm %s6677_s23, 2  ;;  %p6684_p13 = scmp.lt.s32.totalorder %s6677_s23, %s8641_s2 }
  0x2b   : > { %p6679_p9 = scmp.ne.s32.totalorder %s6677_s23, %s6678_s26  ;;  %p6685_p0 = scmp.lt.s32.totalorder %s6683_s20, %s6678_s26 }
  0x2d   : > { %p6681_p11 = pnand %p7139_p10, %p6679_p9  ;;  %p6686_p1 = por %p6685_p0, %p6684_p13 }
  0x2f   : > { %p6682_p12 = pneg %p6681_p11 }
  0x31   : > { %p6687_p2 = pnand %p6686_p1, %p6682_p12 }
  0x33   : > { %6690 = shalt.err (!%p6687_p2)
}
  0x34   : > { %6552 = dma.hbm_to_vmem [thread:$0]  (!%p7124_p8), %s411_s21, 32, %s413_s28, %s8617_s29  }
  0x35   : > { %p4584_p3 = scmp.ge.s32.totalorder %s6998_s24, 1  ;;  %p543_p4 = scmp.lt.s32.totalorder %s6998_s24, 4 }
  0x36   : > { %s4571_s18 = sshll.u32 %s7116_s13, 8  ;;  %s6136_s11 = sshll.u32 %s6998_s24, 8 }
  0x37   : > { %p7159_p5 = pnand %p4584_p3, %p543_p4  ;;  %s8644_s4 = sld [smem:[#allocation31_spill]] }
  0x38   : > { %s445_s2 = scalar_lea.vmem [#allocation9], %s4571_s18  ;;  %s8626_s9 = scalar_lea.sflag [#allocation10], %s7129_s17 }
  0x39   : > { %s453_s10 = sshll.u32 %s445_s2, 4  ;;  %s454_s10 = int_to_ptr.vmem [resolvable:$true] %s453_s10 }
  0x3d   : > { %s450_s20 = scalar_lea.hbm %s8644_s4, %s6136_s11  ;;  %s6713_s25 = scalar_lea.hbm %s8644_s4, 768 }
  0x3e   : > { %s451_s27 = sshll.u32 %s450_s20, 4  ;;  %s452_s27 = int_to_ptr.hbm [resolvable:$true] %s451_s27 }
  0x3f   : > { %s6706_s21 = sshra.s32 %s452_s27, 4  ;;  %s6707_s21 = int_to_ptr.hbm [resolvable:$true] %s6706_s21 }
  0x40   : > { %s6708_s28 = scalar_lea.hbm %s6707_s21, 256  ;;  %p6714_p12 = scmp.lt.s32.totalorder %s6707_s21, %s8644_s4 }
  0x41   : > { %p6709_p6 = scmp.ne.s32.totalorder %s6707_s21, %s6708_s28  ;;  %p6715_p13 = scmp.lt.s32.totalorder %s6713_s25, %s6708_s28 }
  0x43   : > { %p6711_p9 = pnand %p6709_p6, %p7139_p10  ;;  %p6716_p0 = por %p6715_p13, %p6714_p12 }
  0x45   : > { %p6712_p11 = pneg %p6711_p9 }
  0x47   : > { %p6717_p1 = pnand %p6716_p0, %p6712_p11 }
  0x49   : > { %6720 = shalt.err (!%p6717_p1)
}
  0x4a   : > { %s8623_s2 = smov 128   ;;  %s8624_s18 = smov 8  }
  0x4b   : > { %6558 = dma.hbm_to_vmem [thread:$0]  (!%p7124_p8), %s452_s27, 4096, %s454_s10, %s8626_s9, %s8623_s2, %s8623_s2, %s8624_s18  }
  0x4c   : > { %s4577_s0 = sshll.u32 %s7116_s13, 3  ;;  %s4578_s29 = sshll.u32 %s6998_s24, 3 }
  0x4d   : > { %s493_s11 = scalar_lea.hbm %s8604_s6, %s4578_s29  ;;  %s489_s19 = scalar_lea.vmem [#allocation12], %s4577_s0 }
  0x4e   : > { %s497_s20 = sshll.u32 %s489_s19, 4  ;;  %s495_s21 = sshll.u32 %s493_s11, 4  ;;  %s498_s20 = int_to_ptr.vmem [resolvable:$true] %s497_s20  ;;  %s496_s21 = int_to_ptr.hbm [resolvable:$true] %s495_s21 }
  0x4f   : > { %s8625_s28 = scalar_lea.sflag [#allocation13], %s7129_s17  ;;  %s6736_s26 = sshra.s32 %s496_s21, 4  ;;  %s6737_s26 = int_to_ptr.hbm [resolvable:$true] %s6736_s26 }
  0x50   : > { %s6738_s4 = scalar_lea.hbm %s6737_s26, 8  ;;  %s6743_s2 = scalar_lea.hbm %s8604_s6, 24 }
  0x51   : > { %p6739_p2 = scmp.ne.s32.totalorder %s6737_s26, %s6738_s4  ;;  %p6744_p6 = scmp.lt.s32.totalorder %s6737_s26, %s8604_s6 }
  0x52   : > { %p6745_p9 = scmp.lt.s32.totalorder %s6743_s2, %s6738_s4 }
  0x53   : > { %p6741_p3 = pnand %p6739_p2, %p7139_p10 }
  0x54   : > { %p6746_p11 = por %p6745_p9, %p6744_p6 }
  0x55   : > { %p6742_p4 = pneg %p6741_p3 }
  0x57   : > { %p6747_p12 = pnand %p6746_p11, %p6742_p4 }
  0x59   : > { %6750 = shalt.err (!%p6747_p12)
}
  0x5a   : > { %6564 = dma.hbm_to_vmem [thread:$0]  (!%p7124_p8), %s496_s21, 128, %s498_s20, %s8625_s28  }
  0x5b   : > { %s389_s30 = scalar_lea.hbm %s8599_s1, %s7122_s15  ;;  %s385_s18 = scalar_lea.vmem [#allocation3], %s7119_s14 }
  0x5c   : > { %s391_s11 = sshll.u32 %s389_s30, 4  ;;  %s393_s19 = sshll.u32 %s385_s18, 4  ;;  %s392_s11 = int_to_ptr.hbm [resolvable:$true] %s391_s11  ;;  %s394_s19 = int_to_ptr.vmem [resolvable:$true] %s393_s19 }
  0x5d   : > { %s382_s4 = scalar_lea.sflag [#allocation4], %s7116_s13  ;;  %s6766_s2 = sshra.s32 %s392_s11, 4  ;;  %s6767_s2 = int_to_ptr.hbm [resolvable:$true] %s6766_s2 }
  0x5e   : > { %s6768_s26 = scalar_lea.hbm %s6767_s2, 2  ;;  %s6773_s20 = scalar_lea.hbm %s8599_s1, 6 }
  0x5f   : > { %p6769_p13 = scmp.ne.s32.totalorder %s6767_s2, %s6768_s26  ;;  %p6774_p2 = scmp.lt.s32.totalorder %s6767_s2, %s8599_s1 }
  0x60   : > { %p6775_p3 = scmp.lt.s32.totalorder %s6773_s20, %s6768_s26 }
  0x61   : > { %p6771_p0 = pnand %p6769_p13, %p7139_p10 }
  0x62   : > { %p6776_p4 = por %p6775_p3, %p6774_p2 }
  0x63   : > { %p6772_p1 = pneg %p6771_p0 }
  0x65   : > { %p6777_p6 = pnand %p6776_p4, %p6772_p1 }
  0x67   : > { %6780 = shalt.err (!%p6777_p6)
}
  0x68   : > { %6549 = dma.hbm_to_vmem [thread:$0]  (!%p7124_p8), %s392_s11, 32, %s394_s19, %s382_s4  }
  0x69   : > { %s6523_s0 = smul.u32 768, %s7116_s13  ;;  %s4574_s30 = sshll.u32 %s7116_s13, 10 }
  0x6a   : > { %s6524_s29 = smul.u32 768, %s6998_s24  ;;  %s6803_s4 = scalar_lea.hbm %s8601_s3, 2304 }
  0x6b   : > { %s423_s21 = scalar_lea.vmem [#allocation8], %s6523_s0 }
  0x6c   : > { %s428_s27 = scalar_lea.hbm %s8601_s3, %s6524_s29  ;;  %s431_s2 = sshll.u32 %s423_s21, 4  ;;  %s432_s2 = int_to_ptr.vmem [resolvable:$true] %s431_s2 }
  0x6d   : > { %s429_s26 = sshll.u32 %s428_s27, 4  ;;  %s430_s26 = int_to_ptr.hbm [resolvable:$true] %s429_s26 }
  0x6e   : > { %s6796_s20 = sshra.s32 %s430_s26, 4  ;;  %s6797_s20 = int_to_ptr.hbm [resolvable:$true] %s6796_s20 }
  0x6f   : > { %s6798_s25 = scalar_lea.hbm %s6797_s20, 768  ;;  %p6804_p13 = scmp.lt.s32.totalorder %s6797_s20, %s8601_s3 }
  0x70   : > { %p6799_p9 = scmp.ne.s32.totalorder %s6797_s20, %s6798_s25  ;;  %p6805_p0 = scmp.lt.s32.totalorder %s6803_s4, %s6798_s25 }
  0x72   : > { %p6801_p11 = pnand %p6799_p9, %p7139_p10  ;;  %p6806_p1 = por %p6805_p0, %p6804_p13 }
  0x74   : > { %p6802_p12 = pneg %p6801_p11 }
  0x76   : > { %p6807_p2 = pnand %p6806_p1, %p6802_p12 }
  0x78   : > { %6810 = shalt.err (!%p6807_p2)
}
  0x79   : > { %s7002_s0 = smov 384   ;;  %s7003_s29 = smov 24  }
  0x7a   : > { %s8645_s18 = scalar_lea.sflag [#allocation7], %s7129_s17  ;;  %s6137_s10 = sshll.u32 %s6998_s24, 10 }
  0x7b   : > { %6555 = dma.hbm_to_vmem [thread:$0]  (!%p7124_p8), %s430_s26, 12288, %s432_s2, %s8645_s18, %s7002_s0, %s7002_s0, %s7003_s29  }
  0x7c   : > { %s467_s27 = scalar_lea.vmem [#allocation11], %s4574_s30  ;;  %s472_s20 = scalar_lea.hbm %s8603_s5, %s6137_s10 }
  0x7d   : > { %s475_s21 = sshll.u32 %s467_s27, 4  ;;  %s473_s25 = sshll.u32 %s472_s20, 4  ;;  %s476_s21 = int_to_ptr.vmem [resolvable:$true] %s475_s21  ;;  %s474_s25 = int_to_ptr.hbm [resolvable:$true] %s473_s25 }
  0x7e   : > { %s6826_s11 = sshra.s32 %s474_s25, 4  ;;  %s6833_s24 = scalar_lea.hbm %s8603_s5, 3072  ;;  %s6827_s11 = int_to_ptr.hbm [resolvable:$true] %s6826_s11 }
  0x7f   : > { %s6828_s19 = scalar_lea.hbm %s6827_s11, 1024  ;;  %p6834_p9 = scmp.lt.s32.totalorder %s6827_s11, %s8603_s5 }
  0x80   : > { %p6829_p3 = scmp.ne.s32.totalorder %s6827_s11, %s6828_s19  ;;  %p6835_p11 = scmp.lt.s32.totalorder %s6833_s24, %s6828_s19 }
  0x82   : > { %p6831_p4 = pnand %p6829_p3, %p7139_p10  ;;  %p6836_p12 = por %p6835_p11, %p6834_p9 }
  0x84   : > { %p6832_p6 = pneg %p6831_p4 }
  0x86   : > { %p6837_p13 = pnand %p6836_p12, %p6832_p6 }
  0x88   : > { %6840 = shalt.err (!%p6837_p13)
}
  0x89   : > { %s7004_s29 = smov 512   ;;  %s7005_s18 = smov 32  }
  0x8a   : > { %s8646_s27 = scalar_lea.sflag [#allocation10], %s7129_s17  ;;  %s513_s20 = scalar_lea.hbm %s8605_s7, %s6137_s10 }
  0x8b   : > { %6561 = dma.hbm_to_vmem [thread:$0]  (!%p7124_p8), %s474_s25, 16384, %s476_s21, %s8646_s27, %s7004_s29, %s7004_s29, %s7005_s18  }
  0x8c   : > { %s514_s4 = sshll.u32 %s513_s20, 4  ;;  %s508_s11 = scalar_lea.vmem [#allocation14], %s4574_s30  ;;  %s515_s4 = int_to_ptr.hbm [resolvable:$true] %s514_s4 }
  0x8d   : > { %s516_s19 = sshll.u32 %s508_s11, 4  ;;  %s6856_s2 = sshra.s32 %s515_s4, 4  ;;  %s517_s19 = int_to_ptr.vmem [resolvable:$true] %s516_s19  ;;  %s6857_s2 = int_to_ptr.hbm [resolvable:$true] %s6856_s2 }
  0x8e   : > { %s6858_s24 = scalar_lea.hbm %s6857_s2, 1024  ;;  %s6863_s21 = scalar_lea.hbm %s8605_s7, 3072 }
  0x8f   : > { %p6859_p0 = scmp.ne.s32.totalorder %s6857_s2, %s6858_s24  ;;  %p6864_p3 = scmp.lt.s32.totalorder %s6857_s2, %s8605_s7 }
  0x90   : > { %p6865_p4 = scmp.lt.s32.totalorder %s6863_s21, %s6858_s24 }
  0x91   : > { %p6861_p1 = pnand %p6859_p0, %p7139_p10 }
  0x92   : > { %p6866_p6 = por %p6865_p4, %p6864_p3 }
  0x93   : > { %p6862_p2 = pneg %p6861_p1 }
  0x95   : > { %p6867_p9 = pnand %p6866_p6, %p6862_p2 }
  0x97   : > { %6870 = shalt.err (!%p6867_p9)
}
  0x98   : > { %s8647_s30 = smov 8   ;;  %s8648_s10 = smov 128  }
  0x99   : > { %s8649_s18 = scalar_lea.sflag [#allocation13], %s7129_s17  ;;  %s534_s28 = scalar_lea.hbm %s8606_s8, %s7122_s15 }
  0x9a   : > { %6567 = dma.hbm_to_vmem [thread:$0]  (!%p7124_p8), %s515_s4, 16384, %s517_s19, %s8649_s18, %s8648_s10, %s8648_s10, %s8647_s30  }
  0x9b   : > { %s530_s20 = scalar_lea.vmem [#allocation15], %s7119_s14  ;;  %s536_s2 = sshll.u32 %s534_s28, 4  ;;  %s537_s2 = int_to_ptr.hbm [resolvable:$true] %s536_s2 }
  0x9c   : > { %s538_s11 = sshll.u32 %s530_s20, 4  ;;  %s527_s24 = scalar_lea.sflag [#allocation16], %s7116_s13  ;;  %s539_s11 = int_to_ptr.vmem [resolvable:$true] %s538_s11 }
  0x9d   : > { %s6886_s26 = sshra.s32 %s537_s2, 4  ;;  %s6893_s4 = scalar_lea.hbm %s8606_s8, 6  ;;  %s6887_s26 = int_to_ptr.hbm [resolvable:$true] %s6886_s26 }
  0x9e   : > { %s6888_s0 = scalar_lea.hbm %s6887_s26, 2  ;;  %p6894_p0 = scmp.lt.s32.totalorder %s6887_s26, %s8606_s8 }
  0x9f   : > { %p6889_p11 = scmp.ne.s32.totalorder %s6887_s26, %s6888_s0  ;;  %p6895_p1 = scmp.lt.s32.totalorder %s6893_s4, %s6888_s0 }
  0xa1   : > { %p6891_p12 = pnand %p6889_p11, %p7139_p10  ;;  %p6896_p2 = por %p6895_p1, %p6894_p0 }
  0xa3   : > { %p6892_p13 = pneg %p6891_p12 }
  0xa5   : > { %p6897_p3 = pnand %p6896_p2, %p6892_p13 }
  0xa7   : > { %6900 = shalt.err (!%p6897_p3)
}
  0xa8   : > { %6570 = dma.hbm_to_vmem [thread:$0]  (!%p7124_p8), %s537_s2, 32, %s539_s11, %s527_s24  }
  0xa9   : > { %547 = sbr.rel (%p7159_p5) target bundleno = 1815 (0x717), region = 68  ;;  %s7291_s13 = sand.u32 (!%p7159_p5), 1, %s6990_s22  }
  0xaa   : > { %s7294_s14 = sshll.u32 (!%p7159_p5), %s7291_s13, 1  ;;  %s550_s15 = scalar_lea.sflag (!%p7159_p5), [#allocation4], %s7291_s13 }
  0xab   : > { %s553_s29 = scalar_lea.vmem (!%p7159_p5), [#allocation3], %s7294_s14 }
  0xae   : > { %6961 = dma.done.wait (%p7111_p7), %s550_s15, 32  }
  0xaf   : > { %6963 = vsyncadd (%p7111_p7), %s550_s15, 4294967264  ;;  %s8651_s16 = sld [smem:[#allocation25_spill]]  ;;  %s563_s10 = scalar_lea.vmem [#allocation6], %s7294_s14 }
  0xb5   : > { %s559_s23 = sand.u32 1, %s8651_s16  }
  0xb6   : > { %s560_s30 = scalar_lea.sflag [#allocation7], %s559_s23 }
  0xb7   : > { %6965 = dma.done.wait (%p7111_p7), %s560_s30, 12320  }
  0xb8   : > { %6967 = vsyncadd (%p7111_p7), %s560_s30, 4294954976  ;;  %s6525_s18 = smul.u32 768, %s7291_s13  ;;  %s4587_s27 = sshll.u32 %s7291_s13, 8 }
  0xb9   : > { %s580_s28 = scalar_lea.sflag [#allocation10], %s559_s23  ;;  %s7312_s20 = scalar_lea.vmem [#allocation9], %s4587_s27 }
  0xba   : > { %s7310_s9 = scalar_lea.vmem [#allocation8], %s6525_s18 }
  0xbb   : > { %6969 = dma.done.wait (%p7111_p7), %s580_s28, 20480  }
  0xbc   : > { %6971 = vsyncadd (%p7111_p7), %s580_s28, 4294946816  ;;  %s4588_s11 = sshll.u32 %s7291_s13, 10  ;;  %s4589_s2 = sshll.u32 %s7291_s13, 3 }
  0xbd   : > { %s7320_s24 = scalar_lea.vmem [#allocation11], %s4588_s11  ;;  %s600_s26 = scalar_lea.sflag [#allocation13], %s559_s23 }
  0xbe   : > { %s7322_s0 = scalar_lea.vmem [#allocation12], %s4589_s2 }
  0xbf   : > { %6973 = dma.done.wait (%p7111_p7), %s600_s26, 16512  }
  0xc0   : > { %6975 = vsyncadd (%p7111_p7), %s600_s26, 4294950784  ;;  %s7328_s17 = scalar_lea.vmem [#allocation14], %s4588_s11  ;;  %s620_s21 = scalar_lea.sflag [#allocation16], %s7291_s13 }
  0xc1   : > { %s623_s4 = scalar_lea.vmem [#allocation15], %s7294_s14 }
  0xc2   : > { %6977 = dma.done.wait (%p7111_p7), %s620_s21, 32  }
  0xc3   : > { %6979 = vsyncadd (%p7111_p7), %s620_s21, 4294967264  ;;  %p4592_p8 = scmp.ne.s32.totalorder %s8651_s16, 0 }
  0xc4   : > { %s8652_s15 = sld [smem:[#allocation29_spill]] (!%p4592_p8) }
  0xc5   : > { %699 = sbr.rel (%p4592_p8) target bundleno = 207 (0xcf), region = 104 }
  0xca   : > { %v700_v0 = vld [vmem:[%s8652_s15] sm:$0xff]  ;;  %v701_v1 = vld [vmem:[%s8652_s15 + $0x8] sm:$0xff]  ;;  %v702_v2 = vld [vmem:[%s8652_s15 + $0x10] sm:$0xff] }
  0xcb   : > { %704 = vst [vmem:[#allocation2 + $0x10] sm:$0xff] %v700_v0  ;;  %v703_v3 = vld [vmem:[%s8652_s15 + $0x18] sm:$0xff] }
  0xcc   : > { %705 = vst [vmem:[#allocation2] sm:$0xff] %v701_v1 }
  0xcd   : > { %706 = vst [vmem:[#allocation2 + $0x18] sm:$0xff] %v702_v2 }
  0xce   : > { %707 = vst [vmem:[#allocation2 + $0x8] sm:$0xff] %v703_v3 }
  0xcf PF: > { %v7006_v10 = vmov 256.0   ;;  %v4763_v14 = vld [vmem:[%s7310_s9 + $0x150] sm:$0xf]  ;;  %v6184_v15 = vld [vmem:[%s7310_s9 + $0x164] sm:$0xf0]  ;;  %s7007_s12 = smov 64  }
  0xd0   : > { %6616 = vrcp.f32 %v7006_v10  ;;  %v4955_v16 = vld [vmem:[%s7310_s9 + $0x2d0] sm:$0xf]  ;;  %v4764_v17 = vor.u32 %v6184_v15, %v4763_v14  ;;  %v6232_v18 = vld [vmem:[%s7310_s9 + $0x2e4] sm:$0xf0]  ;;  %v6181_v19 = vld [vmem:[%s7310_s9 + $0x154] sm:$0xf] }
  0xd1   : > { %v4765_v20 = vld [vmem:[%s7310_s9 + $0x168] sm:$0xf0]  ;;  %v4956_v21 = vor.u32 %v6232_v18, %v4955_v16  ;;  %v6229_v23 = vld [vmem:[%s7310_s9 + $0x2d4] sm:$0xf]  ;;  %v4739_v25 = vld [vmem:[%s7310_s9 + $0x120] sm:$0xf] }
  0xd2   : > { %v7349_v4 = vld [vmem:[#allocation2 + $0x10] sm:$0xff]  ;;  %v4768_v22 = vor.u32 %v6181_v19, %v4765_v20  ;;  %1367 = vmatpush.bf16.msra.mxu0 %v4764_v17  ;;  %v6178_v27 = vld [vmem:[%s7310_s9 + $0x134] sm:$0xf0]  ;;  %v4931_v28 = vld [vmem:[%s7310_s9 + $0x2a0] sm:$0xf]  ;;  %vm1557_vm7 = vcmask 523264  }
  0xd3   : > { %v7351_v5 = vld [vmem:[#allocation2] sm:$0xff]  ;;  %v4957_v24 = vld [vmem:[%s7310_s9 + $0x2e8] sm:$0xf0]  ;;  %1381 = vmatpush.bf16.msra.mxu1 %v4956_v21  ;;  %v4740_v30 = vor.u32 %v6178_v27, %v4739_v25  ;;  %v6175_v32 = vld [vmem:[%s7310_s9 + $0x124] sm:$0xf]  ;;  %s8654_s2 = sld [smem:[#allocation33_spill]] }
  0xd4   : > { %v712_v6 = vadd.f32 %v7351_v5, %v7349_v4  ;;  %v7355_v7 = vld [vmem:[#allocation2 + $0x18] sm:$0xff]  ;;  %v4960_v26 = vor.u32 %v6229_v23, %v4957_v24  ;;  %v6226_v29 = vld [vmem:[%s7310_s9 + $0x2b4] sm:$0xf0]  ;;  %1395 = vmatpush.bf16.msra.mxu2 %v4768_v22  ;;  %v4741_v33 = vld [vmem:[%s7310_s9 + $0x138] sm:$0xf0]  ;;  %s8655_s18 = sld [smem:[#allocation34_spill]] }
  0xd5   : > { %v7357_v8 = vld [vmem:[#allocation2 + $0x8] sm:$0xff]  ;;  %v4932_v31 = vor.u32 %v6226_v29, %v4931_v28  ;;  %v4744_v36 = vor.u32 %v6175_v32, %v4741_v33  ;;  %v4933_v37 = vld [vmem:[%s7310_s9 + $0x2b8] sm:$0xf0]  ;;  %v4715_v38 = vld [vmem:[%s7310_s9 + $0xf0] sm:$0xf]  ;;  %vm1710_vm8 = vcmask 130048  }
  0xd6   : > { %713 = vadd.xlane.f32.xlu0 %v712_v6  ;;  %v715_v9 = vadd.f32 %v7357_v8, %v7355_v7  ;;  %v7361_v11 = vpop.eup %6616  ;;  %v6223_v34 = vld [vmem:[%s7310_s9 + $0x2a4] sm:$0xf]  ;;  %1409 = vmatpush.bf16.msra.mxu3 %v4960_v26  ;;  %v6172_v39 = vld [vmem:[%s7310_s9 + $0x104] sm:$0xf0]  ;;  %v4907_v41 = vld [vmem:[%s7310_s9 + $0x270] sm:$0xf] }
  0xd7   : > { %v719_v12 = vmul.f32 256.0, %v7361_v11  ;;  %v4936_v40 = vor.u32 %v6223_v34, %v4933_v37  ;;  %v6220_v42 = vld [vmem:[%s7310_s9 + $0x284] sm:$0xf0]  ;;  %v6169_v43 = vld [vmem:[%s7310_s9 + $0xf4] sm:$0xf]  ;;  %1368 = vmatpush.bf16.msra.mxu0 %v4740_v30  ;;  %v4716_v44 = vor.u32 %v6172_v39, %v4715_v38  ;;  %1382 = vmatpush.bf16.msra.mxu1 %v4932_v31  ;;  %vm723_vm0 = vweird.f32 %v7361_v11  ;;  %s8666_s14 = sld [smem:[#allocation25_spill]] }
  0xd8   : > { %v4717_v45 = vld [vmem:[%s7310_s9 + $0x108] sm:$0xf0]  ;;  %v6217_v46 = vld [vmem:[%s7310_s9 + $0x274] sm:$0xf]  ;;  %1396 = vmatpush.bf16.msra.mxu2 %v4744_v36  ;;  %v4908_v48 = vor.u32 %v6220_v42, %v4907_v41  ;;  %v4691_v50 = vld [vmem:[%s7310_s9 + $0xc0] sm:$0xf] }
  0xd9   : > { %v720_v13 = vsub.f32 1.0, %v719_v12  ;;  %v4909_v47 = vld [vmem:[%s7310_s9 + $0x288] sm:$0xf0]  ;;  %v4720_v49 = vor.u32 %v6169_v43, %v4717_v45  ;;  %v6166_v51 = vld [vmem:[%s7310_s9 + $0xd4] sm:$0xf0] }
  0xda   : > { %v4883_v52 = vld [vmem:[%s7310_s9 + $0x240] sm:$0xf]  ;;  %1410 = vmatpush.bf16.msra.mxu3 %v4936_v40  ;;  %v4912_v54 = vor.u32 %v6217_v46, %v4909_v47  ;;  %v6214_v55 = vld [vmem:[%s7310_s9 + $0x254] sm:$0xf0]  ;;  %v6163_v56 = vld [vmem:[%s7310_s9 + $0xc4] sm:$0xf]  ;;  %v4692_v60 = vor.u32 %v6166_v51, %v4691_v50 }
  0xdb   : > { %v721_v35 = vmul.f32 %v7361_v11, %v720_v13  ;;  %v4693_v57 = vld [vmem:[%s7310_s9 + $0xd8] sm:$0xf0]  ;;  %v6211_v58 = vld [vmem:[%s7310_s9 + $0x244] sm:$0xf]  ;;  %1369 = vmatpush.bf16.msra.mxu0 %v4716_v44  ;;  %1383 = vmatpush.bf16.msra.mxu1 %v4908_v48  ;;  %v4884_v61 = vor.u32 %v6214_v55, %v4883_v52  ;;  %v4667_v63 = vld [vmem:[%s7310_s9 + $0x90] sm:$0xf] }
  0xdc   : > { %v4885_v59 = vld [vmem:[%s7310_s9 + $0x258] sm:$0xf0]  ;;  %1397 = vmatpush.bf16.msra.mxu2 %v4720_v49  ;;  %v4696_v62 = vor.u32 %v6163_v56, %v4693_v57  ;;  %v6160_v0 = vld [vmem:[%s7310_s9 + $0xa4] sm:$0xf0]  ;;  %v4859_v1 = vld [vmem:[%s7310_s9 + $0x210] sm:$0xf] }
  0xdd   : > { %v722_v53 = vadd.f32 %v7361_v11, %v721_v35  ;;  %v4888_v3 = vor.u32 %v6211_v58, %v4885_v59  ;;  %v6208_v6 = vld [vmem:[%s7310_s9 + $0x224] sm:$0xf0]  ;;  %v4669_v10 = vld [vmem:[%s7310_s9 + $0xa8] sm:$0xf0]  ;;  %v6205_v12 = vld [vmem:[%s7310_s9 + $0x214] sm:$0xf]  ;;  %v4668_v15 = vor.u32 %v6160_v0, %v4667_v63 }
  0xde   : > { %716 = vadd.xlane.f32.xlu0 %v715_v9  ;;  %1411 = vmatpush.bf16.msra.mxu3 %v4912_v54  ;;  %v6157_v9 = vld [vmem:[%s7310_s9 + $0x94] sm:$0xf]  ;;  %v4861_v13 = vld [vmem:[%s7310_s9 + $0x228] sm:$0xf0]  ;;  %v4860_v17 = vor.u32 %v6208_v6, %v4859_v1  ;;  %v4643_v29 = vld [vmem:[%s7310_s9 + $0x60] sm:$0xf] }
  0xdf   : > { %v7403_v2 = vsel %vm723_vm0, %v7361_v11, %v722_v53  ;;  %1370 = vmatpush.bf16.msra.mxu0 %v4692_v60  ;;  %1384 = vmatpush.bf16.msra.mxu1 %v4884_v61  ;;  %v4672_v18 = vor.u32 %v6157_v9, %v4669_v10  ;;  %v4864_v19 = vor.u32 %v6205_v12, %v4861_v13  ;;  %v6154_v30 = vld [vmem:[%s7310_s9 + $0x74] sm:$0xf0]  ;;  %v4835_v31 = vld [vmem:[%s7310_s9 + $0x1e0] sm:$0xf]  ;;  %v6151_v33 = vld [vmem:[%s7310_s9 + $0x64] sm:$0xf] }
  0xe0   : > { %1398 = vmatpush.bf16.msra.mxu2 %v4696_v62  ;;  %v6202_v32 = vld [vmem:[%s7310_s9 + $0x1f4] sm:$0xf0]  ;;  %v6199_v36 = vld [vmem:[%s7310_s9 + $0x1e4] sm:$0xf]  ;;  %v4837_v37 = vld [vmem:[%s7310_s9 + $0x1f8] sm:$0xf0] }
  0xe1   : > { %v4836_v34 = vor.u32 %v6202_v32, %v4835_v31  ;;  %v4840_v38 = vor.u32 %v6199_v36, %v4837_v37  ;;  %v4619_v39 = vld [vmem:[%s7310_s9 + $0x30] sm:$0xf]  ;;  %v6148_v40 = vld [vmem:[%s7310_s9 + $0x44] sm:$0xf0]  ;;  %v6145_v44 = vld [vmem:[%s7310_s9 + $0x34] sm:$0xf] }
  0xe2   : > { %1412 = vmatpush.bf16.msra.mxu3 %v4888_v3  ;;  %v4811_v41 = vld [vmem:[%s7310_s9 + $0x1b0] sm:$0xf]  ;;  %v4620_v42 = vor.u32 %v6148_v40, %v4619_v39  ;;  %v6196_v43 = vld [vmem:[%s7310_s9 + $0x1c4] sm:$0xf0]  ;;  %v4621_v45 = vld [vmem:[%s7310_s9 + $0x48] sm:$0xf0] }
  0xe3   : > { %1371 = vmatpush.bf16.msra.mxu0 %v4668_v15  ;;  %1385 = vmatpush.bf16.msra.mxu1 %v4860_v17  ;;  %v4812_v46 = vor.u32 %v6196_v43, %v4811_v41  ;;  %v4624_v47 = vor.u32 %v6145_v44, %v4621_v45  ;;  %v6193_v48 = vld [vmem:[%s7310_s9 + $0x1b4] sm:$0xf]  ;;  %v4813_v49 = vld [vmem:[%s7310_s9 + $0x1c8] sm:$0xf0]  ;;  %v4595_v51 = vld [vmem:[%s7310_s9] sm:$0xf] }
  0xe4   : > { %1399 = vmatpush.bf16.msra.mxu2 %v4672_v18  ;;  %v4816_v50 = vor.u32 %v6193_v48, %v4813_v49  ;;  %v6142_v52 = vld [vmem:[%s7310_s9 + $0x14] sm:$0xf0]  ;;  %v4787_v53 = vld [vmem:[%s7310_s9 + $0x180] sm:$0xf]  ;;  %v6139_v56 = vld [vmem:[%s7310_s9 + $0x4] sm:$0xf] }
  0xe5   : > { %v4596_v54 = vor.u32 %v6142_v52, %v4595_v51  ;;  %v6190_v55 = vld [vmem:[%s7310_s9 + $0x194] sm:$0xf0]  ;;  %v4597_v57 = vld [vmem:[%s7310_s9 + $0x18] sm:$0xf0]  ;;  %v6187_v60 = vld [vmem:[%s7310_s9 + $0x184] sm:$0xf] }
  0xe6   : > { %1413 = vmatpush.bf16.msra.mxu3 %v4864_v19  ;;  %v4788_v58 = vor.u32 %v6190_v55, %v4787_v53  ;;  %v4600_v59 = vor.u32 %v6139_v56, %v4597_v57  ;;  %v4789_v61 = vld [vmem:[%s7310_s9 + $0x198] sm:$0xf0]  ;;  %v4771_v62 = vld [vmem:[%s7310_s9 + $0x158] sm:$0xf]  ;;  %v6185_v0 = vld [vmem:[%s7310_s9 + $0x16c] sm:$0xf0] }
  0xe7   : > { %1386 = vmatpush.bf16.msra.mxu1 %v4836_v34  ;;  %v4792_v63 = vor.u32 %v6187_v60, %v4789_v61  ;;  %v4963_v1 = vld [vmem:[%s7310_s9 + $0x2d8] sm:$0xf]  ;;  %v6233_v3 = vld [vmem:[%s7310_s9 + $0x2ec] sm:$0xf0]  ;;  %v4772_v6 = vor.u32 %v6185_v0, %v4771_v62  ;;  %v6182_v10 = vld [vmem:[%s7310_s9 + $0x15c] sm:$0xf] }
  0xe8   : > { %v4964_v9 = vor.u32 %v6233_v3, %v4963_v1  ;;  %v4773_v12 = vld [vmem:[%s7310_s9 + $0x170] sm:$0xf0]  ;;  %v6230_v13 = vld [vmem:[%s7310_s9 + $0x2dc] sm:$0xf]  ;;  %v6179_v17 = vld [vmem:[%s7310_s9 + $0x13c] sm:$0xf0] }
  0xe9   : > { %v4965_v15 = vld [vmem:[%s7310_s9 + $0x2f0] sm:$0xf0]  ;;  %v6173_v31 = vld [vmem:[%s7310_s9 + $0x10c] sm:$0xf0]  ;;  %v6218_v37 = vld [vmem:[%s7310_s9 + $0x27c] sm:$0xf] }
  0xea   : > { %1414 = vmatpush.bf16.msra.mxu3 %v4840_v38  ;;  %v4968_v18 = vor.u32 %v6230_v13, %v4965_v15  ;;  %v4725_v34 = vld [vmem:[%s7310_s9 + $0x110] sm:$0xf0]  ;;  %v4699_v40 = vld [vmem:[%s7310_s9 + $0xc8] sm:$0xf]  ;;  %v6167_v41 = vld [vmem:[%s7310_s9 + $0xdc] sm:$0xf0] }
  0xeb   : > { %1387 = vmatpush.bf16.msra.mxu1 %v4812_v46  ;;  %v4917_v38 = vld [vmem:[%s7310_s9 + $0x290] sm:$0xf0]  ;;  %v4700_v43 = vor.u32 %v6167_v41, %v4699_v40  ;;  %v6215_v44 = vld [vmem:[%s7310_s9 + $0x25c] sm:$0xf0]  ;;  %v6164_v45 = vld [vmem:[%s7310_s9 + $0xcc] sm:$0xf] }
  0xec   : > { %v4920_v39 = vor.u32 %v6218_v37, %v4917_v38  ;;  %v4701_v46 = vld [vmem:[%s7310_s9 + $0xe0] sm:$0xf0]  ;;  %v6212_v49 = vld [vmem:[%s7310_s9 + $0x24c] sm:$0xf]  ;;  %v4675_v52 = vld [vmem:[%s7310_s9 + $0x98] sm:$0xf] }
  0xed   : > { %v4704_v48 = vor.u32 %v6164_v45, %v4701_v46  ;;  %v6161_v53 = vld [vmem:[%s7310_s9 + $0xac] sm:$0xf0]  ;;  %v6158_v57 = vld [vmem:[%s7310_s9 + $0x9c] sm:$0xf]  ;;  %v4869_v62 = vld [vmem:[%s7310_s9 + $0x230] sm:$0xf0] }
  0xee   : > { %1415 = vmatpush.bf16.msra.mxu3 %v4816_v50  ;;  %v4893_v50 = vld [vmem:[%s7310_s9 + $0x260] sm:$0xf0]  ;;  %v4676_v55 = vor.u32 %v6161_v53, %v4675_v52  ;;  %v6209_v56 = vld [vmem:[%s7310_s9 + $0x22c] sm:$0xf0]  ;;  %v6206_v61 = vld [vmem:[%s7310_s9 + $0x21c] sm:$0xf] }
  0xef   : > { %1388 = vmatpush.bf16.msra.mxu1 %v4788_v58  ;;  %v4896_v51 = vor.u32 %v6212_v49, %v4893_v50  ;;  %v4677_v58 = vld [vmem:[%s7310_s9 + $0xb0] sm:$0xf0]  ;;  %v4651_v0 = vld [vmem:[%s7310_s9 + $0x68] sm:$0xf]  ;;  %v6155_v1 = vld [vmem:[%s7310_s9 + $0x7c] sm:$0xf0] }
  0xf0   : > { %v4680_v60 = vor.u32 %v6158_v57, %v4677_v58  ;;  %v4843_v3 = vld [vmem:[%s7310_s9 + $0x1e8] sm:$0xf]  ;;  %v6200_v15 = vld [vmem:[%s7310_s9 + $0x1ec] sm:$0xf]  ;;  %v4605_v38 = vld [vmem:[%s7310_s9 + $0x20] sm:$0xf0] }
  0xf1   : > { %v6140_v37 = vld [vmem:[%s7310_s9 + $0xc] sm:$0xf]  ;;  %p6131_p7 = scmp.ne.s32.totalorder %s8666_s14, 2 }
  0xf2   : > { %1416 = vmatpush.bf16.msra.mxu3 %v4792_v63  ;;  %v4872_v63 = vor.u32 %v6206_v61, %v4869_v62  ;;  %v4608_v40 = vor.u32 %v6140_v37, %v4605_v38  ;;  %v6188_v41 = vld [vmem:[%s7310_s9 + $0x18c] sm:$0xf]  ;;  %v779_v61 = vld [vmem:[%s563_s10] sm:$0x3]  ;;  %s8653_s10 = sld [smem:[#allocation32_spill]] }
  0xf3   : > { %1437 = vmatpush.bf16.msrb.mxu1 %v4964_v9  ;;  %v6203_v9 = vld [vmem:[%s7310_s9 + $0x1fc] sm:$0xf0] }
  0xf4   : > { %v4844_v13 = vor.u32 %v6203_v9, %v4843_v3  ;;  %v782_v3 = vperm.slane %v779_v61, 1 }
  0xf6   : > { %1465 = vmatpush.bf16.msrb.mxu3 %v4968_v18 }
 0x149   : > { %v714_v14 = vpop.xlane.xlu0 %713 }
 0x14a   : > { %v725_v16 = vmul.f32 %v7403_v2, %v714_v14  ;;  %v4776_v14 = vor.u32 %v6182_v10, %v4773_v12  ;;  %v6152_v10 = vld [vmem:[%s7310_s9 + $0x6c] sm:$0xf]  ;;  %v4653_v12 = vld [vmem:[%s7310_s9 + $0x80] sm:$0xf0] }
 0x14c   : > { %v7412_v11 = vsub.f32 %v7349_v4, %v725_v16  ;;  %v7415_v20 = vsub.f32 %v7351_v5, %v725_v16  ;;  %v4747_v16 = vld [vmem:[%s7310_s9 + $0x128] sm:$0xf] }
 0x14d   : > { %v4748_v19 = vor.u32 %v6179_v17, %v4747_v16  ;;  %v4845_v16 = vld [vmem:[%s7310_s9 + $0x200] sm:$0xf0] }
 0x14e   : > { %v731_v21 = vmul.f32 %v7412_v11, %v7412_v11  ;;  %v732_v22 = vmul.f32 %v7415_v20, %v7415_v20  ;;  %v4848_v17 = vor.u32 %v6200_v15, %v4845_v16  ;;  %v6186_v15 = vld [vmem:[%s7310_s9 + $0x174] sm:$0xf0]  ;;  %v4971_v16 = vld [vmem:[%s7310_s9 + $0x2e0] sm:$0xf] }
 0x150   : > { %v735_v4 = vadd.f32 %v732_v22, %v731_v21  ;;  %v4939_v21 = vld [vmem:[%s7310_s9 + $0x2a8] sm:$0xf]  ;;  %v6227_v22 = vld [vmem:[%s7310_s9 + $0x2bc] sm:$0xf0] }
 0x151   : > { %v717_v23 = vpop.xlane.xlu0 %716 }
 0x152   : > { %v726_v5 = vmul.f32 %v7403_v2, %v717_v23  ;;  %736 = vadd.xlane.f32.xlu1 %v735_v4  ;;  %v6176_v4 = vld [vmem:[%s7310_s9 + $0x12c] sm:$0xf]  ;;  %v4940_v23 = vor.u32 %v6227_v22, %v4939_v21  ;;  %v6149_v21 = vld [vmem:[%s7310_s9 + $0x4c] sm:$0xf0]  ;;  %v4819_v22 = vld [vmem:[%s7310_s9 + $0x1b8] sm:$0xf] }
 0x154   : > { %v7423_v24 = vsub.f32 %v7355_v7, %v726_v5  ;;  %v7426_v25 = vsub.f32 %v7357_v8, %v726_v5  ;;  %v4644_v7 = vor.u32 %v6154_v30, %v4643_v29  ;;  %v4645_v8 = vld [vmem:[%s7310_s9 + $0x78] sm:$0xf0]  ;;  %v4749_v5 = vld [vmem:[%s7310_s9 + $0x140] sm:$0xf0]  ;;  %v4723_v30 = vld [vmem:[%s7310_s9 + $0xf8] sm:$0xf]  ;;  %1438 = vmatpush.bf16.msrb.mxu1 %v4940_v23 }
 0x155   : > { %v4648_v35 = vor.u32 %v6151_v33, %v4645_v8  ;;  %v4724_v32 = vor.u32 %v6173_v31, %v4723_v30  ;;  %v6221_v33 = vld [vmem:[%s7310_s9 + $0x28c] sm:$0xf0]  ;;  %v6170_v8 = vld [vmem:[%s7310_s9 + $0xfc] sm:$0xf]  ;;  %v4821_v31 = vld [vmem:[%s7310_s9 + $0x1d0] sm:$0xf0] }
 0x156   : > { %v733_v26 = vmul.f32 %v7423_v24, %v7423_v24  ;;  %v734_v27 = vmul.f32 %v7426_v25, %v7426_v25  ;;  %1372 = vmatpush.bf16.msra.mxu0 %v4644_v7  ;;  %v4915_v7 = vld [vmem:[%s7310_s9 + $0x278] sm:$0xf]  ;;  %v4728_v36 = vor.u32 %v6170_v8, %v4725_v34  ;;  %v6194_v30 = vld [vmem:[%s7310_s9 + $0x1bc] sm:$0xf]  ;;  %v6143_v8 = vld [vmem:[%s7310_s9 + $0x1c] sm:$0xf0] }
 0x157   : > { %1400 = vmatpush.bf16.msra.mxu2 %v4648_v35  ;;  %v4916_v35 = vor.u32 %v6221_v33, %v4915_v7  ;;  %v4603_v33 = vld [vmem:[%s7310_s9 + $0x8] sm:$0xf] }
 0x158   : > { %v738_v28 = vadd.f32 %v734_v27, %v733_v26  ;;  %v6224_v26 = vld [vmem:[%s7310_s9 + $0x2ac] sm:$0xf]  ;;  %v4941_v27 = vld [vmem:[%s7310_s9 + $0x2c0] sm:$0xf0]  ;;  %v4795_v34 = vld [vmem:[%s7310_s9 + $0x188] sm:$0xf] }
 0x159   : > { %v4944_v29 = vor.u32 %v6224_v26, %v4941_v27  ;;  %1439 = vmatpush.bf16.msrb.mxu1 %v4916_v35  ;;  %v6146_v26 = vld [vmem:[%s7310_s9 + $0x3c] sm:$0xf]  ;;  %v4629_v27 = vld [vmem:[%s7310_s9 + $0x50] sm:$0xf0]  ;;  %v4604_v35 = vor.u32 %v6143_v8, %v4603_v33  ;;  %v6228_v33 = vld [vmem:[%s7310_s9 + $0x2c4] sm:$0xf0] }
 0x15a   : > { %739 = vadd.xlane.f32.xlu1 %v738_v28  ;;  %1373 = vmatpush.bf16.msra.mxu0 %v4620_v42  ;;  %v4752_v28 = vor.u32 %v6176_v4, %v4749_v5  ;;  %v4891_v42 = vld [vmem:[%s7310_s9 + $0x248] sm:$0xf]  ;;  %v6197_v5 = vld [vmem:[%s7310_s9 + $0x1cc] sm:$0xf0]  ;;  %v6177_v8 = vld [vmem:[%s7310_s9 + $0x134] sm:$0xf] }
 0x15b   : > { %1401 = vmatpush.bf16.msra.mxu2 %v4624_v47  ;;  %1466 = vmatpush.bf16.msrb.mxu3 %v4944_v29  ;;  %v4892_v47 = vor.u32 %v6215_v44, %v4891_v42  ;;  %v4632_v29 = vor.u32 %v6146_v26, %v4629_v27  ;;  %v4797_v42 = vld [vmem:[%s7310_s9 + $0x1a0] sm:$0xf0] }
 0x15c   : > { %v4800_v44 = vor.u32 %v6188_v41, %v4797_v42 }
 0x15d   : > { %1440 = vmatpush.bf16.msrb.mxu1 %v4892_v47 }
 0x15e   : > { %1374 = vmatpush.bf16.msra.mxu0 %v4596_v54  ;;  %v4867_v54 = vld [vmem:[%s7310_s9 + $0x218] sm:$0xf] }
 0x15f   : > { %1402 = vmatpush.bf16.msra.mxu2 %v4600_v59  ;;  %1467 = vmatpush.bf16.msrb.mxu3 %v4920_v39  ;;  %v4868_v59 = vor.u32 %v6209_v56, %v4867_v54 }
 0x161   : > { %1441 = vmatpush.bf16.msrb.mxu1 %v4868_v59 }
 0x162   : > { %1423 = vmatpush.bf16.msrb.mxu0 %v4772_v6  ;;  %v4652_v6 = vor.u32 %v6155_v1, %v4651_v0  ;;  %v781_v1 = vperm.slane %v779_v61, 0 }
 0x163   : > { %1451 = vmatpush.bf16.msrb.mxu2 %v4776_v14  ;;  %1468 = vmatpush.bf16.msrb.mxu3 %v4896_v51  ;;  %v4656_v14 = vor.u32 %v6152_v10, %v4653_v12 }
 0x165   : > { %1442 = vmatpush.bf16.msrb.mxu1 %v4844_v13 }
 0x166   : > { %1424 = vmatpush.bf16.msrb.mxu0 %v4748_v19  ;;  %v4627_v19 = vld [vmem:[%s7310_s9 + $0x38] sm:$0xf] }
 0x167   : > { %1452 = vmatpush.bf16.msrb.mxu2 %v4752_v28  ;;  %1469 = vmatpush.bf16.msrb.mxu3 %v4872_v63  ;;  %v4628_v23 = vor.u32 %v6149_v21, %v4627_v19  ;;  %v4820_v28 = vor.u32 %v6197_v5, %v4819_v22 }
 0x169   : > { %1443 = vmatpush.bf16.msrb.mxu1 %v4820_v28 }
 0x16a   : > { %1425 = vmatpush.bf16.msrb.mxu0 %v4724_v32  ;;  %v4824_v32 = vor.u32 %v6194_v30, %v4821_v31  ;;  %v6180_v30 = vld [vmem:[%s7310_s9 + $0x144] sm:$0xf0] }
 0x16b   : > { %1453 = vmatpush.bf16.msrb.mxu2 %v4728_v36  ;;  %1470 = vmatpush.bf16.msrb.mxu3 %v4848_v17  ;;  %v6191_v36 = vld [vmem:[%s7310_s9 + $0x19c] sm:$0xf0]  ;;  %v6234_v17 = vld [vmem:[%s7310_s9 + $0x2f4] sm:$0xf0] }
 0x16c   : > { %v4796_v39 = vor.u32 %v6191_v36, %v4795_v34  ;;  %v4972_v28 = vor.u32 %v6234_v17, %v4971_v16  ;;  %v4757_v34 = vld [vmem:[%s7310_s9 + $0x148] sm:$0xf0] }
 0x16d   : > { %v4949_v36 = vld [vmem:[%s7310_s9 + $0x2c8] sm:$0xf0]  ;;  %v4760_v41 = vor.u32 %v6177_v8, %v4757_v34  ;;  %v6195_v8 = vld [vmem:[%s7310_s9 + $0x1c4] sm:$0xf]  ;;  %v4829_v34 = vld [vmem:[%s7310_s9 + $0x1d8] sm:$0xf0] }
 0x16e   : > { %1426 = vmatpush.bf16.msrb.mxu0 %v4700_v43  ;;  %1444 = vmatpush.bf16.msrb.mxu1 %v4796_v39  ;;  %v4731_v39 = vld [vmem:[%s7310_s9 + $0x100] sm:$0xf] }
 0x16f   : > { %1454 = vmatpush.bf16.msrb.mxu2 %v4704_v48  ;;  %1471 = vmatpush.bf16.msrb.mxu3 %v4824_v32  ;;  %v4947_v32 = vld [vmem:[%s7310_s9 + $0x2b0] sm:$0xf] }
 0x170   : > { %v4948_v38 = vor.u32 %v6228_v33, %v4947_v32  ;;  %v6147_v32 = vld [vmem:[%s7310_s9 + $0x44] sm:$0xf]  ;;  %v4637_v33 = vld [vmem:[%s7310_s9 + $0x58] sm:$0xf0] }
 0x172   : > { %1427 = vmatpush.bf16.msrb.mxu0 %v4676_v55 }
 0x173   : > { %1455 = vmatpush.bf16.msrb.mxu2 %v4680_v60  ;;  %1472 = vmatpush.bf16.msrb.mxu3 %v4800_v44  ;;  %v6222_v44 = vld [vmem:[%s7310_s9 + $0x294] sm:$0xf0] }
 0x176   : > { %1428 = vmatpush.bf16.msrb.mxu0 %v4652_v6 }
 0x177   : > { %1456 = vmatpush.bf16.msrb.mxu2 %v4656_v14 }
 0x17a   : > { %1429 = vmatpush.bf16.msrb.mxu0 %v4628_v23  ;;  %v4781_v23 = vld [vmem:[%s7310_s9 + $0x178] sm:$0xf0] }
 0x17b   : > { %1457 = vmatpush.bf16.msrb.mxu2 %v4632_v29  ;;  %v4755_v29 = vld [vmem:[%s7310_s9 + $0x130] sm:$0xf] }
 0x17c   : > { %v4756_v37 = vor.u32 %v6180_v30, %v4755_v29 }
 0x17e   : > { %1430 = vmatpush.bf16.msrb.mxu0 %v4604_v35  ;;  %v6225_v35 = vld [vmem:[%s7310_s9 + $0x2b4] sm:$0xf] }
 0x17f   : > { %1458 = vmatpush.bf16.msrb.mxu2 %v4608_v40  ;;  %v6174_v40 = vld [vmem:[%s7310_s9 + $0x114] sm:$0xf0]  ;;  %v4952_v42 = vor.u32 %v6225_v35, %v4949_v36 }
 0x1c5   : > { %v737_v18 = vpop.xlane.xlu1 %736 }
 0x1c6   : > { %v741_v4 = vmul.f32 %v737_v18, %v7403_v2  ;;  %v6183_v18 = vld [vmem:[%s7310_s9 + $0x164] sm:$0xf] }
 0x1c7   : > { %v4784_v31 = vor.u32 %v6183_v18, %v4781_v23  ;;  %v4851_v18 = vld [vmem:[%s7310_s9 + $0x1f0] sm:$0xf]  ;;  %v4853_v23 = vld [vmem:[%s7310_s9 + $0x208] sm:$0xf0] }
 0x1c8   : > { %v743_v7 = vadd.f32 1e-05, %v741_v4 }
 0x1ca   : > { %6618 = vrsqrt.f32 %v743_v7  ;;  %vm751_vm2 = vweird.f32 %v743_v7 }
 0x1cd   : > { %v740_v43 = vpop.xlane.xlu1 %739 }
 0x1ce   : > { %v742_v45 = vmul.f32 %v740_v43, %v7403_v2  ;;  %v769_v2 = vld [vmem:[%s553_s29] sm:$0x3]  ;;  %v4923_v43 = vld [vmem:[%s7310_s9 + $0x280] sm:$0xf] }
 0x1cf   : > { %v771_v59 = vperm.slane %v769_v2, 0  ;;  %v772_v60 = vperm.slane %v769_v2, 1  ;;  %v6216_v2 = vld [vmem:[%s7310_s9 + $0x264] sm:$0xf0] }
 0x1d0   : > { %v6619_v46 = vpop.eup %6618  ;;  %v744_v47 = vadd.f32 1e-05, %v742_v45  ;;  %v6171_v45 = vld [vmem:[%s7310_s9 + $0x104] sm:$0xf] }
 0x1d1   : > { %v746_v48 = vmul.f32 %v6619_v46, %v743_v7  ;;  %vm752_vm1 = vweird.f32 %v6619_v46 }
 0x1d2   : > { %6620 = vrsqrt.f32 %v744_v47  ;;  %vm753_vm3 = vmor %vm751_vm2, %vm752_vm1  ;;  %vm761_vm5 = vweird.f32 %v744_v47 }
 0x1d3   : > { %v747_v49 = vmul.f32 %v6619_v46, %v746_v48  ;;  %v4925_v48 = vld [vmem:[%s7310_s9 + $0x298] sm:$0xf0] }
 0x1d5   : > { %v748_v50 = vmul.f32 0.5, %v747_v49  ;;  %v4732_v49 = vor.u32 %v6174_v40, %v4731_v39  ;;  %v4640_v39 = vor.u32 %v6147_v32, %v4637_v33  ;;  %v4832_v40 = vor.u32 %v6195_v8, %v4829_v34 }
 0x1d7   : > { %v749_v51 = vsub.f32 1.5, %v748_v50  ;;  %v4924_v50 = vor.u32 %v6222_v44, %v4923_v43  ;;  %v6141_v43 = vld [vmem:[%s7310_s9 + $0x14] sm:$0xf]  ;;  %v4613_v44 = vld [vmem:[%s7310_s9 + $0x28] sm:$0xf0] }
 0x1d8   : > { %v6621_v52 = vpop.eup %6620 }
 0x1d9   : > { %v750_v53 = vmul.f32 %v6619_v46, %v749_v51  ;;  %v756_v54 = vmul.f32 %v6621_v52, %v744_v47  ;;  %vm762_vm4 = vweird.f32 %v6621_v52  ;;  %v6219_v47 = vld [vmem:[%s7310_s9 + $0x284] sm:$0xf]  ;;  %v4707_v51 = vld [vmem:[%s7310_s9 + $0xd0] sm:$0xf] }
 0x1da   : > { %vm763_vm6 = vmor %vm761_vm5, %vm762_vm4 }
 0x1db   : > { %v757_v55 = vmul.f32 %v6621_v52, %v756_v54  ;;  %v754_v56 = vsel %vm753_vm3, %v6619_v46, %v750_v53  ;;  %v4733_v46 = vld [vmem:[%s7310_s9 + $0x118] sm:$0xf0]  ;;  %v4928_v54 = vor.u32 %v6219_v47, %v4925_v48 }
 0x1dc   : > { %v765_v62 = vmul.f32 %v754_v56, %v7412_v11  ;;  %v766_v63 = vmul.f32 %v754_v56, %v7415_v20  ;;  %v4779_v20 = vld [vmem:[%s7310_s9 + $0x160] sm:$0xf]  ;;  %v4736_v53 = vor.u32 %v6171_v45, %v4733_v46  ;;  %v6165_v56 = vld [vmem:[%s7310_s9 + $0xd4] sm:$0xf]  ;;  %v4805_v46 = vld [vmem:[%s7310_s9 + $0x1a8] sm:$0xf0] }
 0x1dd   : > { %v758_v57 = vmul.f32 0.5, %v757_v55  ;;  %v4780_v27 = vor.u32 %v6186_v15, %v4779_v20  ;;  %v4899_v55 = vld [vmem:[%s7310_s9 + $0x250] sm:$0xf]  ;;  %v6156_v15 = vld [vmem:[%s7310_s9 + $0x84] sm:$0xf0] }
 0x1de   : > { %v775_v9 = vmul.f32 %v771_v59, %v765_v62  ;;  %v776_v10 = vmul.f32 %v772_v60, %v766_v63  ;;  %v4900_v61 = vor.u32 %v6216_v2, %v4899_v55  ;;  %v4683_v62 = vld [vmem:[%s7310_s9 + $0xa0] sm:$0xf]  ;;  %v6162_v63 = vld [vmem:[%s7310_s9 + $0xb4] sm:$0xf0]  ;;  %v4659_v20 = vld [vmem:[%s7310_s9 + $0x70] sm:$0xf] }
 0x1df   : > { %v759_v58 = vsub.f32 1.5, %v758_v57  ;;  %v4709_v57 = vld [vmem:[%s7310_s9 + $0xe8] sm:$0xf0]  ;;  %v6189_v45 = vld [vmem:[%s7310_s9 + $0x194] sm:$0xf] }
 0x1e0   : > { %v785_v19 = vadd.f32 %v781_v1, %v775_v9  ;;  %v786_v21 = vadd.f32 %v782_v3, %v776_v10  ;;  %v6159_v9 = vld [vmem:[%s7310_s9 + $0xa4] sm:$0xf]  ;;  %v4685_v10 = vld [vmem:[%s7310_s9 + $0xb8] sm:$0xf0] }
 0x1e1   : > { %v760_v0 = vmul.f32 %v6621_v52, %v759_v58  ;;  %v6213_v58 = vld [vmem:[%s7310_s9 + $0x254] sm:$0xf]  ;;  %v4688_v16 = vor.u32 %v6159_v9, %v4685_v10 }
 0x1e3   : > { %v764_v6 = vsel %vm763_vm6, %v6621_v52, %v760_v0  ;;  %v6168_v52 = vld [vmem:[%s7310_s9 + $0xe4] sm:$0xf0]  ;;  %v4712_v0 = vor.u32 %v6165_v56, %v4709_v57 }
 0x1e4   : > { %v767_v12 = vmul.f32 %v764_v6, %v7423_v24  ;;  %v768_v11 = vmul.f32 %v764_v6, %v7426_v25  ;;  %v6231_v24 = vld [vmem:[%s7310_s9 + $0x2e4] sm:$0xf]  ;;  %v4973_v25 = vld [vmem:[%s7310_s9 + $0x2f8] sm:$0xf0]  ;;  %v6210_v6 = vld [vmem:[%s7310_s9 + $0x234] sm:$0xf0] }
 0x1e5   : > { %v4976_v7 = vor.u32 %v6231_v24, %v4973_v25  ;;  %v4660_v24 = vor.u32 %v6156_v15, %v4659_v20 }
 0x1e6   : > { %v777_v13 = vmul.f32 %v771_v59, %v767_v12  ;;  %v778_v14 = vmul.f32 %v772_v60, %v768_v11  ;;  %v4901_v59 = vld [vmem:[%s7310_s9 + $0x268] sm:$0xf0]  ;;  %v4708_v60 = vor.u32 %v6168_v52, %v4707_v51  ;;  %v6207_v12 = vld [vmem:[%s7310_s9 + $0x224] sm:$0xf]  ;;  %v4877_v11 = vld [vmem:[%s7310_s9 + $0x238] sm:$0xf0] }
 0x1e7   : > { %v4880_v17 = vor.u32 %v6207_v12, %v4877_v11 }
 0x1e8   : > { %v787_v22 = vadd.f32 %v781_v1, %v777_v13  ;;  %v788_v4 = vadd.f32 %v782_v3, %v778_v14  ;;  %v4904_v1 = vor.u32 %v6213_v58, %v4901_v59  ;;  %v4875_v3 = vld [vmem:[%s7310_s9 + $0x220] sm:$0xf]  ;;  %v4684_v13 = vor.u32 %v6162_v63, %v4683_v62 }
 0x1e9   : > { %v4876_v14 = vor.u32 %v6210_v6, %v4875_v3 }
 0x1ea   : > { %v7538_v5 = vpack.c.bf16 %v787_v22, %v785_v19  ;;  %v7540_v26 = vpack.c.bf16 %v788_v4, %v786_v21  ;;  %v6204_v19 = vld [vmem:[%s7310_s9 + $0x204] sm:$0xf0]  ;;  %v6153_v21 = vld [vmem:[%s7310_s9 + $0x74] sm:$0xf]  ;;  %v4661_v22 = vld [vmem:[%s7310_s9 + $0x88] sm:$0xf0] }
 0x1eb   : > { %v6201_v4 = vld [vmem:[%s7310_s9 + $0x1f4] sm:$0xf]  ;;  %v4852_v25 = vor.u32 %v6204_v19, %v4851_v18  ;;  %v4664_v29 = vor.u32 %v6153_v21, %v4661_v22 }
 0x1ec   : > { %1375 = vmatmul.bf16.vlgmr.msra.gmra.mxu0 %v7538_v5  ;;  %1389 = vmatmul.bf16.vlgmr.msra.gmra.mxu1 %v7540_v26  ;;  %v4856_v30 = vor.u32 %v6201_v4, %v4853_v23 }
 0x1ed   : > { %1403 = vmatmul.bf16.vlgmr.msra.gmra.mxu2 %v7538_v5  ;;  %1417 = vmatmul.bf16.vlgmr.msra.gmra.mxu3 %v7540_v26 }
 0x1ee   : > { %1479 = vmatpush.bf16.msra.mxu0 %v4780_v27  ;;  %1493 = vmatpush.bf16.msra.mxu1 %v4972_v28  ;;  %v4635_v27 = vld [vmem:[%s7310_s9 + $0x40] sm:$0xf]  ;;  %v6150_v28 = vld [vmem:[%s7310_s9 + $0x54] sm:$0xf0] }
 0x1ef   : > { %1507 = vmatpush.bf16.msra.mxu2 %v4784_v31  ;;  %1521 = vmatpush.bf16.msra.mxu3 %v4976_v7  ;;  %v4827_v31 = vld [vmem:[%s7310_s9 + $0x1c0] sm:$0xf]  ;;  %v6198_v7 = vld [vmem:[%s7310_s9 + $0x1d4] sm:$0xf0]  ;;  %v4636_v35 = vor.u32 %v6150_v28, %v4635_v27 }
 0x1f0   : > { %v4828_v36 = vor.u32 %v6198_v7, %v4827_v31 }
 0x1f2   : > { %1480 = vmatpush.bf16.msra.mxu0 %v4756_v37  ;;  %1494 = vmatpush.bf16.msra.mxu1 %v4948_v38  ;;  %v4611_v37 = vld [vmem:[%s7310_s9 + $0x10] sm:$0xf]  ;;  %v6144_v38 = vld [vmem:[%s7310_s9 + $0x24] sm:$0xf0] }
 0x1f3   : > { %1508 = vmatpush.bf16.msra.mxu2 %v4760_v41  ;;  %1522 = vmatpush.bf16.msra.mxu3 %v4952_v42  ;;  %v4803_v41 = vld [vmem:[%s7310_s9 + $0x190] sm:$0xf]  ;;  %v6192_v42 = vld [vmem:[%s7310_s9 + $0x1a4] sm:$0xf0]  ;;  %v4612_v47 = vor.u32 %v6144_v38, %v4611_v37 }
 0x1f4   : > { %v4804_v48 = vor.u32 %v6192_v42, %v4803_v41 }
 0x1f6   : > { %1481 = vmatpush.bf16.msra.mxu0 %v4732_v49  ;;  %1495 = vmatpush.bf16.msra.mxu1 %v4924_v50  ;;  %v4616_v49 = vor.u32 %v6141_v43, %v4613_v44  ;;  %v4808_v50 = vor.u32 %v6189_v45, %v4805_v46 }
 0x1f7   : > { %1509 = vmatpush.bf16.msra.mxu2 %v4736_v53  ;;  %1523 = vmatpush.bf16.msra.mxu3 %v4928_v54 }
 0x1fa   : > { %1482 = vmatpush.bf16.msra.mxu0 %v4708_v60  ;;  %1496 = vmatpush.bf16.msra.mxu1 %v4900_v61 }
 0x1fb   : > { %1510 = vmatpush.bf16.msra.mxu2 %v4712_v0  ;;  %1524 = vmatpush.bf16.msra.mxu3 %v4904_v1 }
 0x1fc   : > { %1431 = vmatmul.bf16.vlgmr.msrb.gmra.mxu0 %v7538_v5  ;;  %1445 = vmatmul.bf16.vlgmr.msrb.gmra.mxu1 %v7540_v26 }
 0x1fd   : > { %1459 = vmatmul.bf16.vlgmr.msrb.gmra.mxu2 %v7538_v5  ;;  %1473 = vmatmul.bf16.vlgmr.msrb.gmra.mxu3 %v7540_v26 }
 0x1fe   : > { %1483 = vmatpush.bf16.msra.mxu0 %v4684_v13  ;;  %1497 = vmatpush.bf16.msra.mxu1 %v4876_v14 }
 0x1ff   : > { %1511 = vmatpush.bf16.msra.mxu2 %v4688_v16  ;;  %1525 = vmatpush.bf16.msra.mxu3 %v4880_v17 }
 0x202   : > { %1484 = vmatpush.bf16.msra.mxu0 %v4660_v24  ;;  %1498 = vmatpush.bf16.msra.mxu1 %v4852_v25 }
 0x203   : > { %1512 = vmatpush.bf16.msra.mxu2 %v4664_v29  ;;  %1526 = vmatpush.bf16.msra.mxu3 %v4856_v30 }
 0x206   : > { %1485 = vmatpush.bf16.msra.mxu0 %v4636_v35  ;;  %1499 = vmatpush.bf16.msra.mxu1 %v4828_v36 }
 0x207   : > { %1513 = vmatpush.bf16.msra.mxu2 %v4640_v39  ;;  %1527 = vmatpush.bf16.msra.mxu3 %v4832_v40 }
 0x20a   : > { %1486 = vmatpush.bf16.msra.mxu0 %v4612_v47  ;;  %1500 = vmatpush.bf16.msra.mxu1 %v4804_v48  ;;  %v1535_v48 = vld [vmem:[%s8653_s10] sm:$0xff] }
 0x20b   : > { %1514 = vmatpush.bf16.msra.mxu2 %v4616_v49  ;;  %1528 = vmatpush.bf16.msra.mxu3 %v4808_v50  ;;  %v1537_v50 = vld [vmem:[%s8654_s2] sm:$0xff] }
 0x20d   : > { %1487 = vmatmul.bf16.vlgmr.msra.gmra.mxu0 %v7538_v5  ;;  %1501 = vmatmul.bf16.vlgmr.msra.gmra.mxu1 %v7540_v26 }
 0x20e   : > { %1515 = vmatmul.bf16.vlgmr.msra.gmra.mxu2 %v7538_v5  ;;  %1529 = vmatmul.bf16.vlgmr.msra.gmra.mxu3 %v7540_v26 }
 0x269   : > { %v1376_v51 = vpop.f32.mrf.mxu0  ;;  %v1390_v52 = vpop.f32.mrf.mxu1 }
 0x26a   : > { %v7610_v53 = vadd.f32 %v1390_v52, %v1376_v51 }
 0x26c   : > { %1551 = vrot.lane.b32.xlu0 %v7610_v53, %s7007_s12  ;;  %v1539_v54 = vsub.f32 0.0, %v7610_v53  ;;  %v1560_v52 = vmul.f32 %v1537_v50, %v7610_v53 }
 0x26e   : > { %1543 = vrot.lane.b32.xlu2 %v1539_v54, %s7007_s12  ;;  %v1538_v54 = vld [vmem:[%s8654_s2 + $0x8] sm:$0xff] }
 0x270   : > { %v1404_v55 = vpop.f32.mrf.mxu2  ;;  %v1418_v2 = vpop.f32.mrf.mxu3 }
 0x271   : > { %v1378_v56 = vpop.f32.mrf.mxu0  ;;  %v1392_v57 = vpop.f32.mrf.mxu1  ;;  %v7634_v13 = vadd.f32 %v1418_v2, %v1404_v55  ;;  %v1536_v55 = vld [vmem:[%s8653_s10 + $0x8] sm:$0xff] }
 0x272   : > { %v7616_v58 = vadd.f32 %v1392_v57, %v1378_v56 }
 0x273   : > { %v1598_v18 = vsub.f32 0.0, %v7634_v13 }
 0x274   : > { %v1540_v59 = vsub.f32 0.0, %v7616_v58 }
 0x276   : > { %1553 = vrot.lane.b32.xlu2 %v7616_v58, %s7007_s12  ;;  %1545 = vrot.lane.b32.xlu1 %v1540_v59, %s7007_s12 }
 0x278   : > { %v1406_v60 = vpop.f32.mrf.mxu2  ;;  %v1420_v61 = vpop.f32.mrf.mxu3 }
 0x279   : > { %v1432_v62 = vpop.f32.mrf.mxu0  ;;  %v1446_v63 = vpop.f32.mrf.mxu1  ;;  %v7645_v21 = vadd.f32 %v1420_v61, %v1406_v60  ;;  %v1561_v60 = vmul.f32 %v1538_v54, %v7616_v58 }
 0x27a   : > { %v7622_v0 = vadd.f32 %v1446_v63, %v1432_v62 }
 0x27b   : > { %v1599_v24 = vsub.f32 0.0, %v7645_v21 }
 0x27c   : > { %1580 = vrot.lane.b32.xlu0 %v7622_v0, %s7007_s12  ;;  %v1568_v1 = vsub.f32 0.0, %v7622_v0 }
 0x27e   : > { %1572 = vrot.lane.b32.xlu2 %v1568_v1, %s7007_s12 }
 0x280   : > { %v1460_v3 = vpop.f32.mrf.mxu2  ;;  %v1474_v6 = vpop.f32.mrf.mxu3 }
 0x281   : > { %v1434_v9 = vpop.f32.mrf.mxu0  ;;  %v1448_v10 = vpop.f32.mrf.mxu1  ;;  %v7630_v11 = vadd.f32 %v1474_v6, %v1460_v3 }
 0x282   : > { %v7628_v12 = vadd.f32 %v1448_v10, %v1434_v9 }
 0x283   : > { %v1626_v19 = vsub.f32 0.0, %v7630_v11 }
 0x284   : > { %1582 = vrot.lane.b32.xlu1 %v7628_v12, %s7007_s12  ;;  %v1569_v30 = vsub.f32 0.0, %v7628_v12 }
 0x286   : > { %1638 = vrot.lane.b32.xlu2 %v7630_v11, %s7007_s12 }
 0x288   : > { %v1462_v14 = vpop.f32.mrf.mxu2  ;;  %v1476_v20 = vpop.f32.mrf.mxu3 }
 0x289   : > { %v7638_v15 = vadd.f32 %v1476_v20, %v1462_v14 }
 0x28a   : > { %v1488_v16 = vpop.f32.mrf.mxu0  ;;  %v1502_v17 = vpop.f32.mrf.mxu1 }
 0x28b   : > { %1640 = vrot.lane.b32.xlu0 %v7638_v15, %s7007_s12  ;;  %v1503_v22 = vadd.f32 %v1502_v17, %v1488_v16  ;;  %v1627_v39 = vsub.f32 0.0, %v7638_v15  ;;  %v1588_v16 = vmul.f32 %v1537_v50, %v7622_v0 }
 0x28c   : > { %1602 = vrot.lane.b32.xlu1 %v1598_v18, %s7007_s12 }
 0x28d   : > { %v1596_v28 = vpack.c.bf16 %v1503_v22, %v1503_v22  ;;  %v1589_v22 = vmul.f32 %v1538_v54, %v7628_v12 }
 0x28e   : > { %1630 = vrot.lane.b32.xlu2 %v1626_v19, %s7007_s12 }
 0x28f   : > { %v1818_v32 = vunpack.c.l.b16 %v1596_v28  ;;  %v1646_v28 = vmul.f32 %v1537_v50, %v7630_v11 }
 0x291   : > { %v1516_v4 = vpop.f32.mrf.mxu2  ;;  %v1530_v23 = vpop.f32.mrf.mxu3 }
 0x292   : > { %v1490_v25 = vpop.f32.mrf.mxu0  ;;  %v1504_v27 = vpop.f32.mrf.mxu1  ;;  %v1531_v7 = vadd.f32 %v1530_v23, %v1516_v4 }
 0x293   : > { %v1505_v29 = vadd.f32 %v1504_v27, %v1490_v25  ;;  %1604 = vrot.lane.b32.xlu0 %v1599_v24, %s7007_s12 }
 0x294   : > { %1612 = vrot.lane.b32.xlu1 %v7645_v21, %s7007_s12  ;;  %v1654_v36 = vpack.c.bf16 %v1531_v7, %v1531_v7 }
 0x295   : > { %v1597_v31 = vpack.c.bf16 %v1505_v29, %v1505_v29 }
 0x296   : > { %1574 = vrot.lane.b32.xlu2 %v1569_v30, %s7007_s12  ;;  %v1846_v40 = vunpack.c.l.b16 %v1654_v36 }
 0x297   : > { %v1819_v33 = vunpack.c.l.b16 %v1597_v31 }
 0x299   : > { %v1820_v8 = vpack.c.b16 %v1819_v33, %v1818_v32  ;;  %v1518_v34 = vpop.f32.mrf.mxu2  ;;  %v1532_v35 = vpop.f32.mrf.mxu3 }
 0x29a   : > { %v1533_v37 = vadd.f32 %v1532_v35, %v1518_v34 }
 0x29b   : > { %1832 = vmatpush.bf16.msrb.mxu2 %v1820_v8  ;;  %v1647_v8 = vmul.f32 %v1538_v54, %v7638_v15 }
 0x29c   : > { %v1655_v38 = vpack.c.bf16 %v1533_v37, %v1533_v37 }
 0x29e   : > { %v1847_v41 = vunpack.c.l.b16 %v1655_v38  ;;  %1632 = vrot.lane.b32.xlu2 %v1627_v39, %s7007_s12 }
 0x2a0   : > { %v1848_v42 = vpack.c.b16 %v1847_v41, %v1846_v40  ;;  %v1618_v40 = vmul.f32 %v1537_v50, %v7634_v13 }
 0x2a2   : > { %1860 = vmatpush.bf16.msrb.mxu3 %v1848_v42 }
 0x2a6   : > { %1610 = vrot.lane.b32.xlu2 %v7634_v13, %s7007_s12  ;;  %v1656_v13 = vld [vmem:[%s8655_s18] sm:$0xff] }
 0x2c8   : > { %v1544_v43 = vpop.permute.xlu2 %1543 }
 0x2d0   : > { %v1554_v44 = vpop.permute.xlu2 %1553 }
 0x2d8   : > { %v1573_v45 = vpop.permute.xlu2 %1572 }
 0x2de   : > { %v1552_v46 = vpop.permute.xlu0 %1551 }
 0x2df   : > { %v1558_v49 = vsel %vm1557_vm7, %v1544_v43, %v1552_v46 }
 0x2e0   : > { %v1639_v47 = vpop.permute.xlu2 %1638  ;;  %v1562_v51 = vmul.f32 %v1558_v49, %v1535_v48 }
 0x2e2   : > { %v1564_v2 = vadd.f32 %v1562_v51, %v1560_v52 }
 0x2e4   : > { %v1566_v62 = vpack.c.bf16 %v1564_v2, %v1564_v2 }
 0x2e6   : > { %v1660_v6 = vunpack.c.l.b16 %v1566_v62 }
 0x2e8   : > { %v1631_v56 = vpop.permute.xlu2 %1630  ;;  %v1546_v57 = vpop.permute.xlu1 %1545 }
 0x2e9   : > { %v1559_v59 = vsel %vm1557_vm7, %v1546_v57, %v1554_v44  ;;  %v1644_v17 = vsel %vm1557_vm7, %v1631_v56, %v1639_v47  ;;  %v1619_v47 = vmul.f32 %v1538_v54, %v7645_v21  ;;  %v1657_v21 = vld [vmem:[%s8655_s18 + $0x8] sm:$0xff] }
 0x2ea   : > { %v1563_v61 = vmul.f32 %v1559_v59, %v1536_v55  ;;  %v1648_v24 = vmul.f32 %v1644_v17, %v1535_v48 }
 0x2ec   : > { %v1565_v63 = vadd.f32 %v1563_v61, %v1561_v60  ;;  %v1650_v30 = vadd.f32 %v1648_v24, %v1646_v28 }
 0x2ee   : > { %v1567_v1 = vpack.c.bf16 %v1565_v63, %v1565_v63  ;;  %v1581_v53 = vpop.permute.xlu0 %1580  ;;  %v1652_v36 = vpack.c.bf16 %v1650_v30, %v1650_v30 }
 0x2ef   : > { %v1586_v3 = vsel %vm1557_vm7, %v1573_v45, %v1581_v53 }
 0x2f0   : > { %v1661_v9 = vunpack.c.l.b16 %v1567_v1  ;;  %v1575_v10 = vpop.permute.xlu2 %1574  ;;  %v1590_v14 = vmul.f32 %v1586_v3, %v1535_v48  ;;  %v1692_v41 = vunpack.c.l.b16 %v1652_v36 }
 0x2f2   : > { %v1662_v20 = vpack.c.b16 %v1661_v9, %v1660_v6  ;;  %v1592_v18 = vadd.f32 %v1590_v14, %v1588_v16 }
 0x2f4   : > { %v1594_v25 = vpack.c.bf16 %v1592_v18, %v1592_v18 }
 0x2f6   : > { %v1583_v19 = vpop.permute.xlu1 %1582  ;;  %v1666_v7 = vunpack.c.l.b16 %v1594_v25 }
 0x2f7   : > { %v1587_v58 = vsel %vm1557_vm7, %v1575_v10, %v1583_v19 }
 0x2f8   : > { %v1591_v4 = vmul.f32 %v1587_v58, %v1536_v55  ;;  %v1633_v23 = vpop.permute.xlu2 %1632 }
 0x2fa   : > { %v1593_v27 = vadd.f32 %v1591_v4, %v1589_v22 }
 0x2fc   : > { %v1595_v29 = vpack.c.bf16 %v1593_v27, %v1593_v27 }
 0x2fd   : > { %v1641_v31 = vpop.permute.xlu0 %1640 }
 0x2fe   : > { %v1667_v0 = vunpack.c.l.b16 %v1595_v29  ;;  %v1645_v32 = vsel %vm1557_vm7, %v1633_v23, %v1641_v31  ;;  %v1603_v33 = vpop.permute.xlu1 %1602 }
 0x2ff   : > { %v1649_v34 = vmul.f32 %v1645_v32, %v1536_v55 }
 0x300   : > { %v1611_v35 = vpop.permute.xlu2 %1610  ;;  %v1668_v12 = vpack.c.b16 %v1667_v0, %v1666_v7 }
 0x301   : > { %v1651_v37 = vadd.f32 %v1649_v34, %v1647_v8  ;;  %v1616_v38 = vsel %vm1557_vm7, %v1603_v33, %v1611_v35 }
 0x302   : > { %v1620_v39 = vmul.f32 %v1616_v38, %v1535_v48  ;;  %1677 = vmatpush.bf16.xpose.msrb.mxu0 %v1668_v12 }
 0x303   : > { %v1653_v11 = vpack.c.bf16 %v1651_v37, %v1651_v37 }
 0x304   : > { %v1622_v43 = vadd.f32 %v1620_v39, %v1618_v40  ;;  %v5037_v39 = vld [vmem:[%s7312_s20 + $0x70] sm:$0xf] }
 0x305   : > { %v1693_v42 = vunpack.c.l.b16 %v1653_v11  ;;  %v1605_v44 = vpop.permute.xlu0 %1604 }
 0x306   : > { %v1613_v45 = vpop.permute.xlu1 %1612  ;;  %v1624_v51 = vpack.c.bf16 %v1622_v43, %v1622_v43 }
 0x307   : > { %v1617_v46 = vsel %vm1557_vm7, %v1605_v44, %v1613_v45  ;;  %v1694_v15 = vpack.c.b16 %v1693_v42, %v1692_v41  ;;  %v6250_v41 = vld [vmem:[%s7312_s20 + $0x74] sm:$0xf0]  ;;  %v6249_v42 = vld [vmem:[%s7312_s20 + $0x74] sm:$0xf]  ;;  %v5039_v45 = vld [vmem:[%s7312_s20 + $0x78] sm:$0xf0] }
 0x308   : > { %v1621_v49 = vmul.f32 %v1617_v46, %v1536_v55  ;;  %v1686_v2 = vunpack.c.l.b16 %v1624_v51  ;;  %v5038_v44 = vor.u32 %v6250_v41, %v5037_v39  ;;  %v5029_v46 = vld [vmem:[%s7312_s20 + $0x60] sm:$0xf]  ;;  %v6247_v51 = vld [vmem:[%s7312_s20 + $0x64] sm:$0xf]  ;;  %v5085_v41 = vld [vmem:[%s7312_s20 + $0xd0] sm:$0xf] }
 0x309   : > { %1703 = vmatpush.bf16.xpose.msrb.mxu1 %v1694_v15  ;;  %1678 = vmatmul.bf16.vlgmr.msrb.gmra.mxu0 %v1662_v20 }
 0x30a   : > { %v1623_v52 = vadd.f32 %v1621_v49, %v1619_v47  ;;  %v5042_v47 = vor.u32 %v6249_v42, %v5039_v45  ;;  %v6248_v49 = vld [vmem:[%s7312_s20 + $0x64] sm:$0xf0]  ;;  %2061 = vmatpush.bf16.msra.mxu0 %v5038_v44  ;;  %v6262_v42 = vld [vmem:[%s7312_s20 + $0xd4] sm:$0xf0] }
 0x30c   : > { %v1625_v48 = vpack.c.bf16 %v1623_v52, %v1623_v52  ;;  %v5031_v52 = vld [vmem:[%s7312_s20 + $0x68] sm:$0xf0]  ;;  %2089 = vmatpush.bf16.msra.mxu2 %v5042_v47  ;;  %v6261_v47 = vld [vmem:[%s7312_s20 + $0xd4] sm:$0xf] }
 0x30e   : > { %v1687_v56 = vunpack.c.l.b16 %v1625_v48 }
 0x310   : > { %v1688_v57 = vpack.c.b16 %v1687_v56, %v1686_v2 }
 0x312   : > { %1704 = vmatmul.bf16.vlgmr.msrb.gmra.mxu1 %v1688_v57 }
 0x386   : > { %v1679_v50 = vpop.f32.mrf.mxu0 }
 0x387   : > { %v1680_v59 = vadd.f32 %v1679_v50, %v1656_v13  ;;  %v5021_v50 = vld [vmem:[%s7312_s20 + $0x50] sm:$0xf] }
 0x389   : > { %v1711_v60 = vsel %vm1710_vm8, %v1680_v59, -inf }
 0x38a   : > { %1712 = vmax.xlane.f32.xlu0 %v1711_v60 }
 0x38e   : > { %v1681_v54 = vpop.f32.mrf.mxu0 }
 0x38f   : > { %v1682_v55 = vadd.f32 %v1681_v54, %v1657_v21  ;;  %v1705_v61 = vpop.f32.mrf.mxu1 }
 0x390   : > { %v1706_v62 = vadd.f32 %v1705_v61, %v1656_v13  ;;  %v5030_v13 = vor.u32 %v6248_v49, %v5029_v46  ;;  %v5034_v61 = vor.u32 %v6247_v51, %v5031_v52  ;;  %v5087_v49 = vld [vmem:[%s7312_s20 + $0xd8] sm:$0xf0] }
 0x391   : > { %v1714_v63 = vsel %vm1710_vm8, %v1682_v55, -inf }
 0x392   : > { %1715 = vmax.xlane.f32.xlu2 %v1714_v63  ;;  %v1717_v1 = vsel %vm1710_vm8, %v1706_v62, -inf  ;;  %v5101_v63 = vld [vmem:[%s7312_s20 + $0xf0] sm:$0xf]  ;;  %2062 = vmatpush.bf16.msra.mxu0 %v5030_v13  ;;  %v5086_v13 = vor.u32 %v6262_v42, %v5085_v41  ;;  %v4981_v41 = vld [vmem:[%s7312_s20] sm:$0xf] }
 0x393   : > { %1718 = vmax.xlane.f32.xlu1 %v1717_v1  ;;  %v6266_v1 = vld [vmem:[%s7312_s20 + $0xf4] sm:$0xf0]  ;;  %2090 = vmatpush.bf16.msra.mxu2 %v5034_v61  ;;  %v6255_v42 = vld [vmem:[%s7312_s20 + $0xa4] sm:$0xf] }
 0x397   : > { %v1707_v53 = vpop.f32.mrf.mxu1 }
 0x398   : > { %v1708_v3 = vadd.f32 %v1707_v53, %v1657_v21 }
 0x39a   : > { %v1720_v6 = vsel %vm1710_vm8, %v1708_v3, -inf }
 0x39b   : > { %1721 = vmax.xlane.f32.xlu0 %v1720_v6  ;;  %v5023_v6 = vld [vmem:[%s7312_s20 + $0x58] sm:$0xf0] }
 0x3fd   : > { %v1713_v9 = vpop.xlane.xlu0 %1712 }
 0x3fe   : > { %v1723_v10 = vsub.f32 %v1680_v59, %v1713_v9  ;;  %v6246_v59 = vld [vmem:[%s7312_s20 + $0x54] sm:$0xf0]  ;;  %v6265_v9 = vld [vmem:[%s7312_s20 + $0xf4] sm:$0xf] }
 0x400   : > { %v1727_v14 = vmul.f32 1.442695, %v1723_v10  ;;  %v5103_v10 = vld [vmem:[%s7312_s20 + $0xf8] sm:$0xf0] }
 0x402   : > { %6622 = vpow2.f32 %v1727_v14 }
 0x405   : > { %v1716_v20 = vpop.xlane.xlu2 %1715 }
 0x406   : > { %v1724_v16 = vsub.f32 %v1682_v55, %v1716_v20  ;;  %v1719_v17 = vpop.xlane.xlu1 %1718  ;;  %v6260_v55 = vld [vmem:[%s7312_s20 + $0xc4] sm:$0xf0] }
 0x407   : > { %v1725_v18 = vsub.f32 %v1706_v62, %v1719_v17  ;;  %v6245_v62 = vld [vmem:[%s7312_s20 + $0x54] sm:$0xf] }
 0x408   : > { %v7696_v19 = vpop.eup %6622  ;;  %v1729_v58 = vmul.f32 1.442695, %v1724_v16  ;;  %v5022_v16 = vor.u32 %v6246_v59, %v5021_v50 }
 0x409   : > { %v1731_v22 = vmul.f32 1.442695, %v1725_v18  ;;  %v1735_v4 = vsel %vm1710_vm8, %v7696_v19, 0.0 }
 0x40a   : > { %6624 = vpow2.f32 %v1729_v58  ;;  %1736 = vadd.xlane.f32.xlu2 %v1735_v4  ;;  %v5013_v4 = vld [vmem:[%s7312_s20 + $0x40] sm:$0xf]  ;;  %2063 = vmatpush.bf16.msra.mxu0 %v5022_v16 }
 0x40b   : > { %6626 = vpow2.f32 %v1731_v22  ;;  %v5102_v22 = vor.u32 %v6266_v1, %v5101_v63  ;;  %v5079_v63 = vld [vmem:[%s7312_s20 + $0xc8] sm:$0xf0] }
 0x40d   : > { %2075 = vmatpush.bf16.msra.mxu1 %v5102_v22  ;;  %v5069_v22 = vld [vmem:[%s7312_s20 + $0xb0] sm:$0xf] }
 0x40e   : > { %v1722_v23 = vpop.xlane.xlu0 %1721 }
 0x40f   : > { %v1726_v24 = vsub.f32 %v1708_v3, %v1722_v23  ;;  %v6244_v23 = vld [vmem:[%s7312_s20 + $0x44] sm:$0xf0] }
 0x410   : > { %v7700_v25 = vpop.eup %6624 }
 0x411   : > { %v7702_v27 = vpop.eup %6626  ;;  %v1733_v28 = vmul.f32 1.442695, %v1726_v24  ;;  %v1738_v29 = vsel %vm1710_vm8, %v7700_v25, 0.0 }
 0x412   : > { %1739 = vadd.xlane.f32.xlu1 %v1738_v29  ;;  %v1741_v30 = vsel %vm1710_vm8, %v7702_v27, 0.0  ;;  %v5106_v29 = vor.u32 %v6265_v9, %v5103_v10  ;;  %v4997_v9 = vld [vmem:[%s7312_s20 + $0x20] sm:$0xf]  ;;  %v6240_v10 = vld [vmem:[%s7312_s20 + $0x24] sm:$0xf0] }
 0x413   : > { %6628 = vpow2.f32 %v1733_v28  ;;  %1742 = vadd.xlane.f32.xlu0 %v1741_v30  ;;  %v5026_v28 = vor.u32 %v6245_v62, %v5023_v6  ;;  %v6243_v30 = vld [vmem:[%s7312_s20 + $0x44] sm:$0xf] }
 0x414   : > { %2103 = vmatpush.bf16.msra.mxu3 %v5106_v29  ;;  %v6259_v62 = vld [vmem:[%s7312_s20 + $0xc4] sm:$0xf]  ;;  %v6257_v29 = vld [vmem:[%s7312_s20 + $0xb4] sm:$0xf] }
 0x415   : > { %2091 = vmatpush.bf16.msra.mxu2 %v5026_v28  ;;  %v4998_v28 = vor.u32 %v6240_v10, %v4997_v9  ;;  %v5303_v9 = vld [vmem:[%s7320_s24 + $0x1a0] sm:$0xf0] }
 0x419   : > { %v7708_v31 = vpop.eup %6628 }
 0x41a   : > { %v1744_v7 = vsel %vm1710_vm8, %v7708_v31, 0.0 }
 0x41b   : > { %1745 = vadd.xlane.f32.xlu2 %v1744_v7  ;;  %v5093_v7 = vld [vmem:[%s7312_s20 + $0xe0] sm:$0xf] }
 0x47d   : > { %v1737_v0 = vpop.xlane.xlu2 %1736 }
 0x47e   : > { %6630 = vrcp.f32 %v1737_v0  ;;  %v1756_v33 = vand.u32 2147483647, %v1737_v0  ;;  %v1758_v37 = vand.u32 2147483648, %v1737_v0  ;;  %vm1752_vm11 = vweird.f32 %v1737_v0 }
 0x480   : > { %vm7715_vm9 = vcmp.eq.f32.partialorder %v1756_v33, 8.507059e+37  ;;  %v1759_v56 = vor.u32 1.1754944e-38, %v1758_v37  ;;  %v5015_v33 = vld [vmem:[%s7312_s20 + $0x48] sm:$0xf0] }
 0x481   : > { %v5018_v46 = vor.u32 %v6243_v30, %v5015_v33  ;;  %v5071_v30 = vld [vmem:[%s7312_s20 + $0xb8] sm:$0xf0]  ;;  %v6238_v33 = vld [vmem:[%s7312_s20 + $0x14] sm:$0xf0] }
 0x482   : > { %v5074_v37 = vor.u32 %v6257_v29, %v5071_v30  ;;  %v6307_v30 = vld [vmem:[%s7320_s24 + $0x144] sm:$0xf] }
 0x483   : > { %2092 = vmatpush.bf16.msra.mxu2 %v5018_v46  ;;  %v6236_v46 = vld [vmem:[%s7312_s20 + $0x4] sm:$0xf0] }
 0x484   : > { %v6631_v32 = vpop.eup %6630 }
 0x485   : > { %v1748_v8 = vmul.f32 %v6631_v32, %v1737_v0  ;;  %v1740_v34 = vpop.xlane.xlu1 %1739  ;;  %vm1753_vm10 = vweird.f32 %v6631_v32  ;;  %v6264_v0 = vld [vmem:[%s7312_s20 + $0xe4] sm:$0xf0] }
 0x486   : > { %6632 = vrcp.f32 %v1740_v34  ;;  %v7712_v35 = vpop.xlane.xlu0 %1742  ;;  %v1773_v38 = vand.u32 2147483648, %v1740_v34  ;;  %v1771_v40 = vand.u32 2147483647, %v1740_v34  ;;  %vm7731_vm12 = vmor %vm1752_vm11, %vm1753_vm10  ;;  %vm1767_vm15 = vweird.f32 %v1740_v34 }
 0x487   : > { %v1749_v12 = vsub.f32 1.0, %v1748_v8  ;;  %6634 = vrcp.f32 %v7712_v35  ;;  %v1786_v43 = vand.u32 2147483647, %v7712_v35  ;;  %v1788_v20 = vand.u32 2147483648, %v7712_v35  ;;  %v6263_v8 = vld [vmem:[%s7312_s20 + $0xe4] sm:$0xf] }
 0x488   : > { %v7735_v57 = vor.u32 1.1754944e-38, %v1773_v38  ;;  %vm7745_vm14 = vcmp.eq.f32.partialorder %v1771_v40, 8.507059e+37  ;;  %vm1782_vm2 = vweird.f32 %v7712_v35  ;;  %v5094_v38 = vor.u32 %v6264_v0, %v5093_v7 }
 0x489   : > { %v1750_v11 = vmul.f32 %v6631_v32, %v1749_v12  ;;  %v5014_v40 = vor.u32 %v6244_v23, %v5013_v4  ;;  %vm1787_vm4 = vcmp.eq.f32.partialorder %v1786_v43, 8.507059e+37  ;;  %v6258_v4 = vld [vmem:[%s7312_s20 + $0xb4] sm:$0xf0] }
 0x48a   : > { %2076 = vmatpush.bf16.msra.mxu1 %v5094_v38  ;;  %v5061_v38 = vld [vmem:[%s7312_s20 + $0xa0] sm:$0xf] }
 0x48b   : > { %v1751_v15 = vadd.f32 %v6631_v32, %v1750_v11  ;;  %2064 = vmatpush.bf16.msra.mxu0 %v5014_v40 }
 0x48c   : > { %v7728_v48 = vpop.eup %6632 }
 0x48d   : > { %v7739_v60 = vpop.eup %6634  ;;  %v1755_v21 = vsel %vm7731_vm12, %v6631_v32, %v1751_v15  ;;  %v1763_v54 = vmul.f32 %v7728_v48, %v1740_v34  ;;  %vm1768_vm13 = vweird.f32 %v7728_v48  ;;  %v5095_v34 = vld [vmem:[%s7312_s20 + $0xe8] sm:$0xf0]  ;;  %v6242_v15 = vld [vmem:[%s7312_s20 + $0x34] sm:$0xf0] }
 0x48e   : > { %v1778_v53 = vmul.f32 %v7739_v60, %v7712_v35  ;;  %v7754_v3 = vpop.xlane.xlu2 %1745  ;;  %v1760_v17 = vsel %vm7715_vm9, %v1759_v56, %v1755_v21  ;;  %vm7765_vm0 = vmor %vm1767_vm15, %vm1768_vm13  ;;  %vm1783_vm1 = vweird.f32 %v7739_v60  ;;  %v5098_v39 = vor.u32 %v6263_v8, %v5095_v34  ;;  %v5007_v56 = vld [vmem:[%s7312_s20 + $0x38] sm:$0xf0]  ;;  %2077 = vmatpush.bf16.msra.mxu1 %v5086_v13  ;;  %v5053_v13 = vld [vmem:[%s7312_s20 + $0x90] sm:$0xf] }
 0x48f   : > { %v1764_v14 = vsub.f32 1.0, %v1763_v54  ;;  %6636 = vrcp.f32 %v7754_v3  ;;  %v1761_v12 = vmul.f32 %v7696_v19, %v1760_v17  ;;  %vm7785_vm3 = vmor %vm1782_vm2, %vm1783_vm1  ;;  %v5005_v19 = vld [vmem:[%s7312_s20 + $0x30] sm:$0xf]  ;;  %v1789_v21 = vor.u32 1.1754944e-38, %v1788_v20  ;;  %v5077_v54 = vld [vmem:[%s7312_s20 + $0xc0] sm:$0xf] }
 0x490   : > { %v1779_v58 = vsub.f32 1.0, %v1778_v53  ;;  %2104 = vmatpush.bf16.msra.mxu3 %v5098_v39  ;;  %v5006_v61 = vor.u32 %v6242_v15, %v5005_v19  ;;  %v1801_v43 = vand.u32 2147483647, %v7754_v3  ;;  %v4999_v20 = vld [vmem:[%s7312_s20 + $0x28] sm:$0xf0]  ;;  %v5078_v16 = vor.u32 %v6260_v55, %v5077_v54 }
 0x491   : > { %v1765_v24 = vmul.f32 %v7728_v48, %v1764_v14  ;;  %v1807_v50 = vpack.c.bf16 %v1761_v12, %v1761_v12  ;;  %v6239_v14 = vld [vmem:[%s7312_s20 + $0x24] sm:$0xf]  ;;  %vm1797_vm6 = vweird.f32 %v7754_v3  ;;  %v4991_v34 = vld [vmem:[%s7312_s20 + $0x18] sm:$0xf0]  ;;  %v5070_v12 = vor.u32 %v6258_v4, %v5069_v22  ;;  %v6256_v39 = vld [vmem:[%s7312_s20 + $0xa4] sm:$0xf0] }
 0x492   : > { %v1780_v32 = vmul.f32 %v7739_v60, %v1779_v58  ;;  %v5082_v58 = vor.u32 %v6259_v62, %v5079_v63  ;;  %2065 = vmatpush.bf16.msra.mxu0 %v5006_v61  ;;  %vm1802_vm9 = vcmp.eq.f32.partialorder %v1801_v43, 8.507059e+37  ;;  %2078 = vmatpush.bf16.msra.mxu1 %v5078_v16  ;;  %v6235_v15 = vld [vmem:[%s7312_s20 + $0x4] sm:$0xf]  ;;  %v6253_v54 = vld [vmem:[%s7312_s20 + $0x94] sm:$0xf] }
 0x493   : > { %v1766_v36 = vadd.f32 %v7728_v48, %v1765_v24  ;;  %v1813_v17 = vunpack.c.l.b16 %v1807_v50  ;;  %v6254_v50 = vld [vmem:[%s7312_s20 + $0x94] sm:$0xf0]  ;;  %v5055_v55 = vld [vmem:[%s7312_s20 + $0x98] sm:$0xf0]  ;;  %v5301_v62 = vld [vmem:[%s7320_s24 + $0x180] sm:$0xf] }
 0x494   : > { %v1781_v11 = vadd.f32 %v7739_v60, %v1780_v32  ;;  %v5002_v32 = vor.u32 %v6239_v14, %v4999_v20  ;;  %v5058_v10 = vor.u32 %v6253_v54, %v5055_v55  ;;  %v6252_v43 = vld [vmem:[%s7312_s20 + $0x84] sm:$0xf0]  ;;  %v6251_v14 = vld [vmem:[%s7312_s20 + $0x84] sm:$0xf]  ;;  %v5047_v20 = vld [vmem:[%s7312_s20 + $0x88] sm:$0xf0] }
 0x495   : > { %v7793_v44 = vpop.eup %6636  ;;  %v1770_v45 = vsel %vm7765_vm0, %v7728_v48, %v1766_v36  ;;  %v6241_v48 = vld [vmem:[%s7312_s20 + $0x34] sm:$0xf]  ;;  %v5589_v16 = vld [vmem:[%s7320_s24 + $0x3c0] sm:$0xf]  ;;  %v5591_v22 = vld [vmem:[%s7320_s24 + $0x3e0] sm:$0xf0]  ;;  %v5050_v29 = vor.u32 %v6251_v14, %v5047_v20 }
 0x496   : > { %v1775_v51 = vsel %vm7745_vm14, %v7735_v57, %v1770_v45  ;;  %v1785_v52 = vsel %vm7785_vm3, %v7739_v60, %v1781_v11  ;;  %v1793_v2 = vmul.f32 %v7793_v44, %v7754_v3  ;;  %v5090_v57 = vor.u32 %v6261_v47, %v5087_v49  ;;  %2066 = vmatpush.bf16.msra.mxu0 %v4998_v28  ;;  %v4983_v47 = vld [vmem:[%s7312_s20 + $0x8] sm:$0xf0]  ;;  %v6311_v28 = vld [vmem:[%s7320_s24 + $0x15c] sm:$0xf0]  ;;  %v6355_v14 = vld [vmem:[%s7320_s24 + $0x2c4] sm:$0xf] }
 0x497   : > { %v1776_v59 = vmul.f32 %v7700_v25, %v1775_v51  ;;  %v1790_v53 = vsel %vm1787_vm4, %v1789_v21, %v1785_v52  ;;  %v1803_v25 = vand.u32 2147483648, %v7754_v3  ;;  %v5010_v6 = vor.u32 %v6241_v48, %v5007_v56  ;;  %v6237_v3 = vld [vmem:[%s7312_s20 + $0x14] sm:$0xf]  ;;  %2079 = vmatpush.bf16.msra.mxu1 %v5070_v12  ;;  %v6327_v52 = vld [vmem:[%s7320_s24 + $0x1dc] sm:$0xf0] }
 0x498   : > { %v1794_v60 = vsub.f32 1.0, %v1793_v2  ;;  %vm1798_vm5 = vweird.f32 %v7793_v44  ;;  %2105 = vmatpush.bf16.msra.mxu3 %v5090_v57  ;;  %v1791_v23 = vmul.f32 %v7702_v27, %v1790_v53  ;;  %v4989_v27 = vld [vmem:[%s7312_s20 + $0x10] sm:$0xf]  ;;  %v4994_v45 = vor.u32 %v6237_v3, %v4991_v34  ;;  %v6323_v2 = vld [vmem:[%s7320_s24 + $0x1c4] sm:$0xf] }
 0x499   : > { %v1808_v1 = vpack.c.bf16 %v1776_v59, %v1776_v59  ;;  %vm1799_vm7 = vmor %vm1797_vm6, %vm1798_vm5  ;;  %v1804_v7 = vor.u32 1.1754944e-38, %v1803_v25  ;;  %2093 = vmatpush.bf16.msra.mxu2 %v5010_v6  ;;  %v4990_v19 = vor.u32 %v6238_v33, %v4989_v27  ;;  %v5062_v51 = vor.u32 %v6256_v39, %v5061_v38  ;;  %v5335_v56 = vld [vmem:[%s7320_s24 + $0x1e0] sm:$0xf0]  ;;  %v6319_v25 = vld [vmem:[%s7320_s24 + $0x19c] sm:$0xf0] }
 0x49a   : > { %v1795_v35 = vmul.f32 %v7793_v44, %v1794_v60  ;;  %v1809_v11 = vpack.c.bf16 %v1791_v23, %v1791_v23  ;;  %v4982_v57 = vor.u32 %v6236_v46, %v4981_v41  ;;  %v4986_v60 = vor.u32 %v6235_v15, %v4983_v47  ;;  %v6315_v6 = vld [vmem:[%s7320_s24 + $0x184] sm:$0xf]  ;;  %v5557_v27 = vld [vmem:[%s7320_s24 + $0x380] sm:$0xf] }
 0x49b   : > { %v1814_v18 = vunpack.c.l.b16 %v1808_v1  ;;  %2067 = vmatpush.bf16.msra.mxu0 %v4990_v19  ;;  %2080 = vmatpush.bf16.msra.mxu1 %v5062_v51  ;;  %v5338_v1 = vor.u32 %v6323_v2, %v5335_v56  ;;  %v5054_v53 = vor.u32 %v6254_v50, %v5053_v13  ;;  %v5306_v4 = vor.u32 %v6315_v6, %v5303_v9  ;;  %v6383_v33 = vld [vmem:[%s7320_s24 + $0x39c] sm:$0xf0]  ;;  %v6379_v3 = vld [vmem:[%s7320_s24 + $0x384] sm:$0xf] }
 0x49c   : > { %v1796_v24 = vadd.f32 %v7793_v44, %v1795_v35  ;;  %2106 = vmatpush.bf16.msra.mxu3 %v5082_v58  ;;  %v1841_v59 = vunpack.c.l.b16 %v1809_v11  ;;  %v5045_v35 = vld [vmem:[%s7312_s20 + $0x80] sm:$0xf]  ;;  %v6387_v58 = vld [vmem:[%s7320_s24 + $0x3c4] sm:$0xf]  ;;  %v5558_v11 = vor.u32 %v6383_v33, %v5557_v27 }
 0x49d   : > { %v1815_v0 = vpack.c.b16 %v1814_v18, %v1813_v17  ;;  %2094 = vmatpush.bf16.msra.mxu2 %v5002_v32  ;;  %v6391_v17 = vld [vmem:[%s7320_s24 + $0x3dc] sm:$0xf0]  ;;  %v5302_v18 = vor.u32 %v6319_v25, %v5301_v62  ;;  %v5046_v23 = vor.u32 %v6252_v43, %v5045_v35  ;;  %v5594_v32 = vor.u32 %v6387_v58, %v5591_v22  ;;  %v5559_v34 = vld [vmem:[%s7320_s24 + $0x3a0] sm:$0xf0] }
 0x49e   : > { %v1800_v8 = vsel %vm1799_vm7, %v7793_v44, %v1796_v24  ;;  %v5063_v44 = vld [vmem:[%s7312_s20 + $0xa8] sm:$0xf0]  ;;  %v5269_v24 = vld [vmem:[%s7320_s24 + $0x140] sm:$0xf]  ;;  %v6299_v38 = vld [vmem:[%s7320_s24 + $0x104] sm:$0xf] }
 0x49f   : > { %v1805_v36 = vsel %vm1802_vm9, %v1804_v7, %v1800_v8  ;;  %4977 = vmatmul.msk.bf16.vlgmr.msrb.gmra.mxu2 %vm1710_vm8, %v1815_v0  ;;  %v5066_v48 = vor.u32 %v6255_v42, %v5063_v44  ;;  %2068 = vmatpush.bf16.msra.mxu0 %v4982_v57  ;;  %v5271_v7 = vld [vmem:[%s7320_s24 + $0x160] sm:$0xf0]  ;;  %v5590_v0 = vor.u32 %v6391_v17, %v5589_v16  ;;  %v5525_v19 = vld [vmem:[%s7320_s24 + $0x340] sm:$0xf] }
 0x4a0   : > { %v1806_v40 = vmul.f32 %v7708_v31, %v1805_v36  ;;  %v5333_v31 = vld [vmem:[%s7320_s24 + $0x1c0] sm:$0xf]  ;;  %2107 = vmatpush.bf16.msra.mxu3 %v5074_v37  ;;  %2081 = vmatpush.bf16.msra.mxu1 %v5054_v53  ;;  %v5270_v8 = vor.u32 %v6311_v28, %v5269_v24  ;;  %v5274_v12 = vor.u32 %v6307_v30, %v5271_v7  ;;  %v5239_v39 = vld [vmem:[%s7320_s24 + $0x120] sm:$0xf0] }
 0x4a1   : > { %2095 = vmatpush.bf16.msra.mxu2 %v4994_v45  ;;  %v5334_v61 = vor.u32 %v6327_v52, %v5333_v31  ;;  %v5237_v36 = vld [vmem:[%s7320_s24 + $0x100] sm:$0xf]  ;;  %v6371_v44 = vld [vmem:[%s7320_s24 + $0x344] sm:$0xf]  ;;  %v5242_v46 = vor.u32 %v6299_v38, %v5239_v39 }
 0x4a2   : > { %v1810_v49 = vpack.c.bf16 %v1806_v40, %v1806_v40  ;;  %v6303_v37 = vld [vmem:[%s7320_s24 + $0x11c] sm:$0xf0]  ;;  %v5562_v40 = vor.u32 %v6379_v3, %v5559_v34  ;;  %v5527_v45 = vld [vmem:[%s7320_s24 + $0x360] sm:$0xf0] }
 0x4a3   : > { %2903 = vmatpush.bf16.msrb.mxu0 %v5334_v61  ;;  %v6375_v41 = vld [vmem:[%s7320_s24 + $0x35c] sm:$0xf0]  ;;  %v5238_v42 = vor.u32 %v6303_v37, %v5237_v36  ;;  %v5207_v51 = vld [vmem:[%s7320_s24 + $0xe0] sm:$0xf0]  ;;  %v5530_v52 = vor.u32 %v6371_v44, %v5527_v45  ;;  %v6324_v44 = vld [vmem:[%s7320_s24 + $0x1cc] sm:$0xf] }
 0x4a4   : > { %v1842_v21 = vunpack.c.l.b16 %v1810_v49  ;;  %2108 = vmatpush.bf16.msra.mxu3 %v5066_v48  ;;  %2082 = vmatpush.bf16.msra.mxu1 %v5046_v23  ;;  %v5205_v15 = vld [vmem:[%s7320_s24 + $0xc0] sm:$0xf]  ;;  %v6291_v49 = vld [vmem:[%s7320_s24 + $0xc4] sm:$0xf]  ;;  %v5526_v31 = vor.u32 %v6375_v41, %v5525_v19  ;;  %v5341_v41 = vld [vmem:[%s7320_s24 + $0x1c8] sm:$0xf] }
 0x4a5   : > { %2096 = vmatpush.bf16.msra.mxu2 %v4986_v60  ;;  %v6295_v47 = vld [vmem:[%s7320_s24 + $0xdc] sm:$0xf0]  ;;  %v5210_v48 = vor.u32 %v6291_v49, %v5207_v51  ;;  %v6283_v50 = vld [vmem:[%s7320_s24 + $0x84] sm:$0xf]  ;;  %v5343_v45 = vld [vmem:[%s7320_s24 + $0x1e8] sm:$0xf0] }
 0x4a6   : > { %v1843_v63 = vpack.c.b16 %v1842_v21, %v1841_v59  ;;  %v5206_v2 = vor.u32 %v6295_v47, %v5205_v15  ;;  %v5173_v56 = vld [vmem:[%s7320_s24 + $0x80] sm:$0xf]  ;;  %v5175_v21 = vld [vmem:[%s7320_s24 + $0xa0] sm:$0xf0]  ;;  %v5346_v47 = vor.u32 %v6324_v44, %v5343_v45  ;;  %v5309_v49 = vld [vmem:[%s7320_s24 + $0x188] sm:$0xf] }
 0x4a7   : > { %2904 = vmatpush.bf16.msrb.mxu0 %v5302_v18  ;;  %v6287_v13 = vld [vmem:[%s7320_s24 + $0x9c] sm:$0xf0]  ;;  %v5178_v55 = vor.u32 %v6283_v50, %v5175_v21  ;;  %v6363_v61 = vld [vmem:[%s7320_s24 + $0x304] sm:$0xf]  ;;  %v5277_v50 = vld [vmem:[%s7320_s24 + $0x148] sm:$0xf] }
 0x4a8   : > { %4978 = vmatmul.msk.bf16.vlgmr.msrb.gmra.mxu3 %vm1710_vm8, %v1843_v63  ;;  %2917 = vmatpush.bf16.msrb.mxu1 %v5590_v0  ;;  %v5174_v59 = vor.u32 %v6287_v13, %v5173_v56  ;;  %v5493_v57 = vld [vmem:[%s7320_s24 + $0x300] sm:$0xf]  ;;  %v5495_v62 = vld [vmem:[%s7320_s24 + $0x320] sm:$0xf0]  ;;  %v6308_v21 = vld [vmem:[%s7320_s24 + $0x14c] sm:$0xf] }
 0x4a9   : > { %2931 = vmatpush.bf16.msrb.mxu2 %v5338_v1  ;;  %2109 = vmatpush.bf16.msra.mxu3 %v5058_v10  ;;  %v6367_v54 = vld [vmem:[%s7320_s24 + $0x31c] sm:$0xf0]  ;;  %v5498_v1 = vor.u32 %v6363_v61, %v5495_v62  ;;  %v6275_v25 = vld [vmem:[%s7320_s24 + $0x44] sm:$0xf]  ;;  %v5599_v61 = vld [vmem:[%s7320_s24 + $0x3e8] sm:$0xf0] }
 0x4aa   : > { %v5494_v60 = vor.u32 %v6367_v54, %v5493_v57  ;;  %v5141_v63 = vld [vmem:[%s7320_s24 + $0x40] sm:$0xf]  ;;  %v5143_v6 = vld [vmem:[%s7320_s24 + $0x60] sm:$0xf0]  ;;  %v5279_v57 = vld [vmem:[%s7320_s24 + $0x168] sm:$0xf0] }
 0x4ab   : > { %2905 = vmatpush.bf16.msrb.mxu0 %v5270_v8  ;;  %v6279_v53 = vld [vmem:[%s7320_s24 + $0x5c] sm:$0xf0]  ;;  %v5146_v10 = vor.u32 %v6275_v25, %v5143_v6  ;;  %v5463_v16 = vld [vmem:[%s7320_s24 + $0x2e0] sm:$0xf0]  ;;  %v5597_v54 = vld [vmem:[%s7320_s24 + $0x3c8] sm:$0xf] }
 0x4ac   : > { %2918 = vmatpush.bf16.msrb.mxu1 %v5558_v11  ;;  %v5142_v9 = vor.u32 %v6279_v53, %v5141_v63  ;;  %v5461_v35 = vld [vmem:[%s7320_s24 + $0x2c0] sm:$0xf]  ;;  %v5466_v17 = vor.u32 %v6355_v14, %v5463_v16  ;;  %v6267_v22 = vld [vmem:[%s7320_s24 + $0x4] sm:$0xf]  ;;  %v5282_v63 = vor.u32 %v6308_v21, %v5279_v57  ;;  %v6304_v25 = vld [vmem:[%s7320_s24 + $0x124] sm:$0xf0] }
 0x4ad   : > { %2932 = vmatpush.bf16.msrb.mxu2 %v5306_v4  ;;  %2110 = vmatpush.bf16.msra.mxu3 %v5050_v29  ;;  %v6359_v43 = vld [vmem:[%s7320_s24 + $0x2dc] sm:$0xf0]  ;;  %v5111_v23 = vld [vmem:[%s7320_s24 + $0x20] sm:$0xf0]  ;;  %v6300_v6 = vld [vmem:[%s7320_s24 + $0x10c] sm:$0xf] }
 0x4ae   : > { %v5462_v20 = vor.u32 %v6359_v43, %v5461_v35  ;;  %v5109_v18 = vld [vmem:[%s7320_s24] sm:$0xf]  ;;  %v5114_v29 = vor.u32 %v6267_v22, %v5111_v23  ;;  %v6347_v7 = vld [vmem:[%s7320_s24 + $0x284] sm:$0xf]  ;;  %v5565_v14 = vld [vmem:[%s7320_s24 + $0x388] sm:$0xf] }
 0x4af   : > { %2906 = vmatpush.bf16.msrb.mxu0 %v5238_v42  ;;  %v6271_v58 = vld [vmem:[%s7320_s24 + $0x1c] sm:$0xf0]  ;;  %v5431_v0 = vld [vmem:[%s7320_s24 + $0x2a0] sm:$0xf0]  ;;  %v6328_v42 = vld [vmem:[%s7320_s24 + $0x1e4] sm:$0xf0] }
 0x4b0   : > { %2919 = vmatpush.bf16.msrb.mxu1 %v5526_v31  ;;  %v5110_v4 = vor.u32 %v6271_v58, %v5109_v18  ;;  %v5429_v24 = vld [vmem:[%s7320_s24 + $0x280] sm:$0xf]  ;;  %v6339_v8 = vld [vmem:[%s7320_s24 + $0x244] sm:$0xf]  ;;  %v5342_v15 = vor.u32 %v6328_v42, %v5341_v41  ;;  %v6380_v16 = vld [vmem:[%s7320_s24 + $0x38c] sm:$0xf] }
 0x4b1   : > { %2945 = vmatpush.bf16.msrb.mxu3 %v5594_v32  ;;  %2933 = vmatpush.bf16.msrb.mxu2 %v5274_v12  ;;  %v6351_v28 = vld [vmem:[%s7320_s24 + $0x29c] sm:$0xf0]  ;;  %v5434_v32 = vor.u32 %v6347_v7, %v5431_v0  ;;  %v5399_v34 = vld [vmem:[%s7320_s24 + $0x260] sm:$0xf0]  ;;  %v5213_v22 = vld [vmem:[%s7320_s24 + $0xc8] sm:$0xf] }
 0x4b2   : > { %v5430_v30 = vor.u32 %v6351_v28, %v5429_v24  ;;  %v5397_v27 = vld [vmem:[%s7320_s24 + $0x240] sm:$0xf]  ;;  %v5402_v12 = vor.u32 %v6339_v8, %v5399_v34  ;;  %v6331_v38 = vld [vmem:[%s7320_s24 + $0x204] sm:$0xf]  ;;  %v6292_v23 = vld [vmem:[%s7320_s24 + $0xcc] sm:$0xf] }
 0x4b3   : > { %2907 = vmatpush.bf16.msrb.mxu0 %v5206_v2  ;;  %v6343_v33 = vld [vmem:[%s7320_s24 + $0x25c] sm:$0xf0]  ;;  %v5367_v11 = vld [vmem:[%s7320_s24 + $0x220] sm:$0xf0]  ;;  %v6316_v2 = vld [vmem:[%s7320_s24 + $0x18c] sm:$0xf] }
 0x4b4   : > { %2920 = vmatpush.bf16.msrb.mxu1 %v5494_v60  ;;  %v5398_v3 = vor.u32 %v6343_v33, %v5397_v27  ;;  %v5365_v36 = vld [vmem:[%s7320_s24 + $0x200] sm:$0xf]  ;;  %v6388_v60 = vld [vmem:[%s7320_s24 + $0x3cc] sm:$0xf]  ;;  %v6376_v7 = vld [vmem:[%s7320_s24 + $0x364] sm:$0xf0] }
 0x4b5   : > { %2946 = vmatpush.bf16.msrb.mxu3 %v5562_v40  ;;  %2934 = vmatpush.bf16.msrb.mxu2 %v5242_v46  ;;  %v6335_v37 = vld [vmem:[%s7320_s24 + $0x21c] sm:$0xf0]  ;;  %v5370_v40 = vor.u32 %v6331_v38, %v5367_v11  ;;  %v5602_v43 = vor.u32 %v6388_v60, %v5599_v61  ;;  %v5215_v24 = vld [vmem:[%s7320_s24 + $0xe8] sm:$0xf0]  ;;  %v5181_v8 = vld [vmem:[%s7320_s24 + $0x88] sm:$0xf] }
 0x4b6   : > { %v5366_v39 = vor.u32 %v6335_v37, %v5365_v36  ;;  %v6372_v0 = vld [vmem:[%s7320_s24 + $0x34c] sm:$0xf]  ;;  %v5218_v33 = vor.u32 %v6292_v23, %v5215_v24  ;;  %v5501_v38 = vld [vmem:[%s7320_s24 + $0x308] sm:$0xf]  ;;  %v5349_v57 = vld [vmem:[%s7320_s24 + $0x1d0] sm:$0xf] }
 0x4b7   : > { %2908 = vmatpush.bf16.msrb.mxu0 %v5174_v59  ;;  %v6312_v59 = vld [vmem:[%s7320_s24 + $0x164] sm:$0xf0]  ;;  %v6284_v34 = vld [vmem:[%s7320_s24 + $0x8c] sm:$0xf]  ;;  %v6329_v60 = vld [vmem:[%s7320_s24 + $0x1ec] sm:$0xf0] }
 0x4b8   : > { %2921 = vmatpush.bf16.msrb.mxu1 %v5462_v20  ;;  %v5278_v62 = vor.u32 %v6312_v59, %v5277_v50  ;;  %v6384_v20 = vld [vmem:[%s7320_s24 + $0x3a4] sm:$0xf0]  ;;  %v6364_v11 = vld [vmem:[%s7320_s24 + $0x30c] sm:$0xf]  ;;  %v6325_v61 = vld [vmem:[%s7320_s24 + $0x1d4] sm:$0xf] }
 0x4b9   : > { %2947 = vmatpush.bf16.msrb.mxu3 %v5530_v52  ;;  %2935 = vmatpush.bf16.msrb.mxu2 %v5210_v48  ;;  %v6320_v52 = vld [vmem:[%s7320_s24 + $0x1a4] sm:$0xf0]  ;;  %v5311_v48 = vld [vmem:[%s7320_s24 + $0x1a8] sm:$0xf0]  ;;  %v5566_v28 = vor.u32 %v6384_v20, %v5565_v14 }
 0x4ba   : > { %v5310_v56 = vor.u32 %v6320_v52, %v5309_v49  ;;  %v5314_v13 = vor.u32 %v6316_v2, %v5311_v48  ;;  %v5149_v42 = vld [vmem:[%s7320_s24 + $0x48] sm:$0xf]  ;;  %v6276_v45 = vld [vmem:[%s7320_s24 + $0x4c] sm:$0xf] }
 0x4bb   : > { %2909 = vmatpush.bf16.msrb.mxu0 %v5142_v9  ;;  %v5247_v9 = vld [vmem:[%s7320_s24 + $0x128] sm:$0xf0]  ;;  %v6280_v44 = vld [vmem:[%s7320_s24 + $0x64] sm:$0xf0] }
 0x4bc   : > { %2922 = vmatpush.bf16.msrb.mxu1 %v5430_v30  ;;  %v5250_v58 = vor.u32 %v6300_v6, %v5247_v9  ;;  %v5533_v30 = vld [vmem:[%s7320_s24 + $0x348] sm:$0xf]  ;;  %v5471_v52 = vld [vmem:[%s7320_s24 + $0x2e8] sm:$0xf0]  ;;  %v5150_v2 = vor.u32 %v6280_v44, %v5149_v42  ;;  %v5350_v9 = vor.u32 %v6329_v60, %v5349_v57  ;;  %v6377_v57 = vld [vmem:[%s7320_s24 + $0x36c] sm:$0xf0] }
 0x4bd   : > { %2936 = vmatpush.bf16.msrb.mxu2 %v5178_v55  ;;  %2948 = vmatpush.bf16.msrb.mxu3 %v5498_v1  ;;  %v6392_v55 = vld [vmem:[%s7320_s24 + $0x3e4] sm:$0xf0]  ;;  %v5534_v36 = vor.u32 %v6376_v7, %v5533_v30  ;;  %v6268_v50 = vld [vmem:[%s7320_s24 + $0xc] sm:$0xf]  ;;  %v5285_v30 = vld [vmem:[%s7320_s24 + $0x150] sm:$0xf] }
 0x4be   : > { %v5245_v1 = vld [vmem:[%s7320_s24 + $0x108] sm:$0xf]  ;;  %v5598_v35 = vor.u32 %v6392_v55, %v5597_v54  ;;  %v5119_v59 = vld [vmem:[%s7320_s24 + $0x28] sm:$0xf0] }
 0x4bf   : > { %2910 = vmatpush.bf16.msrb.mxu0 %v5110_v4  ;;  %v5246_v18 = vor.u32 %v6304_v25, %v5245_v1  ;;  %v6296_v4 = vld [vmem:[%s7320_s24 + $0xe4] sm:$0xf0]  ;;  %v6348_v1 = vld [vmem:[%s7320_s24 + $0x28c] sm:$0xf]  ;;  %v5122_v6 = vor.u32 %v6268_v50, %v5119_v59  ;;  %v6293_v50 = vld [vmem:[%s7320_s24 + $0xd4] sm:$0xf] }
 0x4c0   : > { %2923 = vmatpush.bf16.msrb.mxu1 %v5398_v3  ;;  %v5214_v27 = vor.u32 %v6296_v4, %v5213_v22  ;;  %v6288_v3 = vld [vmem:[%s7320_s24 + $0xa4] sm:$0xf0]  ;;  %v6340_v22 = vld [vmem:[%s7320_s24 + $0x24c] sm:$0xf]  ;;  %v5223_v59 = vld [vmem:[%s7320_s24 + $0xf0] sm:$0xf0] }
 0x4c1   : > { %2937 = vmatpush.bf16.msrb.mxu2 %v5146_v10  ;;  %2949 = vmatpush.bf16.msrb.mxu3 %v5466_v17  ;;  %v5567_v17 = vld [vmem:[%s7320_s24 + $0x3a8] sm:$0xf0]  ;;  %v5469_v49 = vld [vmem:[%s7320_s24 + $0x2c8] sm:$0xf] }
 0x4c2   : > { %v5437_v21 = vld [vmem:[%s7320_s24 + $0x288] sm:$0xf]  ;;  %v5407_v4 = vld [vmem:[%s7320_s24 + $0x268] sm:$0xf0] }
 0x4c4   : > { %2924 = vmatpush.bf16.msrb.mxu1 %v5366_v39  ;;  %v6368_v39 = vld [vmem:[%s7320_s24 + $0x324] sm:$0xf0] }
 0x4c5   : > { %2938 = vmatpush.bf16.msrb.mxu2 %v5114_v29  ;;  %2950 = vmatpush.bf16.msrb.mxu3 %v5434_v32  ;;  %v5570_v29 = vor.u32 %v6380_v16, %v5567_v17  ;;  %v5535_v32 = vld [vmem:[%s7320_s24 + $0x368] sm:$0xf0]  ;;  %v6321_v16 = vld [vmem:[%s7320_s24 + $0x1ac] sm:$0xf0]  ;;  %v6317_v17 = vld [vmem:[%s7320_s24 + $0x194] sm:$0xf] }
 0x4c6   : > { %v5538_v37 = vor.u32 %v6372_v0, %v5535_v32  ;;  %v5410_v0 = vor.u32 %v6340_v22, %v5407_v4  ;;  %v6313_v32 = vld [vmem:[%s7320_s24 + $0x16c] sm:$0xf0]  ;;  %v6277_v22 = vld [vmem:[%s7320_s24 + $0x54] sm:$0xf] }
 0x4c7   : > { %v5159_v4 = vld [vmem:[%s7320_s24 + $0x70] sm:$0xf0] }
 0x4c9   : > { %2951 = vmatpush.bf16.msrb.mxu3 %v5402_v12  ;;  %v5183_v12 = vld [vmem:[%s7320_s24 + $0xa8] sm:$0xf0] }
 0x4ca   : > { %v5186_v41 = vor.u32 %v6284_v34, %v5183_v12  ;;  %v5605_v34 = vld [vmem:[%s7320_s24 + $0x3d0] sm:$0xf] }
 0x4cb   : > { %v6393_v12 = vld [vmem:[%s7320_s24 + $0x3ec] sm:$0xf0] }
 0x4cc   : > { %v5606_v42 = vor.u32 %v6393_v12, %v5605_v34  ;;  %v5445_v34 = vld [vmem:[%s7320_s24 + $0x290] sm:$0xf] }
 0x4cd   : > { %2952 = vmatpush.bf16.msrb.mxu3 %v5370_v40  ;;  %v5503_v40 = vld [vmem:[%s7320_s24 + $0x328] sm:$0xf0]  ;;  %v6353_v12 = vld [vmem:[%s7320_s24 + $0x2ac] sm:$0xf0] }
 0x522   : > { %v1834_v19 = vpop.f32.mrf.mxu2 }
 0x52a   : > { %v1836_v46 = vpop.f32.mrf.mxu2 }
 0x52b   : > { %v1867_v51 = vpack.c.bf16 %v1836_v46, %v1834_v19  ;;  %v1862_v31 = vpop.f32.mrf.mxu3  ;;  %v5182_v19 = vor.u32 %v6288_v3, %v5181_v8  ;;  %v5151_v46 = vld [vmem:[%s7320_s24 + $0x68] sm:$0xf0] }
 0x52c   : > { %v5154_v48 = vor.u32 %v6276_v45, %v5151_v46  ;;  %v6332_v8 = vld [vmem:[%s7320_s24 + $0x20c] sm:$0xf]  ;;  %v6301_v45 = vld [vmem:[%s7320_s24 + $0x114] sm:$0xf] }
 0x52d   : > { %2069 = vmatmul.bf16.vlgmr.msra.gmra.mxu0 %v1867_v51  ;;  %2097 = vmatmul.bf16.vlgmr.msra.gmra.mxu2 %v1867_v51  ;;  %v6360_v51 = vld [vmem:[%s7320_s24 + $0x2e4] sm:$0xf0]  ;;  %v5375_v3 = vld [vmem:[%s7320_s24 + $0x228] sm:$0xf0]  ;;  %v5255_v46 = vld [vmem:[%s7320_s24 + $0x130] sm:$0xf0] }
 0x52e   : > { %2959 = vmatpush.bf16.msra.mxu0 %v5342_v15  ;;  %2987 = vmatpush.bf16.msra.mxu2 %v5346_v47  ;;  %v5502_v15 = vor.u32 %v6368_v39, %v5501_v38  ;;  %v5506_v47 = vor.u32 %v6364_v11, %v5503_v40  ;;  %v5470_v54 = vor.u32 %v6360_v51, %v5469_v49  ;;  %v6381_v49 = vld [vmem:[%s7320_s24 + $0x394] sm:$0xf] }
 0x52f   : > { %v5286_v38 = vor.u32 %v6313_v32, %v5285_v30  ;;  %v5378_v40 = vor.u32 %v6332_v8, %v5375_v3  ;;  %v5575_v51 = vld [vmem:[%s7320_s24 + $0x3b0] sm:$0xf0]  ;;  %v6273_v32 = vld [vmem:[%s7320_s24 + $0x2c] sm:$0xf0] }
 0x530   : > { %v5127_v3 = vld [vmem:[%s7320_s24 + $0x30] sm:$0xf0] }
 0x532   : > { %2960 = vmatpush.bf16.msra.mxu0 %v5310_v56  ;;  %2988 = vmatpush.bf16.msra.mxu2 %v5314_v13  ;;  %v5117_v56 = vld [vmem:[%s7320_s24 + $0x8] sm:$0xf] }
 0x533   : > { %v1864_v53 = vpop.f32.mrf.mxu3  ;;  %v6272_v13 = vld [vmem:[%s7320_s24 + $0x24] sm:$0xf0] }
 0x534   : > { %v1868_v10 = vpack.c.bf16 %v1864_v53, %v1862_v31  ;;  %v6356_v31 = vld [vmem:[%s7320_s24 + $0x2cc] sm:$0xf]  ;;  %v5118_v25 = vor.u32 %v6272_v13, %v5117_v56  ;;  %v5578_v13 = vor.u32 %v6381_v49, %v5575_v51  ;;  %v6341_v49 = vld [vmem:[%s7320_s24 + $0x254] sm:$0xf] }
 0x535   : > { %v5474_v55 = vor.u32 %v6356_v31, %v5471_v52  ;;  %v5439_v53 = vld [vmem:[%s7320_s24 + $0x2a8] sm:$0xf0]  ;;  %v5258_v52 = vor.u32 %v6301_v45, %v5255_v46  ;;  %v5413_v45 = vld [vmem:[%s7320_s24 + $0x250] sm:$0xf]  ;;  %v5415_v51 = vld [vmem:[%s7320_s24 + $0x270] sm:$0xf0] }
 0x536   : > { %2961 = vmatpush.bf16.msra.mxu0 %v5278_v62  ;;  %2989 = vmatpush.bf16.msra.mxu2 %v5282_v63  ;;  %v5351_v62 = vld [vmem:[%s7320_s24 + $0x1f0] sm:$0xf0]  ;;  %v6352_v63 = vld [vmem:[%s7320_s24 + $0x2a4] sm:$0xf0]  ;;  %v5442_v20 = vor.u32 %v6348_v1, %v5439_v53  ;;  %v6345_v46 = vld [vmem:[%s7320_s24 + $0x26c] sm:$0xf0] }
 0x537   : > { %2083 = vmatmul.bf16.vlgmr.msra.gmra.mxu1 %v1868_v10  ;;  %2111 = vmatmul.bf16.vlgmr.msra.gmra.mxu3 %v1868_v10  ;;  %v5354_v10 = vor.u32 %v6325_v61, %v5351_v62  ;;  %v5438_v14 = vor.u32 %v6352_v63, %v5437_v21  ;;  %v5541_v21 = vld [vmem:[%s7320_s24 + $0x350] sm:$0xf]  ;;  %v5226_v61 = vor.u32 %v6293_v50, %v5223_v59 }
 0x538   : > { %2973 = vmatpush.bf16.msra.mxu1 %v5598_v35  ;;  %3001 = vmatpush.bf16.msra.mxu3 %v5602_v43  ;;  %v5405_v35 = vld [vmem:[%s7320_s24 + $0x248] sm:$0xf]  ;;  %v5317_v43 = vld [vmem:[%s7320_s24 + $0x190] sm:$0xf]  ;;  %v5542_v1 = vor.u32 %v6377_v57, %v5541_v21  ;;  %v6333_v21 = vld [vmem:[%s7320_s24 + $0x214] sm:$0xf] }
 0x539   : > { %v5318_v23 = vor.u32 %v6321_v16, %v5317_v43  ;;  %v5189_v62 = vld [vmem:[%s7320_s24 + $0x90] sm:$0xf]  ;;  %v5511_v43 = vld [vmem:[%s7320_s24 + $0x330] sm:$0xf0] }
 0x53a   : > { %2962 = vmatpush.bf16.msra.mxu0 %v5246_v18  ;;  %2990 = vmatpush.bf16.msra.mxu2 %v5250_v58  ;;  %v5319_v18 = vld [vmem:[%s7320_s24 + $0x1b0] sm:$0xf0]  ;;  %v6344_v58 = vld [vmem:[%s7320_s24 + $0x264] sm:$0xf0]  ;;  %v6289_v63 = vld [vmem:[%s7320_s24 + $0xac] sm:$0xf0] }
 0x53b   : > { %v5322_v24 = vor.u32 %v6317_v17, %v5319_v18  ;;  %v5406_v7 = vor.u32 %v6344_v58, %v5405_v35  ;;  %v6365_v35 = vld [vmem:[%s7320_s24 + $0x314] sm:$0xf]  ;;  %v5157_v16 = vld [vmem:[%s7320_s24 + $0x50] sm:$0xf] }
 0x53c   : > { %2974 = vmatpush.bf16.msra.mxu1 %v5566_v28  ;;  %3002 = vmatpush.bf16.msra.mxu3 %v5570_v29  ;;  %v5373_v28 = vld [vmem:[%s7320_s24 + $0x208] sm:$0xf]  ;;  %v6281_v17 = vld [vmem:[%s7320_s24 + $0x6c] sm:$0xf0]  ;;  %v5514_v58 = vor.u32 %v6365_v35, %v5511_v43 }
 0x53d   : > { %2911 = vmatmul.bf16.vlgmr.msrb.gmra.mxu0 %v7538_v5  ;;  %2939 = vmatmul.bf16.vlgmr.msrb.gmra.mxu2 %v7538_v5  ;;  %v6336_v29 = vld [vmem:[%s7320_s24 + $0x224] sm:$0xf0]  ;;  %v5158_v30 = vor.u32 %v6281_v17, %v5157_v16  ;;  %v5381_v50 = vld [vmem:[%s7320_s24 + $0x210] sm:$0xf] }
 0x53e   : > { %2963 = vmatpush.bf16.msra.mxu0 %v5214_v27  ;;  %2991 = vmatpush.bf16.msra.mxu2 %v5218_v33  ;;  %v6309_v27 = vld [vmem:[%s7320_s24 + $0x154] sm:$0xf]  ;;  %v5374_v11 = vor.u32 %v6336_v29, %v5373_v28  ;;  %v6337_v59 = vld [vmem:[%s7320_s24 + $0x22c] sm:$0xf0] }
 0x53f   : > { %v5287_v33 = vld [vmem:[%s7320_s24 + $0x170] sm:$0xf0] }
 0x540   : > { %2975 = vmatpush.bf16.msra.mxu1 %v5534_v36  ;;  %3003 = vmatpush.bf16.msra.mxu3 %v5538_v37  ;;  %v6389_v36 = vld [vmem:[%s7320_s24 + $0x3d4] sm:$0xf]  ;;  %v5290_v39 = vor.u32 %v6309_v27, %v5287_v33 }
 0x541   : > { %v5607_v37 = vld [vmem:[%s7320_s24 + $0x3f0] sm:$0xf0] }
 0x542   : > { %2964 = vmatpush.bf16.msra.mxu0 %v5182_v19  ;;  %2992 = vmatpush.bf16.msra.mxu2 %v5186_v41  ;;  %v5253_v19 = vld [vmem:[%s7320_s24 + $0x110] sm:$0xf]  ;;  %v5610_v44 = vor.u32 %v6389_v36, %v5607_v37  ;;  %v6357_v28 = vld [vmem:[%s7320_s24 + $0x2d4] sm:$0xf] }
 0x543   : > { %v6305_v41 = vld [vmem:[%s7320_s24 + $0x12c] sm:$0xf0]  ;;  %v5479_v29 = vld [vmem:[%s7320_s24 + $0x2f0] sm:$0xf0] }
 0x544   : > { %2976 = vmatpush.bf16.msra.mxu1 %v5502_v15  ;;  %3004 = vmatpush.bf16.msra.mxu3 %v5506_v47  ;;  %v5573_v15 = vld [vmem:[%s7320_s24 + $0x390] sm:$0xf]  ;;  %v5254_v31 = vor.u32 %v6305_v41, %v5253_v19  ;;  %v6269_v27 = vld [vmem:[%s7320_s24 + $0x14] sm:$0xf]  ;;  %v5482_v8 = vor.u32 %v6357_v28, %v5479_v29 }
 0x545   : > { %v6385_v47 = vld [vmem:[%s7320_s24 + $0x3ac] sm:$0xf0]  ;;  %v6349_v36 = vld [vmem:[%s7320_s24 + $0x294] sm:$0xf]  ;;  %v5130_v41 = vor.u32 %v6269_v27, %v5127_v3  ;;  %v6294_v27 = vld [vmem:[%s7320_s24 + $0xdc] sm:$0xf] }
 0x546   : > { %2965 = vmatpush.bf16.msra.mxu0 %v5150_v2  ;;  %2993 = vmatpush.bf16.msra.mxu2 %v5154_v48  ;;  %v5221_v2 = vld [vmem:[%s7320_s24 + $0xd0] sm:$0xf]  ;;  %v5574_v56 = vor.u32 %v6385_v47, %v5573_v15  ;;  %v5447_v37 = vld [vmem:[%s7320_s24 + $0x2b0] sm:$0xf0]  ;;  %v6378_v3 = vld [vmem:[%s7320_s24 + $0x374] sm:$0xf0] }
 0x547   : > { %2925 = vmatmul.bf16.vlgmr.msrb.gmra.mxu1 %v7540_v26  ;;  %2953 = vmatmul.bf16.vlgmr.msrb.gmra.mxu3 %v7540_v26  ;;  %v6297_v48 = vld [vmem:[%s7320_s24 + $0xec] sm:$0xf0] }
 0x548   : > { %2977 = vmatpush.bf16.msra.mxu1 %v5470_v54  ;;  %3005 = vmatpush.bf16.msra.mxu3 %v5474_v55  ;;  %v6373_v54 = vld [vmem:[%s7320_s24 + $0x354] sm:$0xf]  ;;  %v5222_v60 = vor.u32 %v6297_v48, %v5221_v2  ;;  %v6318_v2 = vld [vmem:[%s7320_s24 + $0x19c] sm:$0xf] }
 0x549   : > { %v5543_v55 = vld [vmem:[%s7320_s24 + $0x370] sm:$0xf0]  ;;  %v5327_v48 = vld [vmem:[%s7320_s24 + $0x1b8] sm:$0xf0] }
 0x54a   : > { %2966 = vmatpush.bf16.msra.mxu0 %v5118_v25  ;;  %2994 = vmatpush.bf16.msra.mxu2 %v5122_v6  ;;  %v5546_v53 = vor.u32 %v6373_v54, %v5543_v55  ;;  %v6285_v25 = vld [vmem:[%s7320_s24 + $0x94] sm:$0xf]  ;;  %v5330_v54 = vor.u32 %v6318_v2, %v5327_v48  ;;  %v6278_v2 = vld [vmem:[%s7320_s24 + $0x5c] sm:$0xf] }
 0x54b   : > { %v5191_v6 = vld [vmem:[%s7320_s24 + $0xb0] sm:$0xf0]  ;;  %v5167_v48 = vld [vmem:[%s7320_s24 + $0x78] sm:$0xf0] }
 0x54c   : > { %2978 = vmatpush.bf16.msra.mxu1 %v5438_v14  ;;  %3006 = vmatpush.bf16.msra.mxu3 %v5442_v20  ;;  %v5190_v14 = vor.u32 %v6289_v63, %v5189_v62  ;;  %v5194_v20 = vor.u32 %v6285_v25, %v5191_v6  ;;  %v5383_v55 = vld [vmem:[%s7320_s24 + $0x230] sm:$0xf0]  ;;  %v6310_v62 = vld [vmem:[%s7320_s24 + $0x15c] sm:$0xf] }
 0x54d   : > { %2967 = vmatmul.bf16.vlgmr.msra.gmra.mxu0 %v7538_v5  ;;  %2995 = vmatmul.bf16.vlgmr.msra.gmra.mxu2 %v7538_v5  ;;  %v5295_v63 = vld [vmem:[%s7320_s24 + $0x178] sm:$0xf0] }
 0x54e   : > { %3015 = vmatpush.bf16.msrb.mxu0 %v5350_v9  ;;  %3043 = vmatpush.bf16.msrb.mxu2 %v5354_v10  ;;  %v5509_v9 = vld [vmem:[%s7320_s24 + $0x310] sm:$0xf]  ;;  %v6390_v25 = vld [vmem:[%s7320_s24 + $0x3dc] sm:$0xf]  ;;  %v5298_v43 = vor.u32 %v6310_v62, %v5295_v63 }
 0x54f   : > { %v6369_v10 = vld [vmem:[%s7320_s24 + $0x32c] sm:$0xf0]  ;;  %v5615_v6 = vld [vmem:[%s7320_s24 + $0x3f8] sm:$0xf0] }
 0x550   : > { %2979 = vmatpush.bf16.msra.mxu1 %v5406_v7  ;;  %3007 = vmatpush.bf16.msra.mxu3 %v5410_v0  ;;  %v5510_v18 = vor.u32 %v6369_v10, %v5509_v9  ;;  %v5162_v7 = vor.u32 %v6277_v22, %v5159_v4  ;;  %v5125_v0 = vld [vmem:[%s7320_s24 + $0x10] sm:$0xf]  ;;  %v5382_v9 = vor.u32 %v6337_v59, %v5381_v50  ;;  %v5581_v22 = vld [vmem:[%s7320_s24 + $0x398] sm:$0xf]  ;;  %v6358_v50 = vld [vmem:[%s7320_s24 + $0x2dc] sm:$0xf] }
 0x551   : > { %v5126_v19 = vor.u32 %v6273_v32, %v5125_v0  ;;  %v5386_v10 = vor.u32 %v6333_v21, %v5383_v55  ;;  %v5618_v17 = vor.u32 %v6390_v25, %v5615_v6  ;;  %v6386_v4 = vld [vmem:[%s7320_s24 + $0x3b4] sm:$0xf0]  ;;  %v5487_v59 = vld [vmem:[%s7320_s24 + $0x2f8] sm:$0xf0] }
 0x552   : > { %3016 = vmatpush.bf16.msrb.mxu0 %v5318_v23  ;;  %3044 = vmatpush.bf16.msrb.mxu2 %v5322_v24  ;;  %v5477_v23 = vld [vmem:[%s7320_s24 + $0x2d0] sm:$0xf]  ;;  %v5582_v0 = vor.u32 %v6386_v4, %v5581_v22  ;;  %v6274_v55 = vld [vmem:[%s7320_s24 + $0x34] sm:$0xf0]  ;;  %v6270_v62 = vld [vmem:[%s7320_s24 + $0x1c] sm:$0xf] }
 0x553   : > { %v6361_v24 = vld [vmem:[%s7320_s24 + $0x2ec] sm:$0xf0]  ;;  %v5135_v63 = vld [vmem:[%s7320_s24 + $0x38] sm:$0xf0]  ;;  %v5389_v22 = vld [vmem:[%s7320_s24 + $0x218] sm:$0xf] }
 0x554   : > { %2980 = vmatpush.bf16.msra.mxu1 %v5374_v11  ;;  %3008 = vmatpush.bf16.msra.mxu3 %v5378_v40  ;;  %v5478_v33 = vor.u32 %v6361_v24, %v5477_v23  ;;  %v6326_v11 = vld [vmem:[%s7320_s24 + $0x1dc] sm:$0xf]  ;;  %v6338_v4 = vld [vmem:[%s7320_s24 + $0x234] sm:$0xf0] }
 0x555   : > { %v5359_v40 = vld [vmem:[%s7320_s24 + $0x1f8] sm:$0xf0] }
 0x556   : > { %3017 = vmatpush.bf16.msrb.mxu0 %v5286_v38  ;;  %3045 = vmatpush.bf16.msrb.mxu2 %v5290_v39  ;;  %v5357_v38 = vld [vmem:[%s7320_s24 + $0x1d8] sm:$0xf]  ;;  %v5362_v47 = vor.u32 %v6326_v11, %v5359_v40  ;;  %v6382_v23 = vld [vmem:[%s7320_s24 + $0x39c] sm:$0xf] }
 0x557   : > { %2981 = vmatmul.bf16.vlgmr.msra.gmra.mxu1 %v7540_v26  ;;  %3009 = vmatmul.bf16.vlgmr.msra.gmra.mxu3 %v7540_v26  ;;  %v6330_v39 = vld [vmem:[%s7320_s24 + $0x1f4] sm:$0xf0]  ;;  %v5583_v24 = vld [vmem:[%s7320_s24 + $0x3b8] sm:$0xf0] }
 0x558   : > { %3029 = vmatpush.bf16.msrb.mxu1 %v5606_v42  ;;  %3057 = vmatpush.bf16.msrb.mxu3 %v5610_v44  ;;  %v5446_v42 = vor.u32 %v6353_v12, %v5445_v34  ;;  %v5450_v44 = vor.u32 %v6349_v36, %v5447_v37  ;;  %v5358_v15 = vor.u32 %v6330_v39, %v5357_v38  ;;  %v6374_v34 = vld [vmem:[%s7320_s24 + $0x35c] sm:$0xf]  ;;  %v5197_v38 = vld [vmem:[%s7320_s24 + $0x98] sm:$0xf] }
 0x559   : > { %v5586_v32 = vor.u32 %v6382_v23, %v5583_v24  ;;  %v5551_v12 = vld [vmem:[%s7320_s24 + $0x378] sm:$0xf0]  ;;  %v6290_v39 = vld [vmem:[%s7320_s24 + $0xb4] sm:$0xf0] }
 0x55a   : > { %3018 = vmatpush.bf16.msrb.mxu0 %v5254_v31  ;;  %3046 = vmatpush.bf16.msrb.mxu2 %v5258_v52  ;;  %v5325_v31 = vld [vmem:[%s7320_s24 + $0x198] sm:$0xf]  ;;  %v5554_v40 = vor.u32 %v6374_v34, %v5551_v12  ;;  %v6350_v25 = vld [vmem:[%s7320_s24 + $0x29c] sm:$0xf]  ;;  %v5661_v34 = vld [vmem:[%s7328_s17 + $0x50] sm:$0xf] }
 0x55b   : > { %v6322_v52 = vld [vmem:[%s7320_s24 + $0x1b4] sm:$0xf0]  ;;  %v5455_v6 = vld [vmem:[%s7320_s24 + $0x2b8] sm:$0xf0]  ;;  %v6406_v12 = vld [vmem:[%s7328_s17 + $0x54] sm:$0xf0] }
 0x55c   : > { %3030 = vmatpush.bf16.msrb.mxu1 %v5574_v56  ;;  %3058 = vmatpush.bf16.msrb.mxu3 %v5578_v13  ;;  %v5414_v56 = vor.u32 %v6345_v46, %v5413_v45  ;;  %v5418_v13 = vor.u32 %v6341_v49, %v5415_v51  ;;  %v5326_v57 = vor.u32 %v6322_v52, %v5325_v31  ;;  %v6366_v45 = vld [vmem:[%s7320_s24 + $0x31c] sm:$0xf]  ;;  %v5165_v49 = vld [vmem:[%s7320_s24 + $0x58] sm:$0xf] }
 0x55d   : > { %v5519_v46 = vld [vmem:[%s7320_s24 + $0x338] sm:$0xf0]  ;;  %v6282_v51 = vld [vmem:[%s7320_s24 + $0x74] sm:$0xf0] }
 0x55e   : > { %3019 = vmatpush.bf16.msrb.mxu0 %v5222_v60  ;;  %3047 = vmatpush.bf16.msrb.mxu2 %v5226_v61  ;;  %v5293_v60 = vld [vmem:[%s7320_s24 + $0x158] sm:$0xf]  ;;  %v5522_v52 = vor.u32 %v6366_v45, %v5519_v46  ;;  %v5166_v21 = vor.u32 %v6282_v51, %v5165_v49  ;;  %v6334_v23 = vld [vmem:[%s7320_s24 + $0x21c] sm:$0xf]  ;;  %v5645_v45 = vld [vmem:[%s7328_s17 + $0x30] sm:$0xf] }
 0x55f   : > { %v6314_v61 = vld [vmem:[%s7320_s24 + $0x174] sm:$0xf0]  ;;  %v5391_v24 = vld [vmem:[%s7320_s24 + $0x238] sm:$0xf0]  ;;  %v6402_v46 = vld [vmem:[%s7328_s17 + $0x34] sm:$0xf0] }
 0x560   : > { %3031 = vmatpush.bf16.msrb.mxu1 %v5542_v1  ;;  %3059 = vmatpush.bf16.msrb.mxu3 %v5546_v53  ;;  %v5613_v1 = vld [vmem:[%s7320_s24 + $0x3d8] sm:$0xf]  ;;  %v5294_v35 = vor.u32 %v6314_v61, %v5293_v60  ;;  %v5490_v61 = vor.u32 %v6358_v50, %v5487_v59 }
 0x561   : > { %v6394_v53 = vld [vmem:[%s7320_s24 + $0x3f4] sm:$0xf0] }
 0x562   : > { %3020 = vmatpush.bf16.msrb.mxu0 %v5190_v14  ;;  %3048 = vmatpush.bf16.msrb.mxu2 %v5194_v20  ;;  %v5261_v14 = vld [vmem:[%s7320_s24 + $0x118] sm:$0xf]  ;;  %v5614_v16 = vor.u32 %v6394_v53, %v5613_v1 }
 0x563   : > { %v6306_v20 = vld [vmem:[%s7320_s24 + $0x134] sm:$0xf0] }
 0x564   : > { %3032 = vmatpush.bf16.msrb.mxu1 %v5510_v18  ;;  %3060 = vmatpush.bf16.msrb.mxu3 %v5514_v58  ;;  %v6302_v18 = vld [vmem:[%s7320_s24 + $0x11c] sm:$0xf]  ;;  %v5262_v28 = vor.u32 %v6306_v20, %v5261_v14  ;;  %v5453_v1 = vld [vmem:[%s7320_s24 + $0x298] sm:$0xf] }
 0x565   : > { %v5263_v58 = vld [vmem:[%s7320_s24 + $0x138] sm:$0xf0]  ;;  %v6354_v53 = vld [vmem:[%s7320_s24 + $0x2b4] sm:$0xf0] }
 0x566   : > { %3021 = vmatpush.bf16.msrb.mxu0 %v5158_v30  ;;  %3049 = vmatpush.bf16.msrb.mxu2 %v5162_v7  ;;  %v5266_v29 = vor.u32 %v6302_v18, %v5263_v58  ;;  %v5229_v30 = vld [vmem:[%s7320_s24 + $0xd8] sm:$0xf] }
 0x567   : > { %v6298_v7 = vld [vmem:[%s7320_s24 + $0xf4] sm:$0xf0] }
 0x568   : > { %3033 = vmatpush.bf16.msrb.mxu1 %v5478_v33  ;;  %3061 = vmatpush.bf16.msrb.mxu3 %v5482_v8  ;;  %v5231_v33 = vld [vmem:[%s7320_s24 + $0xf8] sm:$0xf0]  ;;  %v5549_v8 = vld [vmem:[%s7320_s24 + $0x358] sm:$0xf]  ;;  %v5230_v36 = vor.u32 %v6298_v7, %v5229_v30  ;;  %v5677_v30 = vld [vmem:[%s7328_s17 + $0x70] sm:$0xf] }
 0x569   : > { %v5234_v37 = vor.u32 %v6294_v27, %v5231_v33  ;;  %v5550_v11 = vor.u32 %v6378_v3, %v5549_v8  ;;  %v5421_v14 = vld [vmem:[%s7320_s24 + $0x258] sm:$0xf]  ;;  %v6410_v7 = vld [vmem:[%s7328_s17 + $0x74] sm:$0xf0]  ;;  %v5741_v33 = vld [vmem:[%s7328_s17 + $0xf0] sm:$0xf] }
 0x56a   : > { %3022 = vmatpush.bf16.msrb.mxu0 %v5126_v19  ;;  %3050 = vmatpush.bf16.msrb.mxu2 %v5130_v41  ;;  %v6286_v19 = vld [vmem:[%s7320_s24 + $0x9c] sm:$0xf]  ;;  %v6346_v20 = vld [vmem:[%s7320_s24 + $0x274] sm:$0xf0]  ;;  %v6426_v8 = vld [vmem:[%s7328_s17 + $0xf4] sm:$0xf0] }
 0x56b   : > { %v5199_v41 = vld [vmem:[%s7320_s24 + $0xb8] sm:$0xf0]  ;;  %v5422_v18 = vor.u32 %v6346_v20, %v5421_v14  ;;  %v5742_v3 = vor.u32 %v6426_v8, %v5741_v33  ;;  %v6420_v49 = vld [vmem:[%s7328_s17 + $0xc4] sm:$0xf0]  ;;  %v6474_v14 = vld [vmem:[%s7328_s17 + $0x274] sm:$0xf0] }
 0x56c   : > { %3034 = vmatpush.bf16.msrb.mxu1 %v5446_v42  ;;  %3062 = vmatpush.bf16.msrb.mxu3 %v5450_v44  ;;  %v5517_v42 = vld [vmem:[%s7320_s24 + $0x318] sm:$0xf]  ;;  %v5685_v8 = vld [vmem:[%s7328_s17 + $0x80] sm:$0xf] }
 0x56d   : > { %3023 = vmatmul.bf16.vlgmr.msrb.gmra.mxu0 %v7538_v5  ;;  %3051 = vmatmul.bf16.vlgmr.msrb.gmra.mxu2 %v7538_v5  ;;  %v6370_v44 = vld [vmem:[%s7320_s24 + $0x334] sm:$0xf0] }
 0x56e   : > { %3071 = vmatpush.bf16.msra.mxu0 %v5358_v15  ;;  %3099 = vmatpush.bf16.msra.mxu2 %v5362_v47  ;;  %v5198_v15 = vor.u32 %v6290_v39, %v5197_v38  ;;  %v5202_v47 = vor.u32 %v6286_v19, %v5199_v41  ;;  %v5518_v31 = vor.u32 %v6370_v44, %v5517_v42  ;;  %v5653_v39 = vld [vmem:[%s7328_s17 + $0x40] sm:$0xf]  ;;  %v5725_v19 = vld [vmem:[%s7328_s17 + $0xd0] sm:$0xf]  ;;  %v6422_v41 = vld [vmem:[%s7328_s17 + $0xd4] sm:$0xf0] }
 0x56f   : > { %v5726_v44 = vor.u32 %v6422_v41, %v5725_v19  ;;  %v6472_v33 = vld [vmem:[%s7328_s17 + $0x264] sm:$0xf0]  ;;  %v5861_v41 = vld [vmem:[%s7328_s17 + $0x1e0] sm:$0xf] }
 0x570   : > { %3035 = vmatpush.bf16.msrb.mxu1 %v5414_v56  ;;  %3063 = vmatpush.bf16.msrb.mxu3 %v5418_v13  ;;  %v5485_v56 = vld [vmem:[%s7320_s24 + $0x2d8] sm:$0xf] }
 0x571   : > { %v6362_v13 = vld [vmem:[%s7320_s24 + $0x2f4] sm:$0xf0] }
 0x572   : > { %3072 = vmatpush.bf16.msra.mxu0 %v5326_v57  ;;  %3100 = vmatpush.bf16.msra.mxu2 %v5330_v54  ;;  %v5170_v57 = vor.u32 %v6278_v2, %v5167_v48  ;;  %v5133_v54 = vld [vmem:[%s7320_s24 + $0x18] sm:$0xf]  ;;  %v5486_v60 = vor.u32 %v6362_v13, %v5485_v56  ;;  %v5709_v56 = vld [vmem:[%s7328_s17 + $0xb0] sm:$0xf]  ;;  %v6418_v13 = vld [vmem:[%s7328_s17 + $0xb4] sm:$0xf0] }
 0x573   : > { %v5710_v59 = vor.u32 %v6418_v13, %v5709_v56  ;;  %v6488_v13 = vld [vmem:[%s7328_s17 + $0x2e4] sm:$0xf0] }
 0x574   : > { %3036 = vmatpush.bf16.msrb.mxu1 %v5382_v9  ;;  %3064 = vmatpush.bf16.msrb.mxu3 %v5386_v10  ;;  %v5134_v9 = vor.u32 %v6274_v55, %v5133_v54  ;;  %v5138_v10 = vor.u32 %v6270_v62, %v5135_v63  ;;  %v6416_v62 = vld [vmem:[%s7328_s17 + $0xa4] sm:$0xf0] }
 0x576   : > { %3073 = vmatpush.bf16.msra.mxu0 %v5294_v35  ;;  %3101 = vmatpush.bf16.msra.mxu2 %v5298_v43  ;;  %v5454_v35 = vor.u32 %v6354_v53, %v5453_v1  ;;  %v5458_v43 = vor.u32 %v6350_v25, %v5455_v6  ;;  %v5805_v1 = vld [vmem:[%s7328_s17 + $0x170] sm:$0xf]  ;;  %v6442_v53 = vld [vmem:[%s7328_s17 + $0x174] sm:$0xf0]  ;;  %v5621_v6 = vld [vmem:[%s7328_s17] sm:$0xf] }
 0x577   : > { %3037 = vmatmul.bf16.vlgmr.msrb.gmra.mxu1 %v7540_v26  ;;  %3065 = vmatmul.bf16.vlgmr.msrb.gmra.mxu3 %v7540_v26  ;;  %v5806_v25 = vor.u32 %v6442_v53, %v5805_v1  ;;  %v5773_v53 = vld [vmem:[%s7328_s17 + $0x130] sm:$0xf] }
 0x578   : > { %3085 = vmatpush.bf16.msra.mxu1 %v5614_v16  ;;  %3113 = vmatpush.bf16.msra.mxu3 %v5618_v17  ;;  %v6342_v16 = vld [vmem:[%s7320_s24 + $0x25c] sm:$0xf] }
 0x579   : > { %v5423_v17 = vld [vmem:[%s7320_s24 + $0x278] sm:$0xf0] }
 0x57a   : > { %3074 = vmatpush.bf16.msra.mxu0 %v5262_v28  ;;  %3102 = vmatpush.bf16.msra.mxu2 %v5266_v29  ;;  %v5426_v58 = vor.u32 %v6342_v16, %v5423_v17  ;;  %v5390_v28 = vor.u32 %v6338_v4, %v5389_v22  ;;  %v5394_v29 = vor.u32 %v6334_v23, %v5391_v24  ;;  %v5693_v16 = vld [vmem:[%s7328_s17 + $0x90] sm:$0xf]  ;;  %v6414_v17 = vld [vmem:[%s7328_s17 + $0x94] sm:$0xf0]  ;;  %v5797_v4 = vld [vmem:[%s7328_s17 + $0x160] sm:$0xf] }
 0x57b   : > { %v5694_v22 = vor.u32 %v6414_v17, %v5693_v16  ;;  %v6440_v23 = vld [vmem:[%s7328_s17 + $0x164] sm:$0xf0] }
 0x57c   : > { %3086 = vmatpush.bf16.msra.mxu1 %v5582_v0  ;;  %3114 = vmatpush.bf16.msra.mxu3 %v5586_v32  ;;  %v5678_v0 = vor.u32 %v6410_v7, %v5677_v30  ;;  %v6408_v32 = vld [vmem:[%s7328_s17 + $0x64] sm:$0xf0]  ;;  %v5869_v7 = vld [vmem:[%s7328_s17 + $0x1f0] sm:$0xf] }
 0x57e   : > { %3075 = vmatpush.bf16.msra.mxu0 %v5230_v36  ;;  %3103 = vmatpush.bf16.msra.mxu2 %v5234_v37  ;;  %v5733_v36 = vld [vmem:[%s7328_s17 + $0xe0] sm:$0xf]  ;;  %v6424_v37 = vld [vmem:[%s7328_s17 + $0xe4] sm:$0xf0] }
 0x57f   : > { %v5734_v38 = vor.u32 %v6424_v37, %v5733_v36  ;;  %v6438_v36 = vld [vmem:[%s7328_s17 + $0x154] sm:$0xf0]  ;;  %v5997_v37 = vld [vmem:[%s7328_s17 + $0x2f0] sm:$0xf] }
 0x580   : > { %3087 = vmatpush.bf16.msra.mxu1 %v5550_v11  ;;  %3115 = vmatpush.bf16.msra.mxu3 %v5554_v40  ;;  %v6404_v11 = vld [vmem:[%s7328_s17 + $0x44] sm:$0xf0] }
 0x581   : > { %v5654_v40 = vor.u32 %v6404_v11, %v5653_v39  ;;  %v6490_v11 = vld [vmem:[%s7328_s17 + $0x2f4] sm:$0xf0] }
 0x582   : > { %3076 = vmatpush.bf16.msra.mxu0 %v5198_v15  ;;  %3104 = vmatpush.bf16.msra.mxu2 %v5202_v47  ;;  %v5646_v15 = vor.u32 %v6402_v46, %v5645_v45  ;;  %v5717_v47 = vld [vmem:[%s7328_s17 + $0xc0] sm:$0xf]  ;;  %v5998_v19 = vor.u32 %v6490_v11, %v5997_v37  ;;  %v6470_v46 = vld [vmem:[%s7328_s17 + $0x254] sm:$0xf0] }
 0x583   : > { %v5718_v51 = vor.u32 %v6420_v49, %v5717_v47  ;;  %v5781_v49 = vld [vmem:[%s7328_s17 + $0x140] sm:$0xf] }
 0x584   : > { %3088 = vmatpush.bf16.msra.mxu1 %v5518_v31  ;;  %3116 = vmatpush.bf16.msra.mxu3 %v5522_v52  ;;  %v5637_v31 = vld [vmem:[%s7328_s17 + $0x20] sm:$0xf]  ;;  %v6400_v52 = vld [vmem:[%s7328_s17 + $0x24] sm:$0xf0] }
 0x585   : > { %v5638_v48 = vor.u32 %v6400_v52, %v5637_v31  ;;  %v5989_v31 = vld [vmem:[%s7328_s17 + $0x2e0] sm:$0xf] }
 0x586   : > { %3077 = vmatpush.bf16.msra.mxu0 %v5166_v21  ;;  %3105 = vmatpush.bf16.msra.mxu2 %v5170_v57  ;;  %v5629_v21 = vld [vmem:[%s7328_s17 + $0x10] sm:$0xf]  ;;  %v6398_v57 = vld [vmem:[%s7328_s17 + $0x14] sm:$0xf0]  ;;  %v5893_v37 = vld [vmem:[%s7328_s17 + $0x220] sm:$0xf] }
 0x587   : > { %v5630_v55 = vor.u32 %v6398_v57, %v5629_v21  ;;  %v5853_v21 = vld [vmem:[%s7328_s17 + $0x1d0] sm:$0xf]  ;;  %v6454_v57 = vld [vmem:[%s7328_s17 + $0x1d4] sm:$0xf0] }
 0x588   : > { %3089 = vmatpush.bf16.msra.mxu1 %v5486_v60  ;;  %3117 = vmatpush.bf16.msra.mxu3 %v5490_v61  ;;  %v5701_v61 = vld [vmem:[%s7328_s17 + $0xa0] sm:$0xf] }
 0x589   : > { %v5702_v63 = vor.u32 %v6416_v62, %v5701_v61  ;;  %v5854_v62 = vor.u32 %v6454_v57, %v5853_v21  ;;  %v6448_v21 = vld [vmem:[%s7328_s17 + $0x1a4] sm:$0xf0]  ;;  %v5885_v57 = vld [vmem:[%s7328_s17 + $0x210] sm:$0xf] }
 0x58a   : > { %3078 = vmatpush.bf16.msra.mxu0 %v5134_v9  ;;  %3106 = vmatpush.bf16.msra.mxu2 %v5138_v10  ;;  %v6396_v9 = vld [vmem:[%s7328_s17 + $0x4] sm:$0xf0] }
 0x58c   : > { %3090 = vmatpush.bf16.msra.mxu1 %v5454_v35  ;;  %3118 = vmatpush.bf16.msra.mxu3 %v5458_v43  ;;  %v5622_v35 = vor.u32 %v6396_v9, %v5621_v6  ;;  %v5933_v43 = vld [vmem:[%s7328_s17 + $0x270] sm:$0xf] }
 0x58d   : > { %3079 = vmatmul.bf16.vlgmr.msra.gmra.mxu0 %v7538_v5  ;;  %3107 = vmatmul.bf16.vlgmr.msra.gmra.mxu2 %v7538_v5  ;;  %v5669_v5 = vld [vmem:[%s7328_s17 + $0x60] sm:$0xf]  ;;  %v5934_v20 = vor.u32 %v6474_v14, %v5933_v43  ;;  %v5981_v6 = vld [vmem:[%s7328_s17 + $0x2d0] sm:$0xf] }
 0x58e   : > { %4053 = vmatpush.bf16.msrb.mxu0 %v5678_v0  ;;  %v5670_v27 = vor.u32 %v6408_v32, %v5669_v5  ;;  %4081 = vmatpush.bf16.msrb.mxu2 %v5806_v25  ;;  %v6458_v0 = vld [vmem:[%s7328_s17 + $0x1f4] sm:$0xf0]  ;;  %v5925_v5 = vld [vmem:[%s7328_s17 + $0x260] sm:$0xf] }
 0x58f   : > { %v6434_v25 = vld [vmem:[%s7328_s17 + $0x134] sm:$0xf0]  ;;  %v5845_v14 = vld [vmem:[%s7328_s17 + $0x1c0] sm:$0xf] }
 0x590   : > { %3091 = vmatpush.bf16.msra.mxu1 %v5422_v18  ;;  %3119 = vmatpush.bf16.msra.mxu3 %v5426_v58 }
 0x592   : > { %4054 = vmatpush.bf16.msrb.mxu0 %v5670_v27  ;;  %v5870_v27 = vor.u32 %v6458_v0, %v5869_v7  ;;  %v6432_v7 = vld [vmem:[%s7328_s17 + $0x124] sm:$0xf0]  ;;  %v5973_v0 = vld [vmem:[%s7328_s17 + $0x2c0] sm:$0xf] }
 0x594   : > { %3092 = vmatpush.bf16.msra.mxu1 %v5390_v28  ;;  %3120 = vmatpush.bf16.msra.mxu3 %v5394_v29  ;;  %v8172_v28 = vld [vmem:[%s7322_s0] sm:$0xff]  ;;  %v5798_v29 = vor.u32 %v6440_v23, %v5797_v4 }
 0x596   : > { %4082 = vmatpush.bf16.msrb.mxu2 %v5798_v29 }
 0x597   : > { %3093 = vmatmul.bf16.vlgmr.msra.gmra.mxu1 %v7540_v26  ;;  %3121 = vmatmul.bf16.vlgmr.msra.gmra.mxu3 %v7540_v26  ;;  %v5662_v26 = vor.u32 %v6406_v12, %v5661_v34  ;;  %v5926_v34 = vor.u32 %v6472_v33, %v5925_v5 }
 0x598   : > { %4067 = vmatpush.bf16.msrb.mxu1 %v5742_v3  ;;  %v6412_v3 = vld [vmem:[%s7328_s17 + $0x84] sm:$0xf0]  ;;  %4095 = vmatpush.bf16.msrb.mxu3 %v5870_v27 }
 0x599   : > { %4055 = vmatpush.bf16.msrb.mxu0 %v5662_v26  ;;  %v5686_v12 = vor.u32 %v6412_v3, %v5685_v8  ;;  %v5789_v26 = vld [vmem:[%s7328_s17 + $0x150] sm:$0xf]  ;;  %v6484_v3 = vld [vmem:[%s7328_s17 + $0x2c4] sm:$0xf0] }
 0x59a   : > { %v5790_v39 = vor.u32 %v6438_v36, %v5789_v26  ;;  %v5837_v26 = vld [vmem:[%s7328_s17 + $0x1b0] sm:$0xf]  ;;  %v6450_v36 = vld [vmem:[%s7328_s17 + $0x1b4] sm:$0xf0] }
 0x59c   : > { %4068 = vmatpush.bf16.msrb.mxu1 %v5734_v38  ;;  %v2247_v38 = vperm.slane %v8172_v28, 0  ;;  %4083 = vmatpush.bf16.msrb.mxu2 %v5790_v39 }
 0x59d   : > { %4056 = vmatpush.bf16.msrb.mxu0 %v5654_v40 }
 0x5a0   : > { %4069 = vmatpush.bf16.msrb.mxu1 %v5726_v44  ;;  %v5917_v44 = vld [vmem:[%s7328_s17 + $0x250] sm:$0xf] }
 0x5a1   : > { %4057 = vmatpush.bf16.msrb.mxu0 %v5646_v15  ;;  %v5918_v47 = vor.u32 %v6470_v46, %v5917_v44  ;;  %v6430_v46 = vld [vmem:[%s7328_s17 + $0x114] sm:$0xf0] }
 0x5a4   : > { %4070 = vmatpush.bf16.msrb.mxu1 %v5718_v51  ;;  %v6436_v51 = vld [vmem:[%s7328_s17 + $0x144] sm:$0xf0] }
 0x5a5   : > { %4058 = vmatpush.bf16.msrb.mxu0 %v5638_v48  ;;  %v5782_v56 = vor.u32 %v6436_v51, %v5781_v49  ;;  %v2250_v51 = vperm.slane %v8172_v28, 3 }
 0x5a7   : > { %4084 = vmatpush.bf16.msrb.mxu2 %v5782_v56  ;;  %v5829_v56 = vld [vmem:[%s7328_s17 + $0x1a0] sm:$0xf] }
 0x5a8   : > { %4071 = vmatpush.bf16.msrb.mxu1 %v5710_v59  ;;  %v5990_v59 = vor.u32 %v6488_v13, %v5989_v31 }
 0x5a9   : > { %4059 = vmatpush.bf16.msrb.mxu0 %v5630_v55  ;;  %v2248_v55 = vperm.slane %v8172_v28, 1 }
 0x5aa   : > { %v2070_v42 = vpop.f32.mrf.mxu0 }
 0x5ac   : > { %4072 = vmatpush.bf16.msrb.mxu1 %v5702_v63  ;;  %v6468_v63 = vld [vmem:[%s7328_s17 + $0x244] sm:$0xf0] }
 0x5ad   : > { %4060 = vmatpush.bf16.msrb.mxu0 %v5622_v35  ;;  %v6486_v35 = vld [vmem:[%s7328_s17 + $0x2d4] sm:$0xf0] }
 0x5ae   : > { %v5982_v43 = vor.u32 %v6486_v35, %v5981_v6  ;;  %v6428_v6 = vld [vmem:[%s7328_s17 + $0x104] sm:$0xf0] }
 0x5b0   : > { %v2098_v2 = vpop.f32.mrf.mxu2  ;;  %4073 = vmatpush.bf16.msrb.mxu1 %v5694_v22  ;;  %v6466_v22 = vld [vmem:[%s7328_s17 + $0x234] sm:$0xf0] }
 0x5b1   : > { %4109 = vmatpush.bf16.msra.mxu0 %v5934_v20  ;;  %v6452_v20 = vld [vmem:[%s7328_s17 + $0x1c4] sm:$0xf0] }
 0x5b2   : > { %v2072_v50 = vpop.f32.mrf.mxu0 }
 0x5b4   : > { %v2084_v54 = vpop.f32.mrf.mxu1  ;;  %4074 = vmatpush.bf16.msrb.mxu1 %v5686_v12  ;;  %v5974_v12 = vor.u32 %v6484_v3, %v5973_v0  ;;  %v6506_v3 = vld [vmem:[%s7328_s17 + $0x374] sm:$0xf0] }
 0x5b5   : > { %v8155_v60 = vadd.f32 %v2084_v54, %v2070_v42  ;;  %4110 = vmatpush.bf16.msra.mxu0 %v5926_v34  ;;  %v6456_v42 = vld [vmem:[%s7328_s17 + $0x1e4] sm:$0xf0]  ;;  %v5909_v54 = vld [vmem:[%s7328_s17 + $0x240] sm:$0xf] }
 0x5b6   : > { %v5862_v45 = vor.u32 %v6456_v42, %v5861_v41  ;;  %v5910_v1 = vor.u32 %v6468_v63, %v5909_v54  ;;  %v2249_v41 = vperm.slane %v8172_v28, 2  ;;  %v5838_v42 = vor.u32 %v6450_v36, %v5837_v26  ;;  %v6462_v54 = vld [vmem:[%s7328_s17 + $0x214] sm:$0xf0] }
 0x5b8   : > { %v2100_v10 = vpop.f32.mrf.mxu2  ;;  %4123 = vmatpush.bf16.msra.mxu1 %v5998_v19  ;;  %4096 = vmatpush.bf16.msrb.mxu3 %v5862_v45  ;;  %v6464_v19 = vld [vmem:[%s7328_s17 + $0x224] sm:$0xf0]  ;;  %v5757_v45 = vld [vmem:[%s7328_s17 + $0x110] sm:$0xf] }
 0x5b9   : > { %4111 = vmatpush.bf16.msra.mxu0 %v5918_v47  ;;  %v5894_v44 = vor.u32 %v6464_v19, %v5893_v37  ;;  %v5758_v31 = vor.u32 %v6430_v46, %v5757_v45  ;;  %v6444_v45 = vld [vmem:[%s7328_s17 + $0x184] sm:$0xf0] }
 0x5ba   : > { %v2112_v18 = vpop.f32.mrf.mxu3  ;;  %v2912_v58 = vpop.f32.mrf.mxu0 }
 0x5bb   : > { %v8169_v24 = vadd.f32 %v2112_v18, %v2098_v2  ;;  %v2913_v52 = vadd.f32 %v2912_v58, %v2247_v38  ;;  %v5846_v18 = vor.u32 %v6452_v20, %v5845_v14  ;;  %v5901_v58 = vld [vmem:[%s7328_s17 + $0x230] sm:$0xf]  ;;  %v6480_v14 = vld [vmem:[%s7328_s17 + $0x2a4] sm:$0xf0] }
 0x5bc   : > { %v2086_v30 = vpop.f32.mrf.mxu1  ;;  %4124 = vmatpush.bf16.msra.mxu1 %v5990_v59  ;;  %4097 = vmatpush.bf16.msrb.mxu3 %v5854_v62  ;;  %v5902_v29 = vor.u32 %v6466_v22, %v5901_v58  ;;  %v5821_v58 = vld [vmem:[%s7328_s17 + $0x190] sm:$0xf]  ;;  %v6446_v22 = vld [vmem:[%s7328_s17 + $0x194] sm:$0xf0] }
 0x5bd   : > { %v8177_v32 = vadd.f32 %v2086_v30, %v2072_v50  ;;  %4112 = vmatpush.bf16.msra.mxu0 %v5910_v1  ;;  %v5765_v30 = vld [vmem:[%s7328_s17 + $0x120] sm:$0xf]  ;;  %v5830_v1 = vor.u32 %v6448_v21, %v5829_v56 }
 0x5be   : > { %v5766_v8 = vor.u32 %v6432_v7, %v5765_v30  ;;  %v6460_v7 = vld [vmem:[%s7328_s17 + $0x204] sm:$0xf0]  ;;  %v5941_v21 = vld [vmem:[%s7328_s17 + $0x280] sm:$0xf] }
 0x5c0   : > { %v2940_v40 = vpop.f32.mrf.mxu2  ;;  %4125 = vmatpush.bf16.msra.mxu1 %v5982_v43  ;;  %4098 = vmatpush.bf16.msrb.mxu3 %v5846_v18 }
 0x5c1   : > { %v2941_v16 = vadd.f32 %v2940_v40, %v2248_v55  ;;  %4113 = vmatpush.bf16.msra.mxu0 %v5902_v29 }
 0x5c2   : > { %v2114_v15 = vpop.f32.mrf.mxu3  ;;  %v2914_v48 = vpop.f32.mrf.mxu0 }
 0x5c3   : > { %v8196_v2 = vadd.f32 %v2114_v15, %v2100_v10  ;;  %v5774_v10 = vor.u32 %v6434_v25, %v5773_v53  ;;  %v2915_v5 = vadd.f32 %v2914_v48, %v2247_v38  ;;  %v6482_v48 = vld [vmem:[%s7328_s17 + $0x2b4] sm:$0xf0]  ;;  %v5886_v53 = vor.u32 %v6462_v54, %v5885_v57  ;;  %v5749_v25 = vld [vmem:[%s7328_s17 + $0x100] sm:$0xf] }
 0x5c4   : > { %v2926_v50 = vpop.f32.mrf.mxu1  ;;  %4126 = vmatpush.bf16.msra.mxu1 %v5974_v12  ;;  %4099 = vmatpush.bf16.msrb.mxu3 %v5838_v42  ;;  %v6478_v42 = vld [vmem:[%s7328_s17 + $0x294] sm:$0xf0] }
 0x5c5   : > { %v8203_v61 = vadd.f32 %v2926_v50, %v2913_v52  ;;  %4085 = vmatpush.bf16.msrb.mxu2 %v5774_v10  ;;  %4114 = vmatpush.bf16.msra.mxu0 %v5894_v44  ;;  %v5965_v52 = vld [vmem:[%s7328_s17 + $0x2b0] sm:$0xf]  ;;  %v5813_v44 = vld [vmem:[%s7328_s17 + $0x180] sm:$0xf] }
 0x5c6   : > { %v5966_v63 = vor.u32 %v6482_v48, %v5965_v52  ;;  %v6504_v52 = vld [vmem:[%s7328_s17 + $0x364] sm:$0xf0] }
 0x5c7   : > { %v3143_v9 = vmul.f32 0.044715, %v8203_v61 }
 0x5c8   : > { %v2942_v4 = vpop.f32.mrf.mxu2  ;;  %4127 = vmatpush.bf16.msra.mxu1 %v5966_v63  ;;  %4100 = vmatpush.bf16.msrb.mxu3 %v5830_v1  ;;  %v6522_v63 = vld [vmem:[%s7328_s17 + $0x3f4] sm:$0xf0] }
 0x5c9   : > { %v3159_v17 = vmul.f32 %v3143_v9, %v8203_v61  ;;  %4086 = vmatpush.bf16.msrb.mxu2 %v5766_v8  ;;  %v2943_v13 = vadd.f32 %v2942_v4, %v2248_v55  ;;  %v5957_v9 = vld [vmem:[%s7328_s17 + $0x2a0] sm:$0xf]  ;;  %4115 = vmatpush.bf16.msra.mxu0 %v5886_v53  ;;  %v6061_v8 = vld [vmem:[%s7328_s17 + $0x370] sm:$0xf] }
 0x5ca   : > { %v2954_v23 = vpop.f32.mrf.mxu3  ;;  %v2968_v11 = vpop.f32.mrf.mxu0  ;;  %v5958_v18 = vor.u32 %v6480_v14, %v5957_v9  ;;  %v5877_v4 = vld [vmem:[%s7328_s17 + $0x200] sm:$0xf]  ;;  %v6062_v37 = vor.u32 %v6506_v3, %v6061_v8  ;;  %v6502_v14 = vld [vmem:[%s7328_s17 + $0x354] sm:$0xf0] }
 0x5cb   : > { %v3175_v27 = vmul.f32 %v3159_v17, %v8203_v61  ;;  %v8224_v33 = vadd.f32 %v2954_v23, %v2941_v16  ;;  %v2969_v10 = vadd.f32 %v2968_v11, %v2249_v41  ;;  %v5750_v17 = vor.u32 %v6428_v6, %v5749_v25 }
 0x5cc   : > { %v2928_v34 = vpop.f32.mrf.mxu1  ;;  %4128 = vmatpush.bf16.msra.mxu1 %v5958_v18  ;;  %v6409_v18 = vld [vmem:[%s7328_s17 + $0x74] sm:$0xf] }
 0x5cd   : > { %v3191_v39 = vadd.f32 %v3175_v27, %v8203_v61  ;;  %v3144_v38 = vmul.f32 0.044715, %v8224_v33  ;;  %v8232_v40 = vadd.f32 %v2928_v34, %v2915_v5  ;;  %4087 = vmatpush.bf16.msrb.mxu2 %v5758_v31  ;;  %v5822_v5 = vor.u32 %v6446_v22, %v5821_v58  ;;  %v6053_v31 = vld [vmem:[%s7328_s17 + $0x360] sm:$0xf]  ;;  %v5679_v58 = vld [vmem:[%s7328_s17 + $0x78] sm:$0xf0] }
 0x5ce   : > { %v5878_v27 = vor.u32 %v6460_v7, %v5877_v4  ;;  %v3127_v4 = vmul.f32 0.5, %v8203_v61  ;;  %v6520_v61 = vld [vmem:[%s7328_s17 + $0x3e4] sm:$0xf0] }
 0x5cf   : > { %v3207_v15 = vmul.f32 0.7978845, %v3191_v39  ;;  %v3160_v47 = vmul.f32 %v3144_v38, %v8224_v33  ;;  %v3151_v49 = vmul.f32 0.044715, %v8232_v40  ;;  %4101 = vmatpush.bf16.msrb.mxu3 %v5822_v5  ;;  %v5949_v39 = vld [vmem:[%s7328_s17 + $0x290] sm:$0xf] }
 0x5d0   : > { %v2996_v20 = vpop.f32.mrf.mxu2  ;;  %4116 = vmatpush.bf16.msra.mxu0 %v5878_v27 }
 0x5d1   : > { %v3176_v50 = vmul.f32 %v3160_v47, %v8224_v33  ;;  %v3167_v59 = vmul.f32 %v3151_v49, %v8232_v40  ;;  %6638 = vtanh.f32 %v3207_v15  ;;  %4088 = vmatpush.bf16.msrb.mxu2 %v5750_v17  ;;  %v2997_v38 = vadd.f32 %v2996_v20, %v2250_v51 }
 0x5d2   : > { %v2956_v62 = vpop.f32.mrf.mxu3  ;;  %v2970_v26 = vpop.f32.mrf.mxu0  ;;  %v5950_v47 = vor.u32 %v6478_v42, %v5949_v39  ;;  %v5814_v49 = vor.u32 %v6444_v45, %v5813_v44  ;;  %v6500_v39 = vld [vmem:[%s7328_s17 + $0x344] sm:$0xf0]  ;;  %v6109_v44 = vld [vmem:[%s7328_s17 + $0x3d0] sm:$0xf]  ;;  %v6518_v45 = vld [vmem:[%s7328_s17 + $0x3d4] sm:$0xf0] }
 0x5d3   : > { %v3192_v55 = vadd.f32 %v3176_v50, %v8224_v33  ;;  %v3183_v35 = vmul.f32 %v3167_v59, %v8232_v40  ;;  %v8258_v43 = vadd.f32 %v2956_v62, %v2943_v13  ;;  %v2971_v46 = vadd.f32 %v2970_v26, %v2249_v41  ;;  %v6476_v41 = vld [vmem:[%s7328_s17 + $0x284] sm:$0xf0]  ;;  %v6125_v62 = vld [vmem:[%s7328_s17 + $0x3f0] sm:$0xf] }
 0x5d4   : > { %v2982_v16 = vpop.f32.mrf.mxu1  ;;  %v6054_v59 = vor.u32 %v6504_v52, %v6053_v31  ;;  %4129 = vmatpush.bf16.msra.mxu1 %v5950_v47  ;;  %4102 = vmatpush.bf16.msrb.mxu3 %v5814_v49  ;;  %v5942_v54 = vor.u32 %v6476_v41, %v5941_v21  ;;  %v5682_v26 = vor.u32 %v6409_v18, %v5679_v58  ;;  %v5671_v49 = vld [vmem:[%s7328_s17 + $0x68] sm:$0xf0]  ;;  %v6425_v31 = vld [vmem:[%s7328_s17 + $0xf4] sm:$0xf]  ;;  %v5743_v21 = vld [vmem:[%s7328_s17 + $0xf8] sm:$0xf0] }
 0x5d5   : > { %v3199_v23 = vadd.f32 %v3183_v35, %v8232_v40  ;;  %v3152_v29 = vmul.f32 0.044715, %v8258_v43  ;;  %v8266_v30 = vadd.f32 %v2982_v16, %v2969_v10  ;;  %v3208_v0 = vmul.f32 0.7978845, %v3192_v55  ;;  %4137 = vmatpush.bf16.msra.mxu2 %v6062_v37  ;;  %v6045_v35 = vld [vmem:[%s7328_s17 + $0x350] sm:$0xf] }
 0x5d6   : > { %v6126_v10 = vor.u32 %v6522_v63, %v6125_v62  ;;  %v6046_v7 = vor.u32 %v6502_v14, %v6045_v35  ;;  %v6037_v37 = vld [vmem:[%s7328_s17 + $0x340] sm:$0xf]  ;;  %v6110_v52 = vor.u32 %v6518_v45, %v6109_v44  ;;  %v6516_v35 = vld [vmem:[%s7328_s17 + $0x3c4] sm:$0xf0] }
 0x5d7   : > { %v3215_v34 = vmul.f32 0.7978845, %v3199_v23  ;;  %v3168_v12 = vmul.f32 %v3152_v29, %v8258_v43  ;;  %v3145_v36 = vmul.f32 0.044715, %v8266_v30  ;;  %v6639_v48 = vpop.eup %6638  ;;  %v3135_v23 = vmul.f32 0.5, %v8232_v40 }
 0x5d8   : > { %v2998_v9 = vpop.f32.mrf.mxu2  ;;  %v3239_v55 = vadd.f32 1.0, %v6639_v48  ;;  %4130 = vmatpush.bf16.msra.mxu1 %v5942_v54  ;;  %4151 = vmatpush.bf16.msra.mxu3 %v6126_v10  ;;  %v6038_v42 = vor.u32 %v6500_v39, %v6037_v37  ;;  %v6498_v54 = vld [vmem:[%s7328_s17 + $0x334] sm:$0xf0]  ;;  %v5663_v10 = vld [vmem:[%s7328_s17 + $0x58] sm:$0xf0] }
 0x5d9   : > { %v3184_v11 = vmul.f32 %v3168_v12, %v8258_v43  ;;  %v3161_v19 = vmul.f32 %v3145_v36, %v8266_v30  ;;  %6640 = vtanh.f32 %v3215_v34  ;;  %4138 = vmatpush.bf16.msra.mxu2 %v6054_v59  ;;  %v2999_v27 = vadd.f32 %v2998_v9, %v2250_v51  ;;  %v6013_v37 = vld [vmem:[%s7328_s17 + $0x310] sm:$0xf]  ;;  %v6494_v39 = vld [vmem:[%s7328_s17 + $0x314] sm:$0xf0] }
 0x5da   : > { %v3010_v15 = vpop.f32.mrf.mxu3  ;;  %6642 = vtanh.f32 %v3208_v0  ;;  %v6117_v0 = vld [vmem:[%s7328_s17 + $0x3e0] sm:$0xf]  ;;  %v3255_v34 = vmul.f32 %v3239_v55, %v3127_v4  ;;  %v5735_v4 = vld [vmem:[%s7328_s17 + $0xe8] sm:$0xf0]  ;;  %v6014_v44 = vor.u32 %v6494_v39, %v6013_v37 }
 0x5db   : > { %v3200_v56 = vadd.f32 %v3184_v11, %v8258_v43  ;;  %v3177_v13 = vmul.f32 %v3161_v19, %v8266_v30  ;;  %v8287_v50 = vadd.f32 %v3010_v15, %v2997_v38  ;;  %v6118_v36 = vor.u32 %v6520_v61, %v6117_v0  ;;  %v6407_v19 = vld [vmem:[%s7328_s17 + $0x64] sm:$0xf] }
 0x5dc   : > { %v2984_v57 = vpop.f32.mrf.mxu1  ;;  %v3128_v15 = vmul.f32 0.5, %v8224_v33  ;;  %v3136_v33 = vmul.f32 0.5, %v8258_v43  ;;  %v6101_v43 = vld [vmem:[%s7328_s17 + $0x3c0] sm:$0xf]  ;;  %v2252_v61 = vperm.slane %v8172_v28, 5 }
 0x5dd   : > { %v3216_v1 = vmul.f32 0.7978845, %v3200_v56  ;;  %v3193_v53 = vadd.f32 %v3177_v13, %v8266_v30  ;;  %v3146_v25 = vmul.f32 0.044715, %v8287_v50  ;;  %v8295_v6 = vadd.f32 %v2984_v57, %v2971_v46  ;;  %4139 = vmatpush.bf16.msra.mxu2 %v6046_v7  ;;  %4152 = vmatpush.bf16.msra.mxu3 %v6118_v36  ;;  %v6029_v57 = vld [vmem:[%s7328_s17 + $0x330] sm:$0xf] }
 0x5df   : > { %v6641_v20 = vpop.eup %6640  ;;  %v3162_v16 = vmul.f32 %v3146_v25, %v8287_v50  ;;  %v3153_v17 = vmul.f32 0.044715, %v8295_v6  ;;  %6644 = vtanh.f32 %v3216_v1  ;;  %v3209_v5 = vmul.f32 0.7978845, %v3193_v53  ;;  %v6405_v53 = vld [vmem:[%s7328_s17 + $0x54] sm:$0xf] }
 0x5e0   : > { %v6643_v22 = vpop.eup %6642  ;;  %v3247_v29 = vadd.f32 1.0, %v6641_v20  ;;  %v5674_v1 = vor.u32 %v6407_v19, %v5671_v49  ;;  %v6030_v25 = vor.u32 %v6498_v54, %v6029_v57  ;;  %v5746_v20 = vor.u32 %v6425_v31, %v5743_v21  ;;  %v6421_v19 = vld [vmem:[%s7328_s17 + $0xd4] sm:$0xf]  ;;  %v6085_v49 = vld [vmem:[%s7328_s17 + $0x3a0] sm:$0xf] }
 0x5e1   : > { %v3178_v8 = vmul.f32 %v3162_v16, %v8287_v50  ;;  %v3169_v3 = vmul.f32 %v3153_v17, %v8295_v6  ;;  %v3240_v47 = vadd.f32 1.0, %v6643_v22  ;;  %6646 = vtanh.f32 %v3209_v5  ;;  %4140 = vmatpush.bf16.msra.mxu2 %v6038_v42  ;;  %4153 = vmatpush.bf16.msra.mxu3 %v6110_v52  ;;  %v6021_v17 = vld [vmem:[%s7328_s17 + $0x320] sm:$0xf]  ;;  %v6423_v22 = vld [vmem:[%s7328_s17 + $0xe4] sm:$0xf] }
 0x5e2   : > { %v3012_v40 = vpop.f32.mrf.mxu3  ;;  %v3263_v12 = vmul.f32 %v3247_v29, %v3135_v23  ;;  %v6102_v16 = vor.u32 %v6516_v35, %v6101_v43  ;;  %v6496_v23 = vld [vmem:[%s7328_s17 + $0x324] sm:$0xf0]  ;;  %v5666_v0 = vor.u32 %v6405_v53, %v5663_v10  ;;  %v5738_v36 = vor.u32 %v6423_v22, %v5735_v4  ;;  %v5727_v42 = vld [vmem:[%s7328_s17 + $0xd8] sm:$0xf0]  ;;  %v5719_v54 = vld [vmem:[%s7328_s17 + $0xc8] sm:$0xf0] }
 0x5e3   : > { %v3194_v38 = vadd.f32 %v3178_v8, %v8287_v50  ;;  %v3185_v51 = vmul.f32 %v3169_v3, %v8295_v6  ;;  %v8315_v11 = vadd.f32 %v3012_v40, %v2999_v27  ;;  %v3256_v9 = vmul.f32 %v3240_v47, %v3128_v15  ;;  %v6093_v27 = vld [vmem:[%s7328_s17 + $0x3b0] sm:$0xf]  ;;  %v6514_v8 = vld [vmem:[%s7328_s17 + $0x3b4] sm:$0xf0]  ;;  %v6403_v40 = vld [vmem:[%s7328_s17 + $0x44] sm:$0xf] }
 0x5e4   : > { %v8320_v46 = vpack.c.bf16 %v3263_v12, %v3255_v34  ;;  %v6022_v5 = vor.u32 %v6496_v23, %v6021_v17  ;;  %v2251_v3 = vperm.slane %v8172_v28, 4  ;;  %v5655_v34 = vld [vmem:[%s7328_s17 + $0x48] sm:$0xf0]  ;;  %v6094_v12 = vor.u32 %v6514_v8, %v6093_v27  ;;  %v6401_v47 = vld [vmem:[%s7328_s17 + $0x34] sm:$0xf] }
 0x5e5   : > { %v6645_v48 = vpop.eup %6644  ;;  %v3210_v56 = vmul.f32 0.7978845, %v3194_v38  ;;  %v3201_v13 = vadd.f32 %v3185_v51, %v8295_v6  ;;  %v3154_v59 = vmul.f32 0.044715, %v8315_v11  ;;  %4141 = vmatpush.bf16.msra.mxu2 %v6030_v25  ;;  %4154 = vmatpush.bf16.msra.mxu3 %v6102_v16  ;;  %v3129_v38 = vmul.f32 0.5, %v8266_v30 }
 0x5e6   : > { %4061 = vmatmul.bf16.vlgmr.msrb.gmra.mxu0 %v8320_v46  ;;  %v3248_v41 = vadd.f32 1.0, %v6645_v48  ;;  %v5658_v15 = vor.u32 %v6403_v40, %v5655_v34  ;;  %v6512_v31 = vld [vmem:[%s7328_s17 + $0x3a4] sm:$0xf0]  ;;  %v3137_v48 = vmul.f32 0.5, %v8295_v6  ;;  %v5730_v57 = vor.u32 %v6421_v19, %v5727_v42  ;;  %v6399_v25 = vld [vmem:[%s7328_s17 + $0x24] sm:$0xf] }
 0x5e7   : > { %v3217_v62 = vmul.f32 0.7978845, %v3201_v13  ;;  %v3170_v63 = vmul.f32 %v3154_v59, %v8315_v11  ;;  %4165 = vmatpush.bf16.msrb.mxu0 %v5682_v26  ;;  %v6647_v29 = vpop.eup %6646  ;;  %v5647_v13 = vld [vmem:[%s7328_s17 + $0x38] sm:$0xf0]  ;;  %v6419_v59 = vld [vmem:[%s7328_s17 + $0xc4] sm:$0xf]  ;;  %v6086_v21 = vor.u32 %v6512_v31, %v6085_v49 }
 0x5e8   : > { %v3264_v55 = vmul.f32 %v3248_v41, %v3136_v33  ;;  %v3241_v51 = vadd.f32 1.0, %v6647_v29  ;;  %v5650_v43 = vor.u32 %v6401_v47, %v5647_v13  ;;  %v5639_v35 = vld [vmem:[%s7328_s17 + $0x28] sm:$0xf0]  ;;  %v6510_v4 = vld [vmem:[%s7328_s17 + $0x394] sm:$0xf0]  ;;  %v3130_v29 = vmul.f32 0.5, %v8287_v50 }
 0x5e9   : > { %v3186_v14 = vmul.f32 %v3170_v63, %v8315_v11  ;;  %6648 = vtanh.f32 %v3217_v62  ;;  %4142 = vmatpush.bf16.msra.mxu2 %v6022_v5  ;;  %4155 = vmatpush.bf16.msra.mxu3 %v6094_v12  ;;  %v6005_v62 = vld [vmem:[%s7328_s17 + $0x300] sm:$0xf]  ;;  %v6492_v63 = vld [vmem:[%s7328_s17 + $0x304] sm:$0xf0]  ;;  %v6417_v5 = vld [vmem:[%s7328_s17 + $0xb4] sm:$0xf] }
 0x5ea   : > { %v3024_v18 = vpop.f32.mrf.mxu0  ;;  %v8339_v58 = vpack.c.bf16 %v3264_v55, %v3256_v9  ;;  %6650 = vtanh.f32 %v3210_v56  ;;  %v3257_v6 = vmul.f32 %v3241_v51, %v3129_v38  ;;  %v6441_v9 = vld [vmem:[%s7328_s17 + $0x174] sm:$0xf]  ;;  %v5807_v55 = vld [vmem:[%s7328_s17 + $0x178] sm:$0xf0]  ;;  %v6439_v50 = vld [vmem:[%s7328_s17 + $0x164] sm:$0xf] }
 0x5eb   : > { %v3202_v7 = vadd.f32 %v3186_v14, %v8315_v11  ;;  %4166 = vmatpush.bf16.msrb.mxu0 %v5674_v1  ;;  %v3025_v30 = vadd.f32 %v3024_v18, %v2251_v3  ;;  %v6006_v14 = vor.u32 %v6492_v63, %v6005_v62  ;;  %v5810_v22 = vor.u32 %v6441_v9, %v5807_v55  ;;  %v5711_v27 = vld [vmem:[%s7328_s17 + $0xb8] sm:$0xf0]  ;;  %v6069_v51 = vld [vmem:[%s7328_s17 + $0x380] sm:$0xf]  ;;  %v6415_v31 = vld [vmem:[%s7328_s17 + $0xa4] sm:$0xf] }
 0x5ec   : > { %4075 = vmatmul.bf16.vlgmr.msrb.gmra.mxu1 %v8339_v58  ;;  %v5714_v49 = vor.u32 %v6417_v5, %v5711_v27  ;;  %v5791_v63 = vld [vmem:[%s7328_s17 + $0x158] sm:$0xf0]  ;;  %v5623_v9 = vld [vmem:[%s7328_s17 + $0x8] sm:$0xf0] }
 0x5ed   : > { %v3218_v26 = vmul.f32 0.7978845, %v3202_v7  ;;  %4179 = vmatpush.bf16.msrb.mxu1 %v5746_v20  ;;  %4143 = vmatpush.bf16.msra.mxu2 %v6014_v44  ;;  %v6077_v20 = vld [vmem:[%s7328_s17 + $0x390] sm:$0xf]  ;;  %v3138_v7 = vmul.f32 0.5, %v8315_v11 }
 0x5ee   : > { %4156 = vmatpush.bf16.msra.mxu3 %v6086_v21  ;;  %v6078_v8 = vor.u32 %v6510_v4, %v6077_v20  ;;  %v5799_v11 = vld [vmem:[%s7328_s17 + $0x168] sm:$0xf0]  ;;  %v5695_v4 = vld [vmem:[%s7328_s17 + $0x98] sm:$0xf0] }
 0x5ef   : > { %v6649_v45 = vpop.eup %6648  ;;  %6652 = vtanh.f32 %v3218_v26  ;;  %4167 = vmatpush.bf16.msrb.mxu0 %v5666_v0  ;;  %v5722_v0 = vor.u32 %v6419_v59, %v5719_v54  ;;  %v5642_v26 = vor.u32 %v6399_v25, %v5639_v35  ;;  %v5802_v38 = vor.u32 %v6439_v50, %v5799_v11  ;;  %v6395_v25 = vld [vmem:[%s7328_s17 + $0x4] sm:$0xf]  ;;  %v5783_v5 = vld [vmem:[%s7328_s17 + $0x148] sm:$0xf0] }
 0x5f0   : > { %v6651_v52 = vpop.eup %6650  ;;  %v3249_v56 = vadd.f32 1.0, %v6649_v45  ;;  %v3052_v33 = vpop.f32.mrf.mxu2  ;;  %v6397_v45 = vld [vmem:[%s7328_s17 + $0x14] sm:$0xf]  ;;  %v6455_v35 = vld [vmem:[%s7328_s17 + $0x1e4] sm:$0xf] }
 0x5f1   : > { %4180 = vmatpush.bf16.msrb.mxu1 %v5738_v36  ;;  %v3242_v10 = vadd.f32 1.0, %v6651_v52  ;;  %v3053_v40 = vadd.f32 %v3052_v33, %v2252_v61  ;;  %4144 = vmatpush.bf16.msra.mxu2 %v6006_v14  ;;  %v5703_v33 = vld [vmem:[%s7328_s17 + $0xa8] sm:$0xf0] }
 0x5f2   : > { %v3265_v53 = vmul.f32 %v3249_v56, %v3137_v48  ;;  %v3026_v16 = vpop.f32.mrf.mxu0  ;;  %4157 = vmatpush.bf16.msra.mxu3 %v6078_v8  ;;  %v5871_v48 = vld [vmem:[%s7328_s17 + $0x1f8] sm:$0xf0]  ;;  %v5706_v55 = vor.u32 %v6415_v31, %v5703_v33  ;;  %v5863_v14 = vld [vmem:[%s7328_s17 + $0x1e8] sm:$0xf0] }
 0x5f3   : > { %4168 = vmatpush.bf16.msrb.mxu0 %v5658_v15  ;;  %v3027_v36 = vadd.f32 %v3026_v16, %v2251_v3  ;;  %v3258_v39 = vmul.f32 %v3242_v10, %v3130_v29  ;;  %v5631_v15 = vld [vmem:[%s7328_s17 + $0x18] sm:$0xf0]  ;;  %v6508_v3 = vld [vmem:[%s7328_s17 + $0x384] sm:$0xf0]  ;;  %v6413_v10 = vld [vmem:[%s7328_s17 + $0x94] sm:$0xf] }
 0x5f4   : > { %v3038_v41 = vpop.f32.mrf.mxu1  ;;  %v8376_v18 = vpack.c.bf16 %v3265_v53, %v3257_v6  ;;  %v6070_v52 = vor.u32 %v6508_v3, %v6069_v51  ;;  %v5634_v54 = vor.u32 %v6397_v45, %v5631_v15  ;;  %v5775_v51 = vld [vmem:[%s7328_s17 + $0x138] sm:$0xf0]  ;;  %v6451_v3 = vld [vmem:[%s7328_s17 + $0x1c4] sm:$0xf] }
 0x5f5   : > { %v8368_v1 = vadd.f32 %v3038_v41, %v3025_v30  ;;  %v6653_v23 = vpop.eup %6652  ;;  %4181 = vmatpush.bf16.msrb.mxu1 %v5730_v57  ;;  %v6457_v30 = vld [vmem:[%s7328_s17 + $0x1f4] sm:$0xf] }
 0x5f6   : > { %4089 = vmatmul.bf16.vlgmr.msrb.gmra.mxu2 %v8376_v18  ;;  %v3250_v12 = vadd.f32 1.0, %v6653_v23  ;;  %v6437_v41 = vld [vmem:[%s7328_s17 + $0x154] sm:$0xf]  ;;  %v5874_v62 = vor.u32 %v6457_v30, %v5871_v48  ;;  %4158 = vmatpush.bf16.msra.mxu3 %v6070_v52  ;;  %v6435_v23 = vld [vmem:[%s7328_s17 + $0x144] sm:$0xf] }
 0x5f7   : > { %v3147_v17 = vmul.f32 0.044715, %v8368_v1  ;;  %4169 = vmatpush.bf16.msrb.mxu0 %v5650_v43  ;;  %4193 = vmatpush.bf16.msrb.mxu2 %v5810_v22  ;;  %v5794_v43 = vor.u32 %v6437_v41, %v5791_v63  ;;  %v6431_v30 = vld [vmem:[%s7328_s17 + $0x124] sm:$0xf]  ;;  %v5767_v48 = vld [vmem:[%s7328_s17 + $0x128] sm:$0xf0] }
 0x5f8   : > { %v3266_v44 = vmul.f32 %v3250_v12, %v3138_v7  ;;  %v3054_v57 = vpop.f32.mrf.mxu2  ;;  %v5626_v7 = vor.u32 %v6395_v25, %v5623_v9  ;;  %v5855_v12 = vld [vmem:[%s7328_s17 + $0x1d8] sm:$0xf0]  ;;  %v5770_v33 = vor.u32 %v6431_v30, %v5767_v48  ;;  %v6449_v41 = vld [vmem:[%s7328_s17 + $0x1b4] sm:$0xf]  ;;  %v6443_v48 = vld [vmem:[%s7328_s17 + $0x184] sm:$0xf] }
 0x5f9   : > { %v3163_v34 = vmul.f32 %v3147_v17, %v8368_v1  ;;  %4182 = vmatpush.bf16.msrb.mxu1 %v5722_v0  ;;  %v3055_v16 = vadd.f32 %v3054_v57, %v2252_v61  ;;  %v5866_v0 = vor.u32 %v6455_v35, %v5863_v14  ;;  %v5839_v57 = vld [vmem:[%s7328_s17 + $0x1b8] sm:$0xf0]  ;;  %v6447_v35 = vld [vmem:[%s7328_s17 + $0x1a4] sm:$0xf]  ;;  %v5831_v14 = vld [vmem:[%s7328_s17 + $0x1a8] sm:$0xf0] }
 0x5fa   : > { %v3066_v37 = vpop.f32.mrf.mxu3  ;;  %v8405_v21 = vpack.c.bf16 %v3266_v44, %v3258_v39  ;;  %v5759_v25 = vld [vmem:[%s7328_s17 + $0x118] sm:$0xf0] }
 0x5fb   : > { %v3179_v19 = vmul.f32 %v3163_v34, %v8368_v1  ;;  %v8393_v42 = vadd.f32 %v3066_v37, %v3053_v40  ;;  %4170 = vmatpush.bf16.msrb.mxu0 %v5642_v26  ;;  %4194 = vmatpush.bf16.msrb.mxu2 %v5802_v38  ;;  %v5786_v40 = vor.u32 %v6435_v23, %v5783_v5  ;;  %v6453_v34 = vld [vmem:[%s7328_s17 + $0x1d4] sm:$0xf]  ;;  %v5687_v37 = vld [vmem:[%s7328_s17 + $0x88] sm:$0xf0] }
 0x5fc   : > { %v3040_v47 = vpop.f32.mrf.mxu1  ;;  %4103 = vmatmul.bf16.vlgmr.msrb.gmra.mxu3 %v8405_v21  ;;  %v5698_v26 = vor.u32 %v6413_v10, %v5695_v4  ;;  %v5858_v39 = vor.u32 %v6453_v34, %v5855_v12  ;;  %v6433_v38 = vld [vmem:[%s7328_s17 + $0x134] sm:$0xf] }
 0x5fd   : > { %v3195_v56 = vadd.f32 %v3179_v19, %v8368_v1  ;;  %v3148_v13 = vmul.f32 0.044715, %v8393_v42  ;;  %v8403_v59 = vadd.f32 %v3040_v47, %v3027_v36  ;;  %4183 = vmatpush.bf16.msrb.mxu1 %v5714_v49  ;;  %4207 = vmatpush.bf16.msrb.mxu3 %v5874_v62  ;;  %v6411_v36 = vld [vmem:[%s7328_s17 + $0x84] sm:$0xf]  ;;  %v5778_v15 = vor.u32 %v6433_v38, %v5775_v51  ;;  %v5847_v49 = vld [vmem:[%s7328_s17 + $0x1c8] sm:$0xf0] }
 0x5fe   : > { %v5690_v47 = vor.u32 %v6411_v36, %v5687_v37  ;;  %v5850_v52 = vor.u32 %v6451_v3, %v5847_v49  ;;  %v6473_v10 = vld [vmem:[%s7328_s17 + $0x274] sm:$0xf]  ;;  %v6471_v36 = vld [vmem:[%s7328_s17 + $0x264] sm:$0xf]  ;;  %v5927_v37 = vld [vmem:[%s7328_s17 + $0x268] sm:$0xf0] }
 0x5ff   : > { %v3164_v6 = vmul.f32 %v3148_v13, %v8393_v42  ;;  %v3155_v53 = vmul.f32 0.044715, %v8403_v59  ;;  %v3211_v20 = vmul.f32 0.7978845, %v3195_v56  ;;  %4171 = vmatpush.bf16.msrb.mxu0 %v5634_v54  ;;  %4195 = vmatpush.bf16.msrb.mxu2 %v5794_v43  ;;  %v2253_v54 = vperm.slane %v8172_v28, 6 }
 0x600   : > { %v3132_v3 = vmul.f32 0.5, %v8393_v42  ;;  %v5930_v30 = vor.u32 %v6471_v36, %v5927_v37 }
 0x601   : > { %v3180_v17 = vmul.f32 %v3164_v6, %v8393_v42  ;;  %v3171_v22 = vmul.f32 %v3155_v53, %v8403_v59  ;;  %4184 = vmatpush.bf16.msrb.mxu1 %v5706_v55  ;;  %6654 = vtanh.f32 %v3211_v20  ;;  %4208 = vmatpush.bf16.msrb.mxu3 %v5866_v0  ;;  %v5842_v6 = vor.u32 %v6449_v41, %v5839_v57  ;;  %v6429_v53 = vld [vmem:[%s7328_s17 + $0x114] sm:$0xf]  ;;  %v5751_v0 = vld [vmem:[%s7328_s17 + $0x108] sm:$0xf0] }
 0x602   : > { %v3068_v29 = vpop.f32.mrf.mxu3  ;;  %v5762_v43 = vor.u32 %v6429_v53, %v5759_v25  ;;  %v3131_v20 = vmul.f32 0.5, %v8368_v1 }
 0x603   : > { %v3196_v27 = vadd.f32 %v3180_v17, %v8393_v42  ;;  %v3187_v61 = vmul.f32 %v3171_v22, %v8403_v59  ;;  %v8427_v8 = vadd.f32 %v3068_v29, %v3055_v16  ;;  %4172 = vmatpush.bf16.msrb.mxu0 %v5626_v7  ;;  %4196 = vmatpush.bf16.msrb.mxu2 %v5786_v40  ;;  %v3139_v16 = vmul.f32 0.5, %v8403_v59  ;;  %v5935_v22 = vld [vmem:[%s7328_s17 + $0x278] sm:$0xf0]  ;;  %v6427_v7 = vld [vmem:[%s7328_s17 + $0x104] sm:$0xf] }
 0x604   : > { %v5834_v29 = vor.u32 %v6447_v35, %v5831_v14  ;;  %v5938_v34 = vor.u32 %v6473_v10, %v5935_v22  ;;  %v5754_v12 = vor.u32 %v6427_v7, %v5751_v0  ;;  %v5919_v42 = vld [vmem:[%s7328_s17 + $0x258] sm:$0xf0]  ;;  %v5991_v10 = vld [vmem:[%s7328_s17 + $0x2e8] sm:$0xf0]  ;;  %v6467_v14 = vld [vmem:[%s7328_s17 + $0x244] sm:$0xf] }
 0x605   : > { %v3203_v50 = vadd.f32 %v3187_v61, %v8403_v59  ;;  %v3156_v11 = vmul.f32 0.044715, %v8427_v8  ;;  %v3212_v19 = vmul.f32 0.7978845, %v3196_v27  ;;  %4185 = vmatpush.bf16.msrb.mxu1 %v5698_v26  ;;  %4209 = vmatpush.bf16.msrb.mxu3 %v5858_v39  ;;  %v2254_v61 = vperm.slane %v8172_v28, 7 }
 0x606   : > { %v6445_v26 = vld [vmem:[%s7328_s17 + $0x194] sm:$0xf]  ;;  %v5983_v7 = vld [vmem:[%s7328_s17 + $0x2d8] sm:$0xf0] }
 0x607   : > { %v3219_v44 = vmul.f32 0.7978845, %v3203_v50  ;;  %v3172_v45 = vmul.f32 %v3156_v11, %v8427_v8  ;;  %v6655_v56 = vpop.eup %6654  ;;  %4197 = vmatpush.bf16.msrb.mxu2 %v5778_v15  ;;  %v5823_v50 = vld [vmem:[%s7328_s17 + $0x198] sm:$0xf0] }
 0x608   : > { %v3243_v9 = vadd.f32 1.0, %v6655_v56  ;;  %v5815_v56 = vld [vmem:[%s7328_s17 + $0x188] sm:$0xf0] }
 0x609   : > { %v3188_v31 = vmul.f32 %v3172_v45, %v8427_v8  ;;  %6656 = vtanh.f32 %v3219_v44  ;;  %4186 = vmatpush.bf16.msrb.mxu1 %v5690_v47  ;;  %4210 = vmatpush.bf16.msrb.mxu3 %v5850_v52  ;;  %v5999_v44 = vld [vmem:[%s7328_s17 + $0x2f8] sm:$0xf0]  ;;  %v5826_v45 = vor.u32 %v6445_v26, %v5823_v50  ;;  %v3140_v47 = vmul.f32 0.5, %v8427_v8 }
 0x60a   : > { %6658 = vtanh.f32 %v3212_v19  ;;  %v3080_v62 = vpop.f32.mrf.mxu0  ;;  %v3259_v1 = vmul.f32 %v3243_v9, %v3131_v20  ;;  %v6489_v19 = vld [vmem:[%s7328_s17 + $0x2f4] sm:$0xf]  ;;  %v5818_v53 = vor.u32 %v6443_v48, %v5815_v56  ;;  %v5911_v20 = vld [vmem:[%s7328_s17 + $0x248] sm:$0xf0] }
 0x60b   : > { %v3204_v13 = vadd.f32 %v3188_v31, %v8427_v8  ;;  %4198 = vmatpush.bf16.msrb.mxu2 %v5770_v33  ;;  %v3081_v23 = vadd.f32 %v3080_v62, %v2253_v54  ;;  %v6002_v57 = vor.u32 %v6489_v19, %v5999_v44  ;;  %v6469_v62 = vld [vmem:[%s7328_s17 + $0x254] sm:$0xf]  ;;  %v6463_v44 = vld [vmem:[%s7328_s17 + $0x224] sm:$0xf] }
 0x60c   : > { %v6461_v56 = vld [vmem:[%s7328_s17 + $0x214] sm:$0xf] }
 0x60d   : > { %v3220_v63 = vmul.f32 0.7978845, %v3204_v13  ;;  %4211 = vmatpush.bf16.msrb.mxu3 %v5842_v6 }
 0x60f   : > { %v6657_v55 = vpop.eup %6656  ;;  %6660 = vtanh.f32 %v3220_v63  ;;  %4199 = vmatpush.bf16.msrb.mxu2 %v5762_v43 }
 0x610   : > { %v3251_v17 = vadd.f32 1.0, %v6657_v55  ;;  %v6659_v4 = vpop.eup %6658  ;;  %v3108_v5 = vpop.f32.mrf.mxu2  ;;  %v6487_v55 = vld [vmem:[%s7328_s17 + $0x2e4] sm:$0xf] }
 0x611   : > { %v3244_v39 = vadd.f32 1.0, %v6659_v4  ;;  %4212 = vmatpush.bf16.msrb.mxu3 %v5834_v29  ;;  %v3109_v31 = vadd.f32 %v3108_v5, %v2254_v61  ;;  %v5994_v4 = vor.u32 %v6487_v55, %v5991_v10  ;;  %v6485_v29 = vld [vmem:[%s7328_s17 + $0x2d4] sm:$0xf] }
 0x612   : > { %v3267_v59 = vmul.f32 %v3251_v17, %v3139_v16  ;;  %v3082_v15 = vpop.f32.mrf.mxu0  ;;  %v5986_v37 = vor.u32 %v6485_v29, %v5983_v7 }
 0x613   : > { %4200 = vmatpush.bf16.msrb.mxu2 %v5754_v12  ;;  %v3260_v33 = vmul.f32 %v3244_v39, %v3132_v3  ;;  %v3083_v8 = vadd.f32 %v3082_v15, %v2253_v54  ;;  %v5922_v54 = vor.u32 %v6469_v62, %v5919_v42  ;;  %v5903_v12 = vld [vmem:[%s7328_s17 + $0x238] sm:$0xf0]  ;;  %v5975_v39 = vld [vmem:[%s7328_s17 + $0x2c8] sm:$0xf0] }
 0x614   : > { %v3094_v27 = vpop.f32.mrf.mxu1  ;;  %v8464_v11 = vpack.c.bf16 %v3267_v59, %v3259_v1  ;;  %v5959_v62 = vld [vmem:[%s7328_s17 + $0x2a8] sm:$0xf0] }
 0x615   : > { %v8460_v40 = vadd.f32 %v3094_v27, %v3081_v23  ;;  %v6661_v38 = vpop.eup %6660  ;;  %4213 = vmatpush.bf16.msrb.mxu3 %v5826_v45  ;;  %v5914_v23 = vor.u32 %v6467_v14, %v5911_v20  ;;  %v5895_v45 = vld [vmem:[%s7328_s17 + $0x228] sm:$0xf0] }
 0x616   : > { %4117 = vmatmul.bf16.vlgmr.msra.gmra.mxu0 %v8464_v11  ;;  %v3252_v49 = vadd.f32 1.0, %v6661_v38  ;;  %v5898_v48 = vor.u32 %v6463_v44, %v5895_v45  ;;  %v6047_v44 = vld [vmem:[%s7328_s17 + $0x358] sm:$0xf0] }
 0x617   : > { %v3149_v51 = vmul.f32 0.044715, %v8460_v40  ;;  %4221 = vmatpush.bf16.msra.mxu0 %v5938_v34  ;;  %v6465_v34 = vld [vmem:[%s7328_s17 + $0x234] sm:$0xf]  ;;  %v3133_v14 = vmul.f32 0.5, %v8460_v40 }
 0x618   : > { %v3268_v41 = vmul.f32 %v3252_v49, %v3140_v47  ;;  %v3110_v16 = vpop.f32.mrf.mxu2  ;;  %v5906_v19 = vor.u32 %v6465_v34, %v5903_v12  ;;  %v6521_v34 = vld [vmem:[%s7328_s17 + $0x3f4] sm:$0xf] }
 0x619   : > { %v3165_v52 = vmul.f32 %v3149_v51, %v8460_v40  ;;  %4214 = vmatpush.bf16.msrb.mxu3 %v5818_v53  ;;  %v3111_v5 = vadd.f32 %v3110_v16, %v2254_v61  ;;  %v6483_v61 = vld [vmem:[%s7328_s17 + $0x2c4] sm:$0xf] }
 0x61a   : > { %v3122_v13 = vpop.f32.mrf.mxu3  ;;  %v8484_v9 = vpack.c.bf16 %v3268_v41, %v3260_v33  ;;  %v5978_v49 = vor.u32 %v6483_v61, %v5975_v39  ;;  %v6459_v53 = vld [vmem:[%s7328_s17 + $0x204] sm:$0xf] }
 0x61b   : > { %v3181_v63 = vmul.f32 %v3165_v52, %v8460_v40  ;;  %v8482_v6 = vadd.f32 %v3122_v13, %v3109_v31  ;;  %4222 = vmatpush.bf16.msra.mxu0 %v5930_v30  ;;  %v6481_v31 = vld [vmem:[%s7328_s17 + $0x2b4] sm:$0xf]  ;;  %v5967_v52 = vld [vmem:[%s7328_s17 + $0x2b8] sm:$0xf0] }
 0x61c   : > { %v3096_v25 = vpop.f32.mrf.mxu1  ;;  %4131 = vmatmul.bf16.vlgmr.msra.gmra.mxu1 %v8484_v9  ;;  %v5887_v13 = vld [vmem:[%s7328_s17 + $0x218] sm:$0xf0] }
 0x61d   : > { %v3197_v43 = vadd.f32 %v3181_v63, %v8460_v40  ;;  %v3150_v35 = vmul.f32 0.044715, %v8482_v6  ;;  %v8490_v28 = vadd.f32 %v3096_v25, %v3083_v8  ;;  %4235 = vmatpush.bf16.msra.mxu1 %v6002_v57  ;;  %v5970_v57 = vor.u32 %v6481_v31, %v5967_v52  ;;  %v5879_v25 = vld [vmem:[%s7328_s17 + $0x208] sm:$0xf0]  ;;  %v6517_v31 = vld [vmem:[%s7328_s17 + $0x3d4] sm:$0xf] }
 0x61e   : > { %v5890_v8 = vor.u32 %v6461_v56, %v5887_v13  ;;  %v3134_v12 = vmul.f32 0.5, %v8482_v6  ;;  %v6111_v52 = vld [vmem:[%s7328_s17 + $0x3d8] sm:$0xf0] }
 0x61f   : > { %v3166_v17 = vmul.f32 %v3150_v35, %v8482_v6  ;;  %v3157_v22 = vmul.f32 0.044715, %v8490_v28  ;;  %v3213_v0 = vmul.f32 0.7978845, %v3197_v43  ;;  %4223 = vmatpush.bf16.msra.mxu0 %v5922_v54  ;;  %v6505_v43 = vld [vmem:[%s7328_s17 + $0x374] sm:$0xf]  ;;  %v6114_v13 = vor.u32 %v6517_v31, %v6111_v52 }
 0x620   : > { %v6063_v35 = vld [vmem:[%s7328_s17 + $0x378] sm:$0xf0]  ;;  %v6477_v54 = vld [vmem:[%s7328_s17 + $0x294] sm:$0xf]  ;;  %v3141_v20 = vmul.f32 0.5, %v8490_v28 }
 0x621   : > { %v3182_v27 = vmul.f32 %v3166_v17, %v8482_v6  ;;  %v3173_v1 = vmul.f32 %v3157_v22, %v8490_v28  ;;  %4236 = vmatpush.bf16.msra.mxu1 %v5994_v4  ;;  %6662 = vtanh.f32 %v3213_v0  ;;  %v5882_v22 = vor.u32 %v6459_v53, %v5879_v25  ;;  %v6503_v0 = vld [vmem:[%s7328_s17 + $0x364] sm:$0xf]  ;;  %v6031_v56 = vld [vmem:[%s7328_s17 + $0x338] sm:$0xf0]  ;;  %v6493_v53 = vld [vmem:[%s7328_s17 + $0x314] sm:$0xf] }
 0x622   : > { %v3124_v59 = vpop.f32.mrf.mxu3  ;;  %v6066_v29 = vor.u32 %v6505_v43, %v6063_v35  ;;  %v6015_v25 = vld [vmem:[%s7328_s17 + $0x318] sm:$0xf0]  ;;  %v6087_v43 = vld [vmem:[%s7328_s17 + $0x3a8] sm:$0xf0] }
 0x623   : > { %v3198_v26 = vadd.f32 %v3182_v27, %v8482_v6  ;;  %v3189_v50 = vmul.f32 %v3173_v1, %v8490_v28  ;;  %v8505_v36 = vadd.f32 %v3124_v59, %v3111_v5  ;;  %4224 = vmatpush.bf16.msra.mxu0 %v5914_v23  ;;  %v6055_v5 = vld [vmem:[%s7328_s17 + $0x368] sm:$0xf0]  ;;  %v6475_v1 = vld [vmem:[%s7328_s17 + $0x284] sm:$0xf]  ;;  %v6018_v35 = vor.u32 %v6493_v53, %v6015_v25 }
 0x624   : > { %v6058_v61 = vor.u32 %v6503_v0, %v6055_v5 }
 0x625   : > { %v3205_v38 = vadd.f32 %v3189_v50, %v8490_v28  ;;  %v3158_v51 = vmul.f32 0.044715, %v8505_v36  ;;  %v3214_v15 = vmul.f32 0.7978845, %v3198_v26  ;;  %4237 = vmatpush.bf16.msra.mxu1 %v5986_v37  ;;  %v5943_v28 = vld [vmem:[%s7328_s17 + $0x288] sm:$0xf0] }
 0x626   : > { %4173 = vmatmul.bf16.vlgmr.msrb.gmra.mxu0 %v8320_v46  ;;  %v6479_v46 = vld [vmem:[%s7328_s17 + $0x2a4] sm:$0xf]  ;;  %v3142_v26 = vmul.f32 0.5, %v8505_v36  ;;  %v6127_v37 = vld [vmem:[%s7328_s17 + $0x3f8] sm:$0xf0]  ;;  %v5946_v39 = vor.u32 %v6475_v1, %v5943_v28 }
 0x627   : > { %v3221_v3 = vmul.f32 0.7978845, %v3205_v38  ;;  %v3174_v47 = vmul.f32 %v3158_v51, %v8505_v36  ;;  %4225 = vmatpush.bf16.msra.mxu0 %v5906_v19  ;;  %v6663_v33 = vpop.eup %6662  ;;  %v5962_v10 = vor.u32 %v6479_v46, %v5959_v62  ;;  %v6501_v19 = vld [vmem:[%s7328_s17 + $0x354] sm:$0xf]  ;;  %v6130_v6 = vor.u32 %v6521_v34, %v6127_v37  ;;  %v6495_v46 = vld [vmem:[%s7328_s17 + $0x324] sm:$0xf] }
 0x628   : > { %v3245_v63 = vadd.f32 1.0, %v6663_v33  ;;  %v6515_v33 = vld [vmem:[%s7328_s17 + $0x3c4] sm:$0xf] }
 0x629   : > { %v3190_v30 = vmul.f32 %v3174_v47, %v8505_v36  ;;  %6664 = vtanh.f32 %v3221_v3  ;;  %4238 = vmatpush.bf16.msra.mxu1 %v5978_v49  ;;  %v6050_v3 = vor.u32 %v6501_v19, %v6047_v44  ;;  %v6499_v47 = vld [vmem:[%s7328_s17 + $0x344] sm:$0xf] }
 0x62a   : > { %6666 = vtanh.f32 %v3214_v15  ;;  %v3261_v4 = vmul.f32 %v3245_v63, %v3133_v14  ;;  %v6119_v15 = vld [vmem:[%s7328_s17 + $0x3e8] sm:$0xf0] }
 0x62b   : > { %v3206_v41 = vadd.f32 %v3190_v30, %v8505_v36  ;;  %4226 = vmatpush.bf16.msra.mxu0 %v5898_v48  ;;  %v6519_v36 = vld [vmem:[%s7328_s17 + $0x3e4] sm:$0xf]  ;;  %v6497_v48 = vld [vmem:[%s7328_s17 + $0x334] sm:$0xf] }
 0x62c   : > { %4187 = vmatmul.bf16.vlgmr.msrb.gmra.mxu1 %v8339_v58  ;;  %v5951_v58 = vld [vmem:[%s7328_s17 + $0x298] sm:$0xf0]  ;;  %v6122_v49 = vor.u32 %v6519_v36, %v6119_v15 }
 0x62d   : > { %v3222_v42 = vmul.f32 0.7978845, %v3206_v41  ;;  %4239 = vmatpush.bf16.msra.mxu1 %v5970_v57  ;;  %v5954_v7 = vor.u32 %v6477_v54, %v5951_v58  ;;  %v6103_v41 = vld [vmem:[%s7328_s17 + $0x3c8] sm:$0xf0]  ;;  %v6034_v57 = vor.u32 %v6497_v48, %v6031_v56  ;;  %v6491_v54 = vld [vmem:[%s7328_s17 + $0x304] sm:$0xf] }
 0x62e   : > { %v6106_v62 = vor.u32 %v6515_v33, %v6103_v41 }
 0x62f   : > { %v6665_v55 = vpop.eup %6664  ;;  %6668 = vtanh.f32 %v3222_v42  ;;  %4227 = vmatpush.bf16.msra.mxu0 %v5890_v8  ;;  %v6513_v42 = vld [vmem:[%s7328_s17 + $0x3b4] sm:$0xf]  ;;  %v6095_v8 = vld [vmem:[%s7328_s17 + $0x3b8] sm:$0xf0] }
 0x630   : > { %v3253_v16 = vadd.f32 1.0, %v6665_v55  ;;  %v6667_v17 = vpop.eup %6666  ;;  %v6098_v55 = vor.u32 %v6513_v42, %v6095_v8 }
 0x631   : > { %4240 = vmatpush.bf16.msra.mxu1 %v5962_v10  ;;  %v3246_v40 = vadd.f32 1.0, %v6667_v17  ;;  %v6511_v10 = vld [vmem:[%s7328_s17 + $0x3a4] sm:$0xf] }
 0x632   : > { %v3269_v23 = vmul.f32 %v3253_v16, %v3141_v20  ;;  %v6090_v14 = vor.u32 %v6511_v10, %v6087_v43  ;;  %v6509_v20 = vld [vmem:[%s7328_s17 + $0x394] sm:$0xf]  ;;  %v6079_v16 = vld [vmem:[%s7328_s17 + $0x398] sm:$0xf0] }
 0x633   : > { %4228 = vmatpush.bf16.msra.mxu0 %v5882_v22  ;;  %v3262_v38 = vmul.f32 %v3246_v40, %v3134_v12  ;;  %v6082_v17 = vor.u32 %v6509_v20, %v6079_v16  ;;  %v6507_v22 = vld [vmem:[%s7328_s17 + $0x384] sm:$0xf]  ;;  %v3407_v40 = vld [vmem:[%s623_s4] sm:$0x3] }
 0x634   : > { %v8534_v27 = vpack.c.bf16 %v3269_v23, %v3261_v4  ;;  %v6071_v4 = vld [vmem:[%s7328_s17 + $0x388] sm:$0xf0]  ;;  %v3410_v8 = vperm.slane %v3407_v40, 1 }
 0x635   : > { %v6669_v59 = vpop.eup %6668  ;;  %4241 = vmatpush.bf16.msra.mxu1 %v5954_v7  ;;  %v6074_v23 = vor.u32 %v6507_v22, %v6071_v4 }
 0x636   : > { %4145 = vmatmul.bf16.vlgmr.msra.gmra.mxu2 %v8534_v27  ;;  %v3254_v50 = vadd.f32 1.0, %v6669_v59  ;;  %4229 = vmatmul.bf16.vlgmr.msra.gmra.mxu0 %v8464_v11  ;;  %v6039_v11 = vld [vmem:[%s7328_s17 + $0x348] sm:$0xf0]  ;;  %v3409_v59 = vperm.slane %v3407_v40, 0 }
 0x637   : > { %4249 = vmatpush.bf16.msra.mxu2 %v6066_v29  ;;  %v6042_v30 = vor.u32 %v6499_v47, %v6039_v11  ;;  %v6670_v47 = vld [vmem:[#allocation2 + $0x10] sm:$0xff] }
 0x638   : > { %v3270_v51 = vmul.f32 %v3254_v50, %v3142_v26  ;;  %v4277_v11 = vadd.f32 %v6670_v47, %v8155_v60 }
 0x639   : > { %4242 = vmatpush.bf16.msra.mxu1 %v5946_v39 }
 0x63a   : > { %v3278_v45 = vpack.c.bf16 %v3270_v51, %v3262_v38 }
 0x63b   : > { %4250 = vmatpush.bf16.msra.mxu2 %v6058_v61 }
 0x63c   : > { %4159 = vmatmul.bf16.vlgmr.msra.gmra.mxu3 %v3278_v45  ;;  %4243 = vmatmul.bf16.vlgmr.msra.gmra.mxu1 %v8484_v9  ;;  %v6023_v9 = vld [vmem:[%s7328_s17 + $0x328] sm:$0xf0] }
 0x63d   : > { %4263 = vmatpush.bf16.msra.mxu3 %v6130_v6  ;;  %v6026_v63 = vor.u32 %v6495_v46, %v6023_v9  ;;  %v6671_v46 = vld [vmem:[#allocation2 + $0x18] sm:$0xff] }
 0x63e   : > { %v4279_v9 = vadd.f32 %v6671_v46, %v8177_v32 }
 0x63f   : > { %4251 = vmatpush.bf16.msra.mxu2 %v6050_v3 }
 0x641   : > { %4264 = vmatpush.bf16.msra.mxu3 %v6122_v49 }
 0x643   : > { %4252 = vmatpush.bf16.msra.mxu2 %v6042_v30 }
 0x645   : > { %4265 = vmatpush.bf16.msra.mxu3 %v6114_v13 }
 0x646   : > { %4201 = vmatmul.bf16.vlgmr.msrb.gmra.mxu2 %v8376_v18  ;;  %v6007_v18 = vld [vmem:[%s7328_s17 + $0x308] sm:$0xf0] }
 0x647   : > { %4253 = vmatpush.bf16.msra.mxu2 %v6034_v57  ;;  %v6010_v58 = vor.u32 %v6491_v54, %v6007_v18 }
 0x649   : > { %4266 = vmatpush.bf16.msra.mxu3 %v6106_v62 }
 0x64b   : > { %4254 = vmatpush.bf16.msra.mxu2 %v6026_v63 }
 0x64c   : > { %4215 = vmatmul.bf16.vlgmr.msrb.gmra.mxu3 %v8405_v21 }
 0x64d   : > { %4267 = vmatpush.bf16.msra.mxu3 %v6098_v55 }
 0x64f   : > { %4255 = vmatpush.bf16.msra.mxu2 %v6018_v35 }
 0x651   : > { %4268 = vmatpush.bf16.msra.mxu3 %v6090_v14 }
 0x653   : > { %4256 = vmatpush.bf16.msra.mxu2 %v6010_v58 }
 0x655   : > { %4269 = vmatpush.bf16.msra.mxu3 %v6082_v17 }
 0x656   : > { %4257 = vmatmul.bf16.vlgmr.msra.gmra.mxu2 %v8534_v27 }
 0x659   : > { %4270 = vmatpush.bf16.msra.mxu3 %v6074_v23 }
 0x65c   : > { %4271 = vmatmul.bf16.vlgmr.msra.gmra.mxu3 %v3278_v45 }
 0x663   : > { %v4062_v21 = vpop.f32.mrf.mxu0 }
 0x664   : > { %v4063_v26 = vadd.f32 %v4062_v21, %v3409_v59 }
 0x669   : > { %v4076_v29 = vpop.f32.mrf.mxu1 }
 0x66a   : > { %v4077_v50 = vadd.f32 %v4076_v29, %v4063_v26 }
 0x66b   : > { %v4064_v7 = vpop.f32.mrf.mxu0 }
 0x66c   : > { %v4065_v51 = vadd.f32 %v4064_v7, %v3409_v59 }
 0x671   : > { %v4078_v5 = vpop.f32.mrf.mxu1 }
 0x672   : > { %v4079_v6 = vadd.f32 %v4078_v5, %v4065_v51 }
 0x679   : > { %v4090_v0 = vpop.f32.mrf.mxu2 }
 0x67a   : > { %v4091_v37 = vadd.f32 %v4090_v0, %v4077_v50  ;;  %v6672_v0 = vld [vmem:[#allocation2] sm:$0xff] }
 0x67b   : > { %v4278_v5 = vadd.f32 %v6672_v0, %v8169_v24 }
 0x67f   : > { %v4104_v1 = vpop.f32.mrf.mxu3 }
 0x680   : > { %v4105_v27 = vadd.f32 %v4104_v1, %v4091_v37  ;;  %v6673_v37 = vld [vmem:[#allocation2 + $0x8] sm:$0xff] }
 0x681   : > { %v4092_v34 = vpop.f32.mrf.mxu2 }
 0x682   : > { %v4093_v36 = vadd.f32 %v4092_v34, %v4079_v6 }
 0x687   : > { %v4106_v61 = vpop.f32.mrf.mxu3 }
 0x688   : > { %v4107_v49 = vadd.f32 %v4106_v61, %v4093_v36  ;;  %v4280_v61 = vadd.f32 %v6673_v37, %v8196_v2 }
 0x693   : > { %v4118_v28 = vpop.f32.mrf.mxu0 }
 0x694   : > { %v4119_v19 = vadd.f32 %v4118_v28, %v4105_v27 }
 0x699   : > { %v4132_v12 = vpop.f32.mrf.mxu1 }
 0x69a   : > { %v4133_v45 = vadd.f32 %v4132_v12, %v4119_v19 }
 0x69b   : > { %v4120_v39 = vpop.f32.mrf.mxu0 }
 0x69c   : > { %v4121_v48 = vadd.f32 %v4120_v39, %v4107_v49 }
 0x6a1   : > { %v4134_v44 = vpop.f32.mrf.mxu1 }
 0x6a2   : > { %v4135_v13 = vadd.f32 %v4134_v44, %v4121_v48 }
 0x6a3   : > { %v4174_v52 = vpop.f32.mrf.mxu0 }
 0x6a4   : > { %v4175_v60 = vadd.f32 %v4174_v52, %v3410_v8 }
 0x6a9   : > { %v4188_v33 = vpop.f32.mrf.mxu1 }
 0x6aa   : > { %v4189_v10 = vadd.f32 %v4188_v33, %v4175_v60 }
 0x6ab   : > { %v4176_v53 = vpop.f32.mrf.mxu0 }
 0x6ac   : > { %v4177_v14 = vadd.f32 %v4176_v53, %v3410_v8 }
 0x6b1   : > { %v4190_v25 = vpop.f32.mrf.mxu1 }
 0x6b2   : > { %v4191_v16 = vadd.f32 %v4190_v25, %v4177_v14 }
 0x6b3   : > { %v4230_v18 = vpop.f32.mrf.mxu0 }
 0x6b9   : > { %v4146_v38 = vpop.f32.mrf.mxu2  ;;  %v4244_v17 = vpop.f32.mrf.mxu1 }
 0x6ba   : > { %v4147_v15 = vadd.f32 %v4146_v38, %v4133_v45 }
 0x6bb   : > { %v4232_v29 = vpop.f32.mrf.mxu0 }
 0x6bf   : > { %v4160_v3 = vpop.f32.mrf.mxu3 }
 0x6c0   : > { %v4161_v31 = vadd.f32 %v4160_v3, %v4147_v15 }
 0x6c1   : > { %v4148_v30 = vpop.f32.mrf.mxu2  ;;  %v4246_v59 = vpop.f32.mrf.mxu1 }
 0x6c2   : > { %v4281_v56 = vadd.f32 %v4277_v11, %v4161_v31  ;;  %v4149_v41 = vadd.f32 %v4148_v30, %v4135_v13 }
 0x6c4   : > { %4285 = vst [vmem:[#allocation2 + $0x10] sm:$0xff] %v4281_v56 }
 0x6c7   : > { %v4162_v57 = vpop.f32.mrf.mxu3 }
 0x6c8   : > { %v4163_v62 = vadd.f32 %v4162_v57, %v4149_v41 }
 0x6c9   : > { %v4202_v42 = vpop.f32.mrf.mxu2 }
 0x6ca   : > { %v4283_v63 = vadd.f32 %v4279_v9, %v4163_v62  ;;  %v4203_v35 = vadd.f32 %v4202_v42, %v4189_v10 }
 0x6cc   : > { %4287 = vst [vmem:[#allocation2 + $0x18] sm:$0xff] %v4283_v63 }
 0x6cf   : > { %v4216_v55 = vpop.f32.mrf.mxu3 }
 0x6d0   : > { %v4217_v54 = vadd.f32 %v4216_v55, %v4203_v35 }
 0x6d1   : > { %v4204_v43 = vpop.f32.mrf.mxu2 }
 0x6d2   : > { %v4231_v58 = vadd.f32 %v4230_v18, %v4217_v54  ;;  %v4205_v22 = vadd.f32 %v4204_v43, %v4191_v16 }
 0x6d4   : > { %v4245_v23 = vadd.f32 %v4244_v17, %v4231_v58 }
 0x6d7   : > { %v4218_v20 = vpop.f32.mrf.mxu3 }
 0x6d8   : > { %v4219_v4 = vadd.f32 %v4218_v20, %v4205_v22 }
 0x6d9   : > { %v4258_v32 = vpop.f32.mrf.mxu2 }
 0x6da   : > { %v4259_v21 = vadd.f32 %v4258_v32, %v4245_v23  ;;  %v4233_v40 = vadd.f32 %v4232_v29, %v4219_v4 }
 0x6dc   : > { %v4247_v12 = vadd.f32 %v4246_v59, %v4233_v40 }
 0x6df   : > { %v4272_v7 = vpop.f32.mrf.mxu3 }
 0x6e0   : > { %v4273_v1 = vadd.f32 %v4272_v7, %v4259_v21 }
 0x6e1   : > { %v4260_v34 = vpop.f32.mrf.mxu2 }
 0x6e2   : > { %v4282_v28 = vadd.f32 %v4278_v5, %v4273_v1  ;;  %v4261_v26 = vadd.f32 %v4260_v34, %v4247_v12 }
 0x6e4   : > { %4286 = vst [vmem:[#allocation2] sm:$0xff] %v4282_v28 }
 0x6e7   : > { %v4274_v50 = vpop.f32.mrf.mxu3 }
 0x6e8   : > { %v4275_v39 = vadd.f32 %v4274_v50, %v4261_v26  ;;  %4292 = sbr.rel (%p6131_p7) target bundleno = 1804 (0x70c), region = 108 }
 0x6ea   : > { %v4284_v27 = vadd.f32 %v4280_v61, %v4275_v39 }
 0x6ec   : > { %4288 = vst [vmem:[#allocation2 + $0x8] sm:$0xff] %v4284_v27 }
 0x6ed   : > { %v4293_v38 = vrot.slane %v4281_v56, 4  ;;  %v4299_v24 = vrot.slane %v4282_v28, 4  ;;  %v4305_v51 = vrot.slane %v4283_v63, 4  ;;  %v4311_v19 = vrot.slane %v4284_v27, 4 }
 0x6ee   : > { %v7008_v15 = vmov 8.0   ;;  %vm4334_vm10 = vcmask 1041408   ;;  %vm4342_vm11 = vcmask 1041409   ;;  %vm4344_vm12 = vcmask 1043459  }
 0x6ef   : > { %v4294_v44 = vadd.f32 %v4293_v38, %v4281_v56  ;;  %v4300_v6 = vadd.f32 %v4299_v24, %v4282_v28  ;;  %v4306_v45 = vadd.f32 %v4305_v51, %v4283_v63  ;;  %v4312_v36 = vadd.f32 %v4311_v19, %v4284_v27 }
 0x6f0   : > { %6674 = vrcp.f32 %v7008_v15  ;;  %vm4346_vm13 = vcmask 1045509   ;;  %vm4348_vm14 = vcmask 1047559  }
 0x6f1   : > { %v4295_v3 = vrot.slane %v4294_v44, 2  ;;  %v4301_v47 = vrot.slane %v4300_v6, 2  ;;  %v4307_v11 = vrot.slane %v4306_v45, 2  ;;  %v4313_v2 = vrot.slane %v4312_v36, 2 }
 0x6f3   : > { %v4296_v49 = vadd.f32 %v4295_v3, %v4294_v44  ;;  %v4302_v31 = vadd.f32 %v4301_v47, %v4300_v6  ;;  %v4308_v52 = vadd.f32 %v4307_v11, %v4306_v45  ;;  %v4314_v30 = vadd.f32 %v4313_v2, %v4312_v36 }
 0x6f5   : > { %v4297_v13 = vrot.slane %v4296_v49, 1  ;;  %v4303_v41 = vrot.slane %v4302_v31, 1  ;;  %v4309_v57 = vrot.slane %v4308_v52, 1  ;;  %v4315_v46 = vrot.slane %v4314_v30, 1 }
 0x6f6   : > { %v6675_v48 = vpop.eup %6674 }
 0x6f7   : > { %v4318_v33 = vmul.f32 8.0, %v6675_v48  ;;  %v4298_v9 = vadd.f32 %v4297_v13, %v4296_v49  ;;  %v4304_v42 = vadd.f32 %v4303_v41, %v4302_v31  ;;  %v4310_v8 = vadd.f32 %v4309_v57, %v4308_v52 }
 0x6f8   : > { %v4316_v63 = vadd.f32 %v4315_v46, %v4314_v30  ;;  %vm4322_vm8 = vweird.f32 %v6675_v48 }
 0x6f9   : > { %v4319_v56 = vsub.f32 1.0, %v4318_v33 }
 0x6fb   : > { %v4320_v62 = vmul.f32 %v6675_v48, %v4319_v56 }
 0x6fd   : > { %v4321_v53 = vadd.f32 %v6675_v48, %v4320_v62 }
 0x6ff   : > { %v4323_v60 = vsel %vm4322_vm8, %v6675_v48, %v4321_v53 }
 0x700   : > { %v4324_v25 = vmul.f32 %v4323_v60, %v4298_v9  ;;  %v4325_v55 = vmul.f32 %v4323_v60, %v4304_v42  ;;  %v4326_v10 = vmul.f32 %v4323_v60, %v4310_v8  ;;  %v4327_v43 = vmul.f32 %v4323_v60, %v4316_v63 }
 0x702   : > { %v4332_v35 = vrot.slane %v4325_v55, 6  ;;  %v4333_v54 = vrot.slane %v4327_v43, 6 }
 0x704   : > { %v4335_v18 = vsel %vm4334_vm10, %v4324_v25, %v4332_v35  ;;  %v4336_v14 = vsel %vm4334_vm10, %v4326_v10, %v4333_v54 }
 0x705   : > { %v4341_v20 = vrot.slane %v4336_v14, 7 }
 0x707   : > { %v4343_v16 = vsel %vm4342_vm11, %v4341_v20, %v4335_v18 }
 0x708   : > { %v4345_v58 = vsel %vm4344_vm12, %v4341_v20, %v4343_v16 }
 0x709   : > { %v4347_v17 = vsel %vm4346_vm13, %v4341_v20, %v4345_v58 }
 0x70a   : > { %v4349_v32 = vsel %vm4348_vm14, %v4341_v20, %v4347_v17 }
 0x70b   : > { %4351 = vst [vmem:[#allocation17] sm:$0xf] %v4349_v32 }
 0x70c PF: > { %s8667_s20 = sld [smem:[#allocation25_spill]]  ;;  %s7009_s24 = smov [#allocation17]  }
 0x70d   : > { %s4358_s0 = sshll.u32 %s7009_s24, 4  ;;  %s8668_s28 = sld [smem:[#allocation35_spill]]  ;;  %s4359_s0 = int_to_ptr.vmem [resolvable:$true] %s4358_s0 }
 0x712   : > { %p6572_p10 = scmp.eq.s32.totalorder %s8667_s20, 2 }
 0x713   : > { %s4360_s12 = sshll.u32 %s8668_s28, 4  ;;  %s4361_s12 = int_to_ptr.hbm [resolvable:$true] %s4360_s12 }
 0x714   : > { %6543 = dma.vmem_to_hbm [thread:$0]  (%p6572_p10), %s4359_s0, 64, %s4361_s12, [#allocation5]  }
 0x715   : > { %6981 = dma.done.wait (%p6572_p10), [#allocation5], 64  }
 0x716   : > { %6983 = vsyncadd (%p6572_p10), [#allocation5], 4294967232 }
 0x717 PF: > { %s8669_s24 = sld [smem:[#allocation26_spill]]  ;;  %s8672_s21 = smov %s6990_s22 }
 0x718   : > { %s8670_s29 = sld [smem:[#allocation24_spill]] }
 0x719   : > { %s8671_s23 = sld [smem:[#allocation27_spill]] }
 0x71d   : > { %p35_p5 = scmp.ge.s32.totalorder %s8669_s24, 5  }
 0x71e   : > { %s8673_s22 = smov %s8670_s29 }
 0x71f   :  { %37 = sbr.rel (!%p35_p5) target bundleno = 20 (0x14), region = 198 }
 0x724   :  { %4374 = vsyncpa [#allocation4], 1 }
 0x725   :  { %4376 = vsyncpa [#allocation4 + $0x1], 1 }
 0x726   :  { %4377 = vsyncpa [#allocation7], 1 }
 0x727   :  { %4379 = vsyncpa [#allocation7 + $0x1], 1 }
 0x728   :  { %4380 = vsyncpa [#allocation10], 1 }
 0x729   :  { %4382 = vsyncpa [#allocation10 + $0x1], 1 }
 0x72a   :  { %4383 = vsyncpa [#allocation13], 1 }
 0x72b   :  { %4385 = vsyncpa [#allocation13 + $0x1], 1 }
 0x72c   :  { %4386 = vsyncpa [#allocation16], 1 }
 0x72d   :  { %4388 = vsyncpa [#allocation16 + $0x1], 1 }
 0x72e   :  { %4389 = vsyncpa [#allocation5], 1 }
 0x72f   :  { %4391 = vsyncpa [#allocation5 + $0x1], 1 }

</bundles_post_ra>
